<compile_context>
chip_gen: v5e
topology: v5e:2x2
jax: 0.10.0
libtpu: 0.0.40
codegen_flags: <defaults>
</compile_context>

<pallas_src>
import functools
import math

import jax
import jax.numpy as jnp
from jax.experimental import pallas as pl
from jax.experimental.pallas import tpu as pltpu


# ---------------------------------------------------------------------------
# Helpers
# ---------------------------------------------------------------------------
def _vmem_capacity_bytes():
    """Per-core VMEM capacity; conservative 64 MiB (v7x) fallback."""
    try:
        cap = getattr(pltpu.get_tpu_info(), "vmem_capacity_bytes", None)
        if cap:
            return int(cap)
    except Exception:
        pass
    return 64 << 20


def _round_up(x, m):
    return ((x + m - 1) // m) * m


def _pick_row_tile(m_padded):
    for t in (512, 256, 128, 64, 32, 16, 8):
        if m_padded % t == 0:
            return t
    return m_padded


def _pick_k_tile(d):
    # Tile the reduction axis only when it is big; otherwise use the full dim
    # (which is always a legal last-dim block size).
    if d > 1024 and d % 512 == 0:
        return 512
    return d


def _pick_time_chunk(T, B, H, budget_bytes):
    """Largest divisor of T whose streamed residency fits the budget."""
    # per-timestep resident bytes (double-buffered): bf16 gates (2 dirs) +
    # f32 outputs (2 dirs).
    per_t = 2 * (2 * B * 4 * H * 2 + 2 * B * H * 4)
    best = 1
    for tc in range(1, T + 1):
        if T % tc == 0 and per_t * tc <= budget_bytes:
            best = tc
    return best


def _sig(x):
    # sigmoid(x) == 0.5 * tanh(0.5 * x) + 0.5  (exact identity; 1 EUP op).
    return 0.5 * jnp.tanh(0.5 * x) + 0.5


def _lstm_cell(pre, c_prev, H):
    """pre: (B, 4H) f32 pre-activations in PyTorch gate order [i, f, g, o]."""
    i_g = _sig(pre[:, 0:H])
    f_g = _sig(pre[:, H:2 * H])
    g_g = jnp.tanh(pre[:, 2 * H:3 * H])
    o_g = _sig(pre[:, 3 * H:4 * H])
    c_new = f_g * c_prev + i_g * g_g
    h_new = o_g * jnp.tanh(c_new)
    return h_new, c_new


# ---------------------------------------------------------------------------
# Kernel 1: hoisted input projection
#   (M, D) @ (D, 4H) + bias  for both directions, bf16 MXU, f32 accumulate,
#   bf16 outputs.  Grid = (rows, K) with "arbitrary" K axis.
# ---------------------------------------------------------------------------
def _proj_kernel(x_ref, wf_ref, wb_ref, bf_ref, bb_ref,
                 of_ref, ob_ref, accf, accb):
    k = pl.program_id(1)

    @pl.when(k == 0)
    def _():
        accf[...] = jnp.zeros_like(accf)
        accb[...] = jnp.zeros_like(accb)

    xb = x_ref[...].astype(jnp.bfloat16)
    accf[...] += jnp.dot(xb, wf_ref[...], preferred_element_type=jnp.float32)
    accb[...] += jnp.dot(xb, wb_ref[...], preferred_element_type=jnp.float32)

    @pl.when(k == pl.num_programs(1) - 1)
    def _():
        of_ref[...] = (accf[...] + bf_ref[...]).astype(of_ref.dtype)
        ob_ref[...] = (accb[...] + bb_ref[...]).astype(ob_ref.dtype)


def input_projection(x_flat, wih_f, wih_b, b_f, b_b):
    """x_flat: (M, D) f32 -> two (M, 4H) bf16 gate-preactivation arrays."""
    M, D = x_flat.shape
    G = wih_f.shape[1]  # 4H

    Mp = _round_up(M, 8)
    if Mp != M:
        x_flat = jnp.pad(x_flat, ((0, Mp - M), (0, 0)))
    tm = _pick_row_tile(Mp)
    tk = _pick_k_tile(D)

    wf = wih_f.astype(jnp.bfloat16)
    wb = wih_b.astype(jnp.bfloat16)

    out_f, out_b = pl.pallas_call(
        _proj_kernel,
        out_shape=(jax.ShapeDtypeStruct((Mp, G), jnp.bfloat16),
                   jax.ShapeDtypeStruct((Mp, G), jnp.bfloat16)),
        grid=(Mp // tm, D // tk),
        in_specs=[pl.BlockSpec((tm, tk), lambda i, k: (i, k)),
                  pl.BlockSpec((tk, G), lambda i, k: (k, 0)),
                  pl.BlockSpec((tk, G), lambda i, k: (k, 0)),
                  pl.BlockSpec((1, G), lambda i, k: (0, 0)),
                  pl.BlockSpec((1, G), lambda i, k: (0, 0))],
        out_specs=[pl.BlockSpec((tm, G), lambda i, k: (i, 0)),
                   pl.BlockSpec((tm, G), lambda i, k: (i, 0))],
        scratch_shapes=[pltpu.VMEM((tm, G), jnp.float32),
                        pltpu.VMEM((tm, G), jnp.float32)],
        compiler_params=pltpu.CompilerParams(
            dimension_semantics=("parallel", "arbitrary")),
    )(x_flat, wf, wb, b_f, b_b)

    if Mp != M:
        out_f = out_f[:M]
        out_b = out_b[:M]
    return out_f, out_b


# ---------------------------------------------------------------------------
# Kernel 2: bidirectional LSTM recurrence over precomputed input gates,
# streamed in time chunks.  Only h @ W_hh remains inside the serial loop.
# ---------------------------------------------------------------------------
def _make_birecurrence_kernel(Tc, B, H, unroll):
    def kernel(gf_ref,          # (Tc, B, 4H) bf16 fwd gates (ascending time)
               gb_ref,          # (Tc, B, 4H) bf16 bwd gates (reversed chunk)
               whf_ref,         # (H, 4H) bf16
               whb_ref,         # (H, 4H) bf16
               of_ref,          # (Tc, B, H) f32 fwd output
               ob_ref,          # (Tc, B, H) f32 bwd output (reversed chunk)
               hf_ref, cf_ref,  # (B, H) f32 forward state (persists over grid)
               hb_ref, cb_ref): # (B, H) f32 backward state

        @pl.when(pl.program_id(0) == 0)
        def _():
            hf_ref[...] = jnp.zeros_like(hf_ref)
            cf_ref[...] = jnp.zeros_like(cf_ref)
            hb_ref[...] = jnp.zeros_like(hb_ref)
            cb_ref[...] = jnp.zeros_like(cb_ref)

        def step(s, carry):
            sb = Tc - 1 - s
            # One small bf16 MXU push per direction (no wasted quadrants).
            rec_f = jnp.dot(hf_ref[...].astype(jnp.bfloat16), whf_ref[...],
                            preferred_element_type=jnp.float32)
            rec_b = jnp.dot(hb_ref[...].astype(jnp.bfloat16), whb_ref[...],
                            preferred_element_type=jnp.float32)
            pre_f = gf_ref[s].astype(jnp.float32) + rec_f     # (B, 4H)
            pre_b = gb_ref[sb].astype(jnp.float32) + rec_b    # (B, 4H)

            hf_new, cf_new = _lstm_cell(pre_f, cf_ref[...], H)
            hb_new, cb_new = _lstm_cell(pre_b, cb_ref[...], H)

            hf_ref[...] = hf_new
            cf_ref[...] = cf_new
            hb_ref[...] = hb_new
            cb_ref[...] = cb_new

            # Full-width lane-dense stores, one per direction.
            of_ref[s] = hf_new
            ob_ref[sb] = hb_new
            return carry

        jax.lax.fori_loop(0, Tc, step, None, unroll=unroll)

    return kernel


def bilstm_layer(x_tbd, layer_params):
    """x_tbd: (T, B, D) f32 -> (T, B, 2H) f32 ([forward ; backward])."""
    T, B, D = x_tbd.shape
    wih_f, wih_b, whh_f, whh_b, b_f, b_b = layer_params
    H = whh_f.shape[0]
    G = 4 * H

    # 1) Hoisted input projection (all timesteps, both directions).
    gf_flat, gb_flat = input_projection(
        x_tbd.reshape(T * B, D), wih_f, wih_b, b_f, b_b)
    gates_f = gf_flat.reshape(T, B, G)
    gates_b = gb_flat.reshape(T, B, G)

    # 2) Serial recurrence, streamed over time chunks.
    vmem_cap = _vmem_capacity_bytes()
    Tc = _pick_time_chunk(T, B, H, budget_bytes=min(vmem_cap // 4, 16 << 20))
    nT = T // Tc

    # Unroll as a function of the per-step working set (review item).
    per_step_live = 2 * B * G * 4  # both directions' f32 pre-activations
    if Tc <= 8:
        unroll = True
    elif per_step_live <= (32 << 10):
        unroll = 4
    else:
        unroll = 2

    whf = whh_f.astype(jnp.bfloat16)
    whb = whh_b.astype(jnp.bfloat16)

    # Residency-based VMEM limit, capped by the chip's actual capacity.
    gate_chunk = Tc * B * G * 2      # bf16
    out_chunk = Tc * B * H * 4       # f32
    resident = (2 * (2 * gate_chunk + 2 * out_chunk)   # double-buffered streams
                + 2 * (2 * H * G * 2)                  # both W_hh (buffered)
                + 4 * B * H * 4)                       # h/c scratch
    vmem_limit = int(min(max(resident + (8 << 20), 32 << 20),
                         vmem_cap - (2 << 20)))

    out_f, out_b = pl.pallas_call(
        _make_birecurrence_kernel(Tc, B, H, unroll),
        out_shape=(jax.ShapeDtypeStruct((T, B, H), jnp.float32),
                   jax.ShapeDtypeStruct((T, B, H), jnp.float32)),
        grid=(nT,),
        in_specs=[
            pl.BlockSpec((Tc, B, G), lambda t: (t, 0, 0)),
            pl.BlockSpec((Tc, B, G), lambda t: (nT - 1 - t, 0, 0)),
            pl.BlockSpec((H, G), lambda t: (0, 0)),
            pl.BlockSpec((H, G), lambda t: (0, 0)),
        ],
        out_specs=[
            pl.BlockSpec((Tc, B, H), lambda t: (t, 0, 0)),
            pl.BlockSpec((Tc, B, H), lambda t: (nT - 1 - t, 0, 0)),
        ],
        scratch_shapes=[pltpu.VMEM((B, H), jnp.float32),
                        pltpu.VMEM((B, H), jnp.float32),
                        pltpu.VMEM((B, H), jnp.float32),
                        pltpu.VMEM((B, H), jnp.float32)],
        compiler_params=pltpu.CompilerParams(
            dimension_semantics=("arbitrary",),
            vmem_limit_bytes=vmem_limit),
    )(gates_f, gates_b, whf, whb)

    # PyTorch bidirectional LSTM feature order: [forward ; backward].
    return jnp.concatenate([out_f, out_b], axis=2)


# ---------------------------------------------------------------------------
# Parameters (PyTorch nn.LSTM default init, per-direction packing)
# ---------------------------------------------------------------------------
def init_stacked_brnn_params(key, input_size, hidden_size, num_layers):
    """Per layer: (wih_f (in,4H), wih_b (in,4H), whh_f (H,4H), whh_b (H,4H),
    b_f (1,4H), b_b (1,4H)), all f32, PyTorch gate order [i,f,g,o], with
    b = b_ih + b_hh folded."""
    params = []
    H = hidden_size
    bound = 1.0 / math.sqrt(H)
    for layer in range(num_layers):
        in_sz = input_size if layer == 0 else 2 * hidden_size
        per_dir = []
        for _direction in range(2):
            key, k1, k2, k3, k4 = jax.random.split(key, 5)
            w_ih = jax.random.uniform(k1, (4 * H, in_sz), jnp.float32, -bound, bound)
            w_hh = jax.random.uniform(k2, (4 * H, H), jnp.float32, -bound, bound)
            b_ih = jax.random.uniform(k3, (4 * H,), jnp.float32, -bound, bound)
            b_hh = jax.random.uniform(k4, (4 * H,), jnp.float32, -bound, bound)
            per_dir.append((w_ih.T, w_hh.T, (b_ih + b_hh).reshape(1, -1)))
        (wih_f, whh_f, b_f), (wih_b, whh_b, b_b) = per_dir
        params.append((wih_f, wih_b, whh_f, whh_b, b_f, b_b))
    return params


# ---------------------------------------------------------------------------
# StackedBRNN forward (unpadded path)
# ---------------------------------------------------------------------------
@functools.partial(jax.jit, static_argnames=("concat_layers",))
def _stacked_brnn_unpadded(x, params, concat_layers=False):
    h = jnp.transpose(x, (1, 0, 2))  # (B,T,D) -> time-major (T,B,D)
    outputs = []
    for layer_params in params:
        h = bilstm_layer(h, layer_params)
        outputs.append(h)
    out = jnp.concatenate(outputs, axis=2) if concat_layers else outputs[-1]
    return jnp.transpose(out, (1, 0, 2))  # back to (B, T, ·)


def stacked_brnn_forward(x, x_mask, params, concat_layers=False):
    """StackedBRNN.forward, unpadded path only (x_mask must be all zeros,
    matching the PyTorch dispatch when x_mask.sum() == 0)."""
    try:
        mask_sum = int(jax.device_get(jnp.sum(x_mask)))
    except Exception:  # abstract/traced mask: caller must guarantee no padding
        mask_sum = 0
    if mask_sum != 0:
        # TODO(synk): _forward_padded (pack_padded_sequence) not implemented.
        raise NotImplementedError(
            "StackedBRNN padded path not implemented; x_mask must be all zeros.")
    return _stacked_brnn_unpadded(x, params, concat_layers=concat_layers)


if __name__ == "__main__":
    B, T, D, H, NUM_LAYERS = 2, 8, 16, 32, 2

    key = jax.random.PRNGKey(0)
    kx, kp = jax.random.split(key)
    x = jax.random.normal(kx, (B, T, D), dtype=jnp.float32)
    x_mask = jnp.zeros((B, T), dtype=jnp.int32)  # no padding -> unpadded path

    params = init_stacked_brnn_params(kp, D, H, NUM_LAYERS)

    out = stacked_brnn_forward(x, x_mask, params, concat_layers=False)
    out = jax.block_until_ready(out)
    assert out.shape == (B, T, 2 * H), out.shape
    assert bool(jnp.all(jnp.isfinite(out)))
    print("KERNEL_OK")
</pallas_src>

<mosaic_0001>
module attributes {stable_mosaic.version = 11 : i64} {
  func.func @_proj_kernel(%arg0: i32, %arg1: i32, %arg2: memref<16x16xf32, #tpu.memory_space<vmem>>, %arg3: memref<16x128xbf16, #tpu.memory_space<vmem>>, %arg4: memref<16x128xbf16, #tpu.memory_space<vmem>>, %arg5: memref<1x128xf32, #tpu.memory_space<vmem>>, %arg6: memref<1x128xf32, #tpu.memory_space<vmem>>, %arg7: memref<16x128xbf16, #tpu.memory_space<vmem>>, %arg8: memref<16x128xbf16, #tpu.memory_space<vmem>>, %arg9: memref<16x128xf32, #tpu.memory_space<vmem>>, %arg10: memref<16x128xf32, #tpu.memory_space<vmem>>) attributes {dimension_semantics = [#tpu.dimension_semantics<parallel>, #tpu.dimension_semantics<arbitrary>], iteration_bounds = array<i64: 1, 1>, scalar_prefetch = 0 : i64, scratch_operands = 2 : i64, tpu.core_type = #tpu.core_type<tc>, window_params = [{transform_indices = @transform_0, window_bounds = array<i64: 16, 16>}, {transform_indices = @transform_1, window_bounds = array<i64: 16, 128>}, {transform_indices = @transform_2, window_bounds = array<i64: 16, 128>}, {pipeline_mode = #tpu.pipeline_mode<synchronous>, transform_indices = @transform_3, window_bounds = array<i64: 1, 128>}, {pipeline_mode = #tpu.pipeline_mode<synchronous>, transform_indices = @transform_4, window_bounds = array<i64: 1, 128>}, {transform_indices = @transform_5, window_bounds = array<i64: 16, 128>}, {transform_indices = @transform_6, window_bounds = array<i64: 16, 128>}]} {
    %c0_i32 = arith.constant 0 : i32
    %0 = arith.cmpi eq, %arg1, %c0_i32 : i32
    %1 = arith.extui %0 : i1 to i32
    %c0_i32_0 = arith.constant 0 : i32
    %2 = arith.cmpi ne, %1, %c0_i32_0 : i32
    scf.if %2 {
      %cst_17 = arith.constant 0.000000e+00 : f32
      %18 = vector.broadcast %cst_17 : f32 to vector<16x128xf32>
      %c0_18 = arith.constant 0 : index
      %c0_19 = arith.constant 0 : index
      %19 = vector.load %arg9[%c0_18, %c0_19] : memref<16x128xf32, #tpu.memory_space<vmem>>, vector<16x128xf32>
      tpu.vector_store %arg9[%c0_18, %c0_19], %18 {strides = array<i32>} : memref<16x128xf32, #tpu.memory_space<vmem>>, vector<16x128xf32>,
      %cst_20 = arith.constant 0.000000e+00 : f32
      %20 = vector.broadcast %cst_20 : f32 to vector<16x128xf32>
      %c0_21 = arith.constant 0 : index
      %c0_22 = arith.constant 0 : index
      %21 = vector.load %arg10[%c0_21, %c0_22] : memref<16x128xf32, #tpu.memory_space<vmem>>, vector<16x128xf32>
      tpu.vector_store %arg10[%c0_21, %c0_22], %20 {strides = array<i32>} : memref<16x128xf32, #tpu.memory_space<vmem>>, vector<16x128xf32>,
    } else {
    }
    %c0 = arith.constant 0 : index
    %c0_1 = arith.constant 0 : index
    %3 = vector.load %arg2[%c0, %c0_1] : memref<16x16xf32, #tpu.memory_space<vmem>>, vector<16x16xf32>
    %4 = arith.truncf %3 : vector<16x16xf32> to vector<16x16xbf16>
    %c0_2 = arith.constant 0 : index
    %c0_3 = arith.constant 0 : index
    %5 = vector.load %arg9[%c0_2, %c0_3] : memref<16x128xf32, #tpu.memory_space<vmem>>, vector<16x128xf32>
    %c0_4 = arith.constant 0 : index
    %c0_5 = arith.constant 0 : index
    %6 = vector.load %arg3[%c0_4, %c0_5] : memref<16x128xbf16, #tpu.memory_space<vmem>>, vector<16x128xbf16>
    %cst = arith.constant dense<0.000000e+00> : vector<16x128xf32>
    %7 = tpu.matmul %4, %6, %cst {dimension_numbers = #tpu.dot_dimension_numbers<[1], [0], [0], [1], [0, 0, 1, 1], [], []>} : vector<16x16xbf16>, vector<16x128xbf16>, vector<16x128xf32> -> vector<16x128xf32>
    %8 = arith.addf %5, %7 : vector<16x128xf32>
    %c0_6 = arith.constant 0 : index
    %c0_7 = arith.constant 0 : index
    %9 = vector.load %arg9[%c0_6, %c0_7] : memref<16x128xf32, #tpu.memory_space<vmem>>, vector<16x128xf32>
    tpu.vector_store %arg9[%c0_6, %c0_7], %8 {strides = array<i32>} : memref<16x128xf32, #tpu.memory_space<vmem>>, vector<16x128xf32>,
    %c0_8 = arith.constant 0 : index
    %c0_9 = arith.constant 0 : index
    %10 = vector.load %arg10[%c0_8, %c0_9] : memref<16x128xf32, #tpu.memory_space<vmem>>, vector<16x128xf32>
    %c0_10 = arith.constant 0 : index
    %c0_11 = arith.constant 0 : index
    %11 = vector.load %arg4[%c0_10, %c0_11] : memref<16x128xbf16, #tpu.memory_space<vmem>>, vector<16x128xbf16>
    %cst_12 = arith.constant dense<0.000000e+00> : vector<16x128xf32>
    %12 = tpu.matmul %4, %11, %cst_12 {dimension_numbers = #tpu.dot_dimension_numbers<[1], [0], [0], [1], [0, 0, 1, 1], [], []>} : vector<16x16xbf16>, vector<16x128xbf16>, vector<16x128xf32> -> vector<16x128xf32>
    %13 = arith.addf %10, %12 : vector<16x128xf32>
    %c0_13 = arith.constant 0 : index
    %c0_14 = arith.constant 0 : index
    %14 = vector.load %arg10[%c0_13, %c0_14] : memref<16x128xf32, #tpu.memory_space<vmem>>, vector<16x128xf32>
    tpu.vector_store %arg10[%c0_13, %c0_14], %13 {strides = array<i32>} : memref<16x128xf32, #tpu.memory_space<vmem>>, vector<16x128xf32>,
    %c0_i32_15 = arith.constant 0 : i32
    %15 = arith.cmpi eq, %arg1, %c0_i32_15 : i32
    %16 = arith.extui %15 : i1 to i32
    %c0_i32_16 = arith.constant 0 : i32
    %17 = arith.cmpi ne, %16, %c0_i32_16 : i32
    scf.if %17 {
      %c0_17 = arith.constant 0 : index
      %c0_18 = arith.constant 0 : index
      %18 = vector.load %arg9[%c0_17, %c0_18] : memref<16x128xf32, #tpu.memory_space<vmem>>, vector<16x128xf32>
      %c0_19 = arith.constant 0 : index
      %c0_20 = arith.constant 0 : index
      %19 = vector.load %arg5[%c0_19, %c0_20] : memref<1x128xf32, #tpu.memory_space<vmem>>, vector<1x128xf32>
      %20 = vector.broadcast %19 : vector<1x128xf32> to vector<16x128xf32>
      %21 = arith.addf %18, %20 : vector<16x128xf32>
      %22 = arith.truncf %21 : vector<16x128xf32> to vector<16x128xbf16>
      %c0_21 = arith.constant 0 : index
      %c0_22 = arith.constant 0 : index
      %23 = vector.load %arg7[%c0_21, %c0_22] : memref<16x128xbf16, #tpu.memory_space<vmem>>, vector<16x128xbf16>
      tpu.vector_store %arg7[%c0_21, %c0_22], %22 {strides = array<i32>} : memref<16x128xbf16, #tpu.memory_space<vmem>>, vector<16x128xbf16>,
      %c0_23 = arith.constant 0 : index
      %c0_24 = arith.constant 0 : index
      %24 = vector.load %arg10[%c0_23, %c0_24] : memref<16x128xf32, #tpu.memory_space<vmem>>, vector<16x128xf32>
      %c0_25 = arith.constant 0 : index
      %c0_26 = arith.constant 0 : index
      %25 = vector.load %arg6[%c0_25, %c0_26] : memref<1x128xf32, #tpu.memory_space<vmem>>, vector<1x128xf32>
      %26 = vector.broadcast %25 : vector<1x128xf32> to vector<16x128xf32>
      %27 = arith.addf %24, %26 : vector<16x128xf32>
      %28 = arith.truncf %27 : vector<16x128xf32> to vector<16x128xbf16>
      %c0_27 = arith.constant 0 : index
      %c0_28 = arith.constant 0 : index
      %29 = vector.load %arg8[%c0_27, %c0_28] : memref<16x128xbf16, #tpu.memory_space<vmem>>, vector<16x128xbf16>
      tpu.vector_store %arg8[%c0_27, %c0_28], %28 {strides = array<i32>} : memref<16x128xbf16, #tpu.memory_space<vmem>>, vector<16x128xbf16>,
    } else {
    }
    return
  }
  func.func @transform_0(%arg0: i32, %arg1: i32) -> (i32, i32) {
    %c0_i32 = arith.constant 0 : i32
    return %arg0, %arg1 : i32, i32
  }
  func.func @transform_1(%arg0: i32, %arg1: i32) -> (i32, i32) {
    %c0_i32 = arith.constant 0 : i32
    %c0_i32_0 = arith.constant 0 : i32
    return %arg1, %c0_i32 : i32, i32
  }
  func.func @transform_2(%arg0: i32, %arg1: i32) -> (i32, i32) {
    %c0_i32 = arith.constant 0 : i32
    %c0_i32_0 = arith.constant 0 : i32
    return %arg1, %c0_i32 : i32, i32
  }
  func.func @transform_3(%arg0: i32, %arg1: i32) -> (i32, i32) {
    %c0_i32 = arith.constant 0 : i32
    %c0_i32_0 = arith.constant 0 : i32
    %c0_i32_1 = arith.constant 0 : i32
    return %c0_i32, %c0_i32_0 : i32, i32
  }
  func.func @transform_4(%arg0: i32, %arg1: i32) -> (i32, i32) {
    %c0_i32 = arith.constant 0 : i32
    %c0_i32_0 = arith.constant 0 : i32
    %c0_i32_1 = arith.constant 0 : i32
    return %c0_i32, %c0_i32_0 : i32, i32
  }
  func.func @transform_5(%arg0: i32, %arg1: i32) -> (i32, i32) {
    %c0_i32 = arith.constant 0 : i32
    %c0_i32_0 = arith.constant 0 : i32
    return %arg0, %c0_i32 : i32, i32
  }
  func.func @transform_6(%arg0: i32, %arg1: i32) -> (i32, i32) {
    %c0_i32 = arith.constant 0 : i32
    %c0_i32_0 = arith.constant 0 : i32
    return %arg0, %c0_i32 : i32, i32
  }
}

module attributes {stable_mosaic.version = 11 : i64} {
  func.func @_proj_kernel(%arg0: i32, %arg1: i32, %arg2: memref<16x64xf32, #tpu.memory_space<vmem>>, %arg3: memref<64x128xbf16, #tpu.memory_space<vmem>>, %arg4: memref<64x128xbf16, #tpu.memory_space<vmem>>, %arg5: memref<1x128xf32, #tpu.memory_space<vmem>>, %arg6: memref<1x128xf32, #tpu.memory_space<vmem>>, %arg7: memref<16x128xbf16, #tpu.memory_space<vmem>>, %arg8: memref<16x128xbf16, #tpu.memory_space<vmem>>, %arg9: memref<16x128xf32, #tpu.memory_space<vmem>>, %arg10: memref<16x128xf32, #tpu.memory_space<vmem>>) attributes {dimension_semantics = [#tpu.dimension_semantics<parallel>, #tpu.dimension_semantics<arbitrary>], iteration_bounds = array<i64: 1, 1>, scalar_prefetch = 0 : i64, scratch_operands = 2 : i64, tpu.core_type = #tpu.core_type<tc>, window_params = [{transform_indices = @transform_0, window_bounds = array<i64: 16, 64>}, {transform_indices = @transform_1, window_bounds = array<i64: 64, 128>}, {transform_indices = @transform_2, window_bounds = array<i64: 64, 128>}, {pipeline_mode = #tpu.pipeline_mode<synchronous>, transform_indices = @transform_3, window_bounds = array<i64: 1, 128>}, {pipeline_mode = #tpu.pipeline_mode<synchronous>, transform_indices = @transform_4, window_bounds = array<i64: 1, 128>}, {transform_indices = @transform_5, window_bounds = array<i64: 16, 128>}, {transform_indices = @transform_6, window_bounds = array<i64: 16, 128>}]} {
    %c0_i32 = arith.constant 0 : i32
    %0 = arith.cmpi eq, %arg1, %c0_i32 : i32
    %1 = arith.extui %0 : i1 to i32
    %c0_i32_0 = arith.constant 0 : i32
    %2 = arith.cmpi ne, %1, %c0_i32_0 : i32
    scf.if %2 {
      %cst_17 = arith.constant 0.000000e+00 : f32
      %18 = vector.broadcast %cst_17 : f32 to vector<16x128xf32>
      %c0_18 = arith.constant 0 : index
      %c0_19 = arith.constant 0 : index
      %19 = vector.load %arg9[%c0_18, %c0_19] : memref<16x128xf32, #tpu.memory_space<vmem>>, vector<16x128xf32>
      tpu.vector_store %arg9[%c0_18, %c0_19], %18 {strides = array<i32>} : memref<16x128xf32, #tpu.memory_space<vmem>>, vector<16x128xf32>,
      %cst_20 = arith.constant 0.000000e+00 : f32
      %20 = vector.broadcast %cst_20 : f32 to vector<16x128xf32>
      %c0_21 = arith.constant 0 : index
      %c0_22 = arith.constant 0 : index
      %21 = vector.load %arg10[%c0_21, %c0_22] : memref<16x128xf32, #tpu.memory_space<vmem>>, vector<16x128xf32>
      tpu.vector_store %arg10[%c0_21, %c0_22], %20 {strides = array<i32>} : memref<16x128xf32, #tpu.memory_space<vmem>>, vector<16x128xf32>,
    } else {
    }
    %c0 = arith.constant 0 : index
    %c0_1 = arith.constant 0 : index
    %3 = vector.load %arg2[%c0, %c0_1] : memref<16x64xf32, #tpu.memory_space<vmem>>, vector<16x64xf32>
    %4 = arith.truncf %3 : vector<16x64xf32> to vector<16x64xbf16>
    %c0_2 = arith.constant 0 : index
    %c0_3 = arith.constant 0 : index
    %5 = vector.load %arg9[%c0_2, %c0_3] : memref<16x128xf32, #tpu.memory_space<vmem>>, vector<16x128xf32>
    %c0_4 = arith.constant 0 : index
    %c0_5 = arith.constant 0 : index
    %6 = vector.load %arg3[%c0_4, %c0_5] : memref<64x128xbf16, #tpu.memory_space<vmem>>, vector<64x128xbf16>
    %cst = arith.constant dense<0.000000e+00> : vector<16x128xf32>
    %7 = tpu.matmul %4, %6, %cst {dimension_numbers = #tpu.dot_dimension_numbers<[1], [0], [0], [1], [0, 0, 1, 1], [], []>} : vector<16x64xbf16>, vector<64x128xbf16>, vector<16x128xf32> -> vector<16x128xf32>
    %8 = arith.addf %5, %7 : vector<16x128xf32>
    %c0_6 = arith.constant 0 : index
    %c0_7 = arith.constant 0 : index
    %9 = vector.load %arg9[%c0_6, %c0_7] : memref<16x128xf32, #tpu.memory_space<vmem>>, vector<16x128xf32>
    tpu.vector_store %arg9[%c0_6, %c0_7], %8 {strides = array<i32>} : memref<16x128xf32, #tpu.memory_space<vmem>>, vector<16x128xf32>,
    %c0_8 = arith.constant 0 : index
    %c0_9 = arith.constant 0 : index
    %10 = vector.load %arg10[%c0_8, %c0_9] : memref<16x128xf32, #tpu.memory_space<vmem>>, vector<16x128xf32>
    %c0_10 = arith.constant 0 : index
    %c0_11 = arith.constant 0 : index
    %11 = vector.load %arg4[%c0_10, %c0_11] : memref<64x128xbf16, #tpu.memory_space<vmem>>, vector<64x128xbf16>
    %cst_12 = arith.constant dense<0.000000e+00> : vector<16x128xf32>
    %12 = tpu.matmul %4, %11, %cst_12 {dimension_numbers = #tpu.dot_dimension_numbers<[1], [0], [0], [1], [0, 0, 1, 1], [], []>} : vector<16x64xbf16>, vector<64x128xbf16>, vector<16x128xf32> -> vector<16x128xf32>
    %13 = arith.addf %10, %12 : vector<16x128xf32>
    %c0_13 = arith.constant 0 : index
    %c0_14 = arith.constant 0 : index
    %14 = vector.load %arg10[%c0_13, %c0_14] : memref<16x128xf32, #tpu.memory_space<vmem>>, vector<16x128xf32>
    tpu.vector_store %arg10[%c0_13, %c0_14], %13 {strides = array<i32>} : memref<16x128xf32, #tpu.memory_space<vmem>>, vector<16x128xf32>,
    %c0_i32_15 = arith.constant 0 : i32
    %15 = arith.cmpi eq, %arg1, %c0_i32_15 : i32
    %16 = arith.extui %15 : i1 to i32
    %c0_i32_16 = arith.constant 0 : i32
    %17 = arith.cmpi ne, %16, %c0_i32_16 : i32
    scf.if %17 {
      %c0_17 = arith.constant 0 : index
      %c0_18 = arith.constant 0 : index
      %18 = vector.load %arg9[%c0_17, %c0_18] : memref<16x128xf32, #tpu.memory_space<vmem>>, vector<16x128xf32>
      %c0_19 = arith.constant 0 : index
      %c0_20 = arith.constant 0 : index
      %19 = vector.load %arg5[%c0_19, %c0_20] : memref<1x128xf32, #tpu.memory_space<vmem>>, vector<1x128xf32>
      %20 = vector.broadcast %19 : vector<1x128xf32> to vector<16x128xf32>
      %21 = arith.addf %18, %20 : vector<16x128xf32>
      %22 = arith.truncf %21 : vector<16x128xf32> to vector<16x128xbf16>
      %c0_21 = arith.constant 0 : index
      %c0_22 = arith.constant 0 : index
      %23 = vector.load %arg7[%c0_21, %c0_22] : memref<16x128xbf16, #tpu.memory_space<vmem>>, vector<16x128xbf16>
      tpu.vector_store %arg7[%c0_21, %c0_22], %22 {strides = array<i32>} : memref<16x128xbf16, #tpu.memory_space<vmem>>, vector<16x128xbf16>,
      %c0_23 = arith.constant 0 : index
      %c0_24 = arith.constant 0 : index
      %24 = vector.load %arg10[%c0_23, %c0_24] : memref<16x128xf32, #tpu.memory_space<vmem>>, vector<16x128xf32>
      %c0_25 = arith.constant 0 : index
      %c0_26 = arith.constant 0 : index
      %25 = vector.load %arg6[%c0_25, %c0_26] : memref<1x128xf32, #tpu.memory_space<vmem>>, vector<1x128xf32>
      %26 = vector.broadcast %25 : vector<1x128xf32> to vector<16x128xf32>
      %27 = arith.addf %24, %26 : vector<16x128xf32>
      %28 = arith.truncf %27 : vector<16x128xf32> to vector<16x128xbf16>
      %c0_27 = arith.constant 0 : index
      %c0_28 = arith.constant 0 : index
      %29 = vector.load %arg8[%c0_27, %c0_28] : memref<16x128xbf16, #tpu.memory_space<vmem>>, vector<16x128xbf16>
      tpu.vector_store %arg8[%c0_27, %c0_28], %28 {strides = array<i32>} : memref<16x128xbf16, #tpu.memory_space<vmem>>, vector<16x128xbf16>,
    } else {
    }
    return
  }
  func.func @transform_0(%arg0: i32, %arg1: i32) -> (i32, i32) {
    %c0_i32 = arith.constant 0 : i32
    return %arg0, %arg1 : i32, i32
  }
  func.func @transform_1(%arg0: i32, %arg1: i32) -> (i32, i32) {
    %c0_i32 = arith.constant 0 : i32
    %c0_i32_0 = arith.constant 0 : i32
    return %arg1, %c0_i32 : i32, i32
  }
  func.func @transform_2(%arg0: i32, %arg1: i32) -> (i32, i32) {
    %c0_i32 = arith.constant 0 : i32
    %c0_i32_0 = arith.constant 0 : i32
    return %arg1, %c0_i32 : i32, i32
  }
  func.func @transform_3(%arg0: i32, %arg1: i32) -> (i32, i32) {
    %c0_i32 = arith.constant 0 : i32
    %c0_i32_0 = arith.constant 0 : i32
    %c0_i32_1 = arith.constant 0 : i32
    return %c0_i32, %c0_i32_0 : i32, i32
  }
  func.func @transform_4(%arg0: i32, %arg1: i32) -> (i32, i32) {
    %c0_i32 = arith.constant 0 : i32
    %c0_i32_0 = arith.constant 0 : i32
    %c0_i32_1 = arith.constant 0 : i32
    return %c0_i32, %c0_i32_0 : i32, i32
  }
  func.func @transform_5(%arg0: i32, %arg1: i32) -> (i32, i32) {
    %c0_i32 = arith.constant 0 : i32
    %c0_i32_0 = arith.constant 0 : i32
    return %arg0, %c0_i32 : i32, i32
  }
  func.func @transform_6(%arg0: i32, %arg1: i32) -> (i32, i32) {
    %c0_i32 = arith.constant 0 : i32
    %c0_i32_0 = arith.constant 0 : i32
    return %arg0, %c0_i32 : i32, i32
  }
}

module attributes {stable_mosaic.version = 11 : i64} {
  func.func @kernel(%arg0: i32, %arg1: memref<8x2x128xbf16, #tpu.memory_space<vmem>>, %arg2: memref<8x2x128xbf16, #tpu.memory_space<vmem>>, %arg3: memref<32x128xbf16, #tpu.memory_space<vmem>>, %arg4: memref<32x128xbf16, #tpu.memory_space<vmem>>, %arg5: memref<8x2x32xf32, #tpu.memory_space<vmem>>, %arg6: memref<8x2x32xf32, #tpu.memory_space<vmem>>, %arg7: memref<2x32xf32, #tpu.memory_space<vmem>>, %arg8: memref<2x32xf32, #tpu.memory_space<vmem>>, %arg9: memref<2x32xf32, #tpu.memory_space<vmem>>, %arg10: memref<2x32xf32, #tpu.memory_space<vmem>>) attributes {dimension_semantics = [#tpu.dimension_semantics<arbitrary>], iteration_bounds = array<i64: 1>, scalar_prefetch = 0 : i64, scratch_operands = 4 : i64, tpu.core_type = #tpu.core_type<tc>, window_params = [{transform_indices = @transform_0, window_bounds = array<i64: 8, 2, 128>}, {transform_indices = @transform_1, window_bounds = array<i64: 8, 2, 128>}, {pipeline_mode = #tpu.pipeline_mode<synchronous>, transform_indices = @transform_2, window_bounds = array<i64: 32, 128>}, {pipeline_mode = #tpu.pipeline_mode<synchronous>, transform_indices = @transform_3, window_bounds = array<i64: 32, 128>}, {transform_indices = @transform_4, window_bounds = array<i64: 8, 2, 32>}, {transform_indices = @transform_5, window_bounds = array<i64: 8, 2, 32>}]} {
    %c0_i32 = arith.constant 0 : i32
    %0 = arith.cmpi eq, %arg0, %c0_i32 : i32
    %1 = arith.extui %0 : i1 to i32
    %c0_i32_0 = arith.constant 0 : i32
    %2 = arith.cmpi ne, %1, %c0_i32_0 : i32
    scf.if %2 {
      %cst_392 = arith.constant 0.000000e+00 : f32
      %763 = vector.broadcast %cst_392 : f32 to vector<2x32xf32>
      %c0_393 = arith.constant 0 : index
      %c0_394 = arith.constant 0 : index
      %764 = vector.load %arg7[%c0_393, %c0_394] : memref<2x32xf32, #tpu.memory_space<vmem>>, vector<2x32xf32>
      tpu.vector_store %arg7[%c0_393, %c0_394], %763 {strides = array<i32>} : memref<2x32xf32, #tpu.memory_space<vmem>>, vector<2x32xf32>,
      %cst_395 = arith.constant 0.000000e+00 : f32
      %765 = vector.broadcast %cst_395 : f32 to vector<2x32xf32>
      %c0_396 = arith.constant 0 : index
      %c0_397 = arith.constant 0 : index
      %766 = vector.load %arg8[%c0_396, %c0_397] : memref<2x32xf32, #tpu.memory_space<vmem>>, vector<2x32xf32>
      tpu.vector_store %arg8[%c0_396, %c0_397], %765 {strides = array<i32>} : memref<2x32xf32, #tpu.memory_space<vmem>>, vector<2x32xf32>,
      %cst_398 = arith.constant 0.000000e+00 : f32
      %767 = vector.broadcast %cst_398 : f32 to vector<2x32xf32>
      %c0_399 = arith.constant 0 : index
      %c0_400 = arith.constant 0 : index
      %768 = vector.load %arg9[%c0_399, %c0_400] : memref<2x32xf32, #tpu.memory_space<vmem>>, vector<2x32xf32>
      tpu.vector_store %arg9[%c0_399, %c0_400], %767 {strides = array<i32>} : memref<2x32xf32, #tpu.memory_space<vmem>>, vector<2x32xf32>,
      %cst_401 = arith.constant 0.000000e+00 : f32
      %769 = vector.broadcast %cst_401 : f32 to vector<2x32xf32>
      %c0_402 = arith.constant 0 : index
      %c0_403 = arith.constant 0 : index
      %770 = vector.load %arg10[%c0_402, %c0_403] : memref<2x32xf32, #tpu.memory_space<vmem>>, vector<2x32xf32>
      tpu.vector_store %arg10[%c0_402, %c0_403], %769 {strides = array<i32>} : memref<2x32xf32, #tpu.memory_space<vmem>>, vector<2x32xf32>,
    } else {
    }
    %c0_i32_1 = arith.constant 0 : i32
    %c7_i32 = arith.constant 7 : i32
    %3 = arith.subi %c7_i32, %c0_i32_1 : i32
    %c0 = arith.constant 0 : index
    %c0_2 = arith.constant 0 : index
    %4 = vector.load %arg7[%c0, %c0_2] : memref<2x32xf32, #tpu.memory_space<vmem>>, vector<2x32xf32>
    %5 = arith.truncf %4 : vector<2x32xf32> to vector<2x32xbf16>
    %c0_3 = arith.constant 0 : index
    %c0_4 = arith.constant 0 : index
    %6 = vector.load %arg3[%c0_3, %c0_4] : memref<32x128xbf16, #tpu.memory_space<vmem>>, vector<32x128xbf16>
    %cst = arith.constant dense<0.000000e+00> : vector<2x128xf32>
    %7 = tpu.matmul %5, %6, %cst {dimension_numbers = #tpu.dot_dimension_numbers<[1], [0], [0], [1], [0, 0, 1, 1], [], []>} : vector<2x32xbf16>, vector<32x128xbf16>, vector<2x128xf32> -> vector<2x128xf32>
    %c0_5 = arith.constant 0 : index
    %c0_6 = arith.constant 0 : index
    %8 = vector.load %arg9[%c0_5, %c0_6] : memref<2x32xf32, #tpu.memory_space<vmem>>, vector<2x32xf32>
    %9 = arith.truncf %8 : vector<2x32xf32> to vector<2x32xbf16>
    %c0_7 = arith.constant 0 : index
    %c0_8 = arith.constant 0 : index
    %10 = vector.load %arg4[%c0_7, %c0_8] : memref<32x128xbf16, #tpu.memory_space<vmem>>, vector<32x128xbf16>
    %cst_9 = arith.constant dense<0.000000e+00> : vector<2x128xf32>
    %11 = tpu.matmul %9, %10, %cst_9 {dimension_numbers = #tpu.dot_dimension_numbers<[1], [0], [0], [1], [0, 0, 1, 1], [], []>} : vector<2x32xbf16>, vector<32x128xbf16>, vector<2x128xf32> -> vector<2x128xf32>
    %12 = arith.index_cast %c0_i32_1 : i32 to index
    %c0_10 = arith.constant 0 : index
    %c0_11 = arith.constant 0 : index
    %13 = vector.load %arg1[%12, %c0_10, %c0_11] : memref<8x2x128xbf16, #tpu.memory_space<vmem>>, vector<1x2x128xbf16>
    %14 = vector.shape_cast %13 : vector<1x2x128xbf16> to vector<2x128xbf16>
    %15 = arith.extf %14 : vector<2x128xbf16> to vector<2x128xf32>
    %16 = arith.addf %15, %7 : vector<2x128xf32>
    %17 = arith.index_cast %3 : i32 to index
    %c0_12 = arith.constant 0 : index
    %c0_13 = arith.constant 0 : index
    %18 = vector.load %arg2[%17, %c0_12, %c0_13] : memref<8x2x128xbf16, #tpu.memory_space<vmem>>, vector<1x2x128xbf16>
    %19 = vector.shape_cast %18 : vector<1x2x128xbf16> to vector<2x128xbf16>
    %20 = arith.extf %19 : vector<2x128xbf16> to vector<2x128xf32>
    %21 = arith.addf %20, %11 : vector<2x128xf32>
    %c0_14 = arith.constant 0 : index
    %c0_15 = arith.constant 0 : index
    %22 = vector.load %arg8[%c0_14, %c0_15] : memref<2x32xf32, #tpu.memory_space<vmem>>, vector<2x32xf32>
    %23 = vector.extract_strided_slice %16 {offsets = [0, 0], sizes = [2, 32], strides = [1, 1]} : vector<2x128xf32> to vector<2x32xf32>
    %cst_16 = arith.constant 5.000000e-01 : f32
    %24 = vector.broadcast %cst_16 : f32 to vector<2x32xf32>
    %25 = arith.mulf %24, %23 : vector<2x32xf32>
    %26 = math.tanh %25 : vector<2x32xf32>
    %cst_17 = arith.constant 5.000000e-01 : f32
    %27 = vector.broadcast %cst_17 : f32 to vector<2x32xf32>
    %28 = arith.mulf %27, %26 : vector<2x32xf32>
    %cst_18 = arith.constant 5.000000e-01 : f32
    %29 = vector.broadcast %cst_18 : f32 to vector<2x32xf32>
    %30 = arith.addf %28, %29 : vector<2x32xf32>
    %31 = vector.extract_strided_slice %16 {offsets = [0, 32], sizes = [2, 32], strides = [1, 1]} : vector<2x128xf32> to vector<2x32xf32>
    %cst_19 = arith.constant 5.000000e-01 : f32
    %32 = vector.broadcast %cst_19 : f32 to vector<2x32xf32>
    %33 = arith.mulf %32, %31 : vector<2x32xf32>
    %34 = math.tanh %33 : vector<2x32xf32>
    %cst_20 = arith.constant 5.000000e-01 : f32
    %35 = vector.broadcast %cst_20 : f32 to vector<2x32xf32>
    %36 = arith.mulf %35, %34 : vector<2x32xf32>
    %cst_21 = arith.constant 5.000000e-01 : f32
    %37 = vector.broadcast %cst_21 : f32 to vector<2x32xf32>
    %38 = arith.addf %36, %37 : vector<2x32xf32>
    %39 = vector.extract_strided_slice %16 {offsets = [0, 64], sizes = [2, 32], strides = [1, 1]} : vector<2x128xf32> to vector<2x32xf32>
    %40 = math.tanh %39 : vector<2x32xf32>
    %41 = vector.extract_strided_slice %16 {offsets = [0, 96], sizes = [2, 32], strides = [1, 1]} : vector<2x128xf32> to vector<2x32xf32>
    %cst_22 = arith.constant 5.000000e-01 : f32
    %42 = vector.broadcast %cst_22 : f32 to vector<2x32xf32>
    %43 = arith.mulf %42, %41 : vector<2x32xf32>
    %44 = math.tanh %43 : vector<2x32xf32>
    %cst_23 = arith.constant 5.000000e-01 : f32
    %45 = vector.broadcast %cst_23 : f32 to vector<2x32xf32>
    %46 = arith.mulf %45, %44 : vector<2x32xf32>
    %cst_24 = arith.constant 5.000000e-01 : f32
    %47 = vector.broadcast %cst_24 : f32 to vector<2x32xf32>
    %48 = arith.addf %46, %47 : vector<2x32xf32>
    %49 = arith.mulf %38, %22 : vector<2x32xf32>
    %50 = arith.mulf %30, %40 : vector<2x32xf32>
    %51 = arith.addf %49, %50 : vector<2x32xf32>
    %52 = math.tanh %51 : vector<2x32xf32>
    %53 = arith.mulf %48, %52 : vector<2x32xf32>
    %c0_25 = arith.constant 0 : index
    %c0_26 = arith.constant 0 : index
    %54 = vector.load %arg10[%c0_25, %c0_26] : memref<2x32xf32, #tpu.memory_space<vmem>>, vector<2x32xf32>
    %55 = vector.extract_strided_slice %21 {offsets = [0, 0], sizes = [2, 32], strides = [1, 1]} : vector<2x128xf32> to vector<2x32xf32>
    %cst_27 = arith.constant 5.000000e-01 : f32
    %56 = vector.broadcast %cst_27 : f32 to vector<2x32xf32>
    %57 = arith.mulf %56, %55 : vector<2x32xf32>
    %58 = math.tanh %57 : vector<2x32xf32>
    %cst_28 = arith.constant 5.000000e-01 : f32
    %59 = vector.broadcast %cst_28 : f32 to vector<2x32xf32>
    %60 = arith.mulf %59, %58 : vector<2x32xf32>
    %cst_29 = arith.constant 5.000000e-01 : f32
    %61 = vector.broadcast %cst_29 : f32 to vector<2x32xf32>
    %62 = arith.addf %60, %61 : vector<2x32xf32>
    %63 = vector.extract_strided_slice %21 {offsets = [0, 32], sizes = [2, 32], strides = [1, 1]} : vector<2x128xf32> to vector<2x32xf32>
    %cst_30 = arith.constant 5.000000e-01 : f32
    %64 = vector.broadcast %cst_30 : f32 to vector<2x32xf32>
    %65 = arith.mulf %64, %63 : vector<2x32xf32>
    %66 = math.tanh %65 : vector<2x32xf32>
    %cst_31 = arith.constant 5.000000e-01 : f32
    %67 = vector.broadcast %cst_31 : f32 to vector<2x32xf32>
    %68 = arith.mulf %67, %66 : vector<2x32xf32>
    %cst_32 = arith.constant 5.000000e-01 : f32
    %69 = vector.broadcast %cst_32 : f32 to vector<2x32xf32>
    %70 = arith.addf %68, %69 : vector<2x32xf32>
    %71 = vector.extract_strided_slice %21 {offsets = [0, 64], sizes = [2, 32], strides = [1, 1]} : vector<2x128xf32> to vector<2x32xf32>
    %72 = math.tanh %71 : vector<2x32xf32>
    %73 = vector.extract_strided_slice %21 {offsets = [0, 96], sizes = [2, 32], strides = [1, 1]} : vector<2x128xf32> to vector<2x32xf32>
    %cst_33 = arith.constant 5.000000e-01 : f32
    %74 = vector.broadcast %cst_33 : f32 to vector<2x32xf32>
    %75 = arith.mulf %74, %73 : vector<2x32xf32>
    %76 = math.tanh %75 : vector<2x32xf32>
    %cst_34 = arith.constant 5.000000e-01 : f32
    %77 = vector.broadcast %cst_34 : f32 to vector<2x32xf32>
    %78 = arith.mulf %77, %76 : vector<2x32xf32>
    %cst_35 = arith.constant 5.000000e-01 : f32
    %79 = vector.broadcast %cst_35 : f32 to vector<2x32xf32>
    %80 = arith.addf %78, %79 : vector<2x32xf32>
    %81 = arith.mulf %70, %54 : vector<2x32xf32>
    %82 = arith.mulf %62, %72 : vector<2x32xf32>
    %83 = arith.addf %81, %82 : vector<2x32xf32>
    %84 = math.tanh %83 : vector<2x32xf32>
    %85 = arith.mulf %80, %84 : vector<2x32xf32>
    %c0_36 = arith.constant 0 : index
    %c0_37 = arith.constant 0 : index
    %86 = vector.load %arg7[%c0_36, %c0_37] : memref<2x32xf32, #tpu.memory_space<vmem>>, vector<2x32xf32>
    tpu.vector_store %arg7[%c0_36, %c0_37], %53 {strides = array<i32>} : memref<2x32xf32, #tpu.memory_space<vmem>>, vector<2x32xf32>,
    %c0_38 = arith.constant 0 : index
    %c0_39 = arith.constant 0 : index
    %87 = vector.load %arg8[%c0_38, %c0_39] : memref<2x32xf32, #tpu.memory_space<vmem>>, vector<2x32xf32>
    tpu.vector_store %arg8[%c0_38, %c0_39], %51 {strides = array<i32>} : memref<2x32xf32, #tpu.memory_space<vmem>>, vector<2x32xf32>,
    %c0_40 = arith.constant 0 : index
    %c0_41 = arith.constant 0 : index
    %88 = vector.load %arg9[%c0_40, %c0_41] : memref<2x32xf32, #tpu.memory_space<vmem>>, vector<2x32xf32>
    tpu.vector_store %arg9[%c0_40, %c0_41], %85 {strides = array<i32>} : memref<2x32xf32, #tpu.memory_space<vmem>>, vector<2x32xf32>,
    %c0_42 = arith.constant 0 : index
    %c0_43 = arith.constant 0 : index
    %89 = vector.load %arg10[%c0_42, %c0_43] : memref<2x32xf32, #tpu.memory_space<vmem>>, vector<2x32xf32>
    tpu.vector_store %arg10[%c0_42, %c0_43], %83 {strides = array<i32>} : memref<2x32xf32, #tpu.memory_space<vmem>>, vector<2x32xf32>,
    %90 = arith.index_cast %c0_i32_1 : i32 to index
    %c0_44 = arith.constant 0 : index
    %c0_45 = arith.constant 0 : index
    %91 = vector.load %arg5[%90, %c0_44, %c0_45] : memref<8x2x32xf32, #tpu.memory_space<vmem>>, vector<1x2x32xf32>
    %92 = vector.shape_cast %91 : vector<1x2x32xf32> to vector<2x32xf32>
    %93 = vector.shape_cast %53 : vector<2x32xf32> to vector<1x2x32xf32>
    tpu.vector_store %arg5[%90, %c0_44, %c0_45], %93 {strides = array<i32>} : memref<8x2x32xf32, #tpu.memory_space<vmem>>, vector<1x2x32xf32>,
    %94 = arith.index_cast %3 : i32 to index
    %c0_46 = arith.constant 0 : index
    %c0_47 = arith.constant 0 : index
    %95 = vector.load %arg6[%94, %c0_46, %c0_47] : memref<8x2x32xf32, #tpu.memory_space<vmem>>, vector<1x2x32xf32>
    %96 = vector.shape_cast %95 : vector<1x2x32xf32> to vector<2x32xf32>
    %97 = vector.shape_cast %85 : vector<2x32xf32> to vector<1x2x32xf32>
    tpu.vector_store %arg6[%94, %c0_46, %c0_47], %97 {strides = array<i32>} : memref<8x2x32xf32, #tpu.memory_space<vmem>>, vector<1x2x32xf32>,
    %c1_i32 = arith.constant 1 : i32
    %c7_i32_48 = arith.constant 7 : i32
    %98 = arith.subi %c7_i32_48, %c1_i32 : i32
    %c0_49 = arith.constant 0 : index
    %c0_50 = arith.constant 0 : index
    %99 = vector.load %arg7[%c0_49, %c0_50] : memref<2x32xf32, #tpu.memory_space<vmem>>, vector<2x32xf32>
    %100 = arith.truncf %99 : vector<2x32xf32> to vector<2x32xbf16>
    %c0_51 = arith.constant 0 : index
    %c0_52 = arith.constant 0 : index
    %101 = vector.load %arg3[%c0_51, %c0_52] : memref<32x128xbf16, #tpu.memory_space<vmem>>, vector<32x128xbf16>
    %cst_53 = arith.constant dense<0.000000e+00> : vector<2x128xf32>
    %102 = tpu.matmul %100, %101, %cst_53 {dimension_numbers = #tpu.dot_dimension_numbers<[1], [0], [0], [1], [0, 0, 1, 1], [], []>} : vector<2x32xbf16>, vector<32x128xbf16>, vector<2x128xf32> -> vector<2x128xf32>
    %c0_54 = arith.constant 0 : index
    %c0_55 = arith.constant 0 : index
    %103 = vector.load %arg9[%c0_54, %c0_55] : memref<2x32xf32, #tpu.memory_space<vmem>>, vector<2x32xf32>
    %104 = arith.truncf %103 : vector<2x32xf32> to vector<2x32xbf16>
    %c0_56 = arith.constant 0 : index
    %c0_57 = arith.constant 0 : index
    %105 = vector.load %arg4[%c0_56, %c0_57] : memref<32x128xbf16, #tpu.memory_space<vmem>>, vector<32x128xbf16>
    %cst_58 = arith.constant dense<0.000000e+00> : vector<2x128xf32>
    %106 = tpu.matmul %104, %105, %cst_58 {dimension_numbers = #tpu.dot_dimension_numbers<[1], [0], [0], [1], [0, 0, 1, 1], [], []>} : vector<2x32xbf16>, vector<32x128xbf16>, vector<2x128xf32> -> vector<2x128xf32>
    %107 = arith.index_cast %c1_i32 : i32 to index
    %c0_59 = arith.constant 0 : index
    %c0_60 = arith.constant 0 : index
    %108 = vector.load %arg1[%107, %c0_59, %c0_60] : memref<8x2x128xbf16, #tpu.memory_space<vmem>>, vector<1x2x128xbf16>
    %109 = vector.shape_cast %108 : vector<1x2x128xbf16> to vector<2x128xbf16>
    %110 = arith.extf %109 : vector<2x128xbf16> to vector<2x128xf32>
    %111 = arith.addf %110, %102 : vector<2x128xf32>
    %112 = arith.index_cast %98 : i32 to index
    %c0_61 = arith.constant 0 : index
    %c0_62 = arith.constant 0 : index
    %113 = vector.load %arg2[%112, %c0_61, %c0_62] : memref<8x2x128xbf16, #tpu.memory_space<vmem>>, vector<1x2x128xbf16>
    %114 = vector.shape_cast %113 : vector<1x2x128xbf16> to vector<2x128xbf16>
    %115 = arith.extf %114 : vector<2x128xbf16> to vector<2x128xf32>
    %116 = arith.addf %115, %106 : vector<2x128xf32>
    %c0_63 = arith.constant 0 : index
    %c0_64 = arith.constant 0 : index
    %117 = vector.load %arg8[%c0_63, %c0_64] : memref<2x32xf32, #tpu.memory_space<vmem>>, vector<2x32xf32>
    %118 = vector.extract_strided_slice %111 {offsets = [0, 0], sizes = [2, 32], strides = [1, 1]} : vector<2x128xf32> to vector<2x32xf32>
    %cst_65 = arith.constant 5.000000e-01 : f32
    %119 = vector.broadcast %cst_65 : f32 to vector<2x32xf32>
    %120 = arith.mulf %119, %118 : vector<2x32xf32>
    %121 = math.tanh %120 : vector<2x32xf32>
    %cst_66 = arith.constant 5.000000e-01 : f32
    %122 = vector.broadcast %cst_66 : f32 to vector<2x32xf32>
    %123 = arith.mulf %122, %121 : vector<2x32xf32>
    %cst_67 = arith.constant 5.000000e-01 : f32
    %124 = vector.broadcast %cst_67 : f32 to vector<2x32xf32>
    %125 = arith.addf %123, %124 : vector<2x32xf32>
    %126 = vector.extract_strided_slice %111 {offsets = [0, 32], sizes = [2, 32], strides = [1, 1]} : vector<2x128xf32> to vector<2x32xf32>
    %cst_68 = arith.constant 5.000000e-01 : f32
    %127 = vector.broadcast %cst_68 : f32 to vector<2x32xf32>
    %128 = arith.mulf %127, %126 : vector<2x32xf32>
    %129 = math.tanh %128 : vector<2x32xf32>
    %cst_69 = arith.constant 5.000000e-01 : f32
    %130 = vector.broadcast %cst_69 : f32 to vector<2x32xf32>
    %131 = arith.mulf %130, %129 : vector<2x32xf32>
    %cst_70 = arith.constant 5.000000e-01 : f32
    %132 = vector.broadcast %cst_70 : f32 to vector<2x32xf32>
    %133 = arith.addf %131, %132 : vector<2x32xf32>
    %134 = vector.extract_strided_slice %111 {offsets = [0, 64], sizes = [2, 32], strides = [1, 1]} : vector<2x128xf32> to vector<2x32xf32>
    %135 = math.tanh %134 : vector<2x32xf32>
    %136 = vector.extract_strided_slice %111 {offsets = [0, 96], sizes = [2, 32], strides = [1, 1]} : vector<2x128xf32> to vector<2x32xf32>
    %cst_71 = arith.constant 5.000000e-01 : f32
    %137 = vector.broadcast %cst_71 : f32 to vector<2x32xf32>
    %138 = arith.mulf %137, %136 : vector<2x32xf32>
    %139 = math.tanh %138 : vector<2x32xf32>
    %cst_72 = arith.constant 5.000000e-01 : f32
    %140 = vector.broadcast %cst_72 : f32 to vector<2x32xf32>
    %141 = arith.mulf %140, %139 : vector<2x32xf32>
    %cst_73 = arith.constant 5.000000e-01 : f32
    %142 = vector.broadcast %cst_73 : f32 to vector<2x32xf32>
    %143 = arith.addf %141, %142 : vector<2x32xf32>
    %144 = arith.mulf %133, %117 : vector<2x32xf32>
    %145 = arith.mulf %125, %135 : vector<2x32xf32>
    %146 = arith.addf %144, %145 : vector<2x32xf32>
    %147 = math.tanh %146 : vector<2x32xf32>
    %148 = arith.mulf %143, %147 : vector<2x32xf32>
    %c0_74 = arith.constant 0 : index
    %c0_75 = arith.constant 0 : index
    %149 = vector.load %arg10[%c0_74, %c0_75] : memref<2x32xf32, #tpu.memory_space<vmem>>, vector<2x32xf32>
    %150 = vector.extract_strided_slice %116 {offsets = [0, 0], sizes = [2, 32], strides = [1, 1]} : vector<2x128xf32> to vector<2x32xf32>
    %cst_76 = arith.constant 5.000000e-01 : f32
    %151 = vector.broadcast %cst_76 : f32 to vector<2x32xf32>
    %152 = arith.mulf %151, %150 : vector<2x32xf32>
    %153 = math.tanh %152 : vector<2x32xf32>
    %cst_77 = arith.constant 5.000000e-01 : f32
    %154 = vector.broadcast %cst_77 : f32 to vector<2x32xf32>
    %155 = arith.mulf %154, %153 : vector<2x32xf32>
    %cst_78 = arith.constant 5.000000e-01 : f32
    %156 = vector.broadcast %cst_78 : f32 to vector<2x32xf32>
    %157 = arith.addf %155, %156 : vector<2x32xf32>
    %158 = vector.extract_strided_slice %116 {offsets = [0, 32], sizes = [2, 32], strides = [1, 1]} : vector<2x128xf32> to vector<2x32xf32>
    %cst_79 = arith.constant 5.000000e-01 : f32
    %159 = vector.broadcast %cst_79 : f32 to vector<2x32xf32>
    %160 = arith.mulf %159, %158 : vector<2x32xf32>
    %161 = math.tanh %160 : vector<2x32xf32>
    %cst_80 = arith.constant 5.000000e-01 : f32
    %162 = vector.broadcast %cst_80 : f32 to vector<2x32xf32>
    %163 = arith.mulf %162, %161 : vector<2x32xf32>
    %cst_81 = arith.constant 5.000000e-01 : f32
    %164 = vector.broadcast %cst_81 : f32 to vector<2x32xf32>
    %165 = arith.addf %163, %164 : vector<2x32xf32>
    %166 = vector.extract_strided_slice %116 {offsets = [0, 64], sizes = [2, 32], strides = [1, 1]} : vector<2x128xf32> to vector<2x32xf32>
    %167 = math.tanh %166 : vector<2x32xf32>
    %168 = vector.extract_strided_slice %116 {offsets = [0, 96], sizes = [2, 32], strides = [1, 1]} : vector<2x128xf32> to vector<2x32xf32>
    %cst_82 = arith.constant 5.000000e-01 : f32
    %169 = vector.broadcast %cst_82 : f32 to vector<2x32xf32>
    %170 = arith.mulf %169, %168 : vector<2x32xf32>
    %171 = math.tanh %170 : vector<2x32xf32>
    %cst_83 = arith.constant 5.000000e-01 : f32
    %172 = vector.broadcast %cst_83 : f32 to vector<2x32xf32>
    %173 = arith.mulf %172, %171 : vector<2x32xf32>
    %cst_84 = arith.constant 5.000000e-01 : f32
    %174 = vector.broadcast %cst_84 : f32 to vector<2x32xf32>
    %175 = arith.addf %173, %174 : vector<2x32xf32>
    %176 = arith.mulf %165, %149 : vector<2x32xf32>
    %177 = arith.mulf %157, %167 : vector<2x32xf32>
    %178 = arith.addf %176, %177 : vector<2x32xf32>
    %179 = math.tanh %178 : vector<2x32xf32>
    %180 = arith.mulf %175, %179 : vector<2x32xf32>
    %c0_85 = arith.constant 0 : index
    %c0_86 = arith.constant 0 : index
    %181 = vector.load %arg7[%c0_85, %c0_86] : memref<2x32xf32, #tpu.memory_space<vmem>>, vector<2x32xf32>
    tpu.vector_store %arg7[%c0_85, %c0_86], %148 {strides = array<i32>} : memref<2x32xf32, #tpu.memory_space<vmem>>, vector<2x32xf32>,
    %c0_87 = arith.constant 0 : index
    %c0_88 = arith.constant 0 : index
    %182 = vector.load %arg8[%c0_87, %c0_88] : memref<2x32xf32, #tpu.memory_space<vmem>>, vector<2x32xf32>
    tpu.vector_store %arg8[%c0_87, %c0_88], %146 {strides = array<i32>} : memref<2x32xf32, #tpu.memory_space<vmem>>, vector<2x32xf32>,
    %c0_89 = arith.constant 0 : index
    %c0_90 = arith.constant 0 : index
    %183 = vector.load %arg9[%c0_89, %c0_90] : memref<2x32xf32, #tpu.memory_space<vmem>>, vector<2x32xf32>
    tpu.vector_store %arg9[%c0_89, %c0_90], %180 {strides = array<i32>} : memref<2x32xf32, #tpu.memory_space<vmem>>, vector<2x32xf32>,
    %c0_91 = arith.constant 0 : index
    %c0_92 = arith.constant 0 : index
    %184 = vector.load %arg10[%c0_91, %c0_92] : memref<2x32xf32, #tpu.memory_space<vmem>>, vector<2x32xf32>
    tpu.vector_store %arg10[%c0_91, %c0_92], %178 {strides = array<i32>} : memref<2x32xf32, #tpu.memory_space<vmem>>, vector<2x32xf32>,
    %185 = arith.index_cast %c1_i32 : i32 to index
    %c0_93 = arith.constant 0 : index
    %c0_94 = arith.constant 0 : index
    %186 = vector.load %arg5[%185, %c0_93, %c0_94] : memref<8x2x32xf32, #tpu.memory_space<vmem>>, vector<1x2x32xf32>
    %187 = vector.shape_cast %186 : vector<1x2x32xf32> to vector<2x32xf32>
    %188 = vector.shape_cast %148 : vector<2x32xf32> to vector<1x2x32xf32>
    tpu.vector_store %arg5[%185, %c0_93, %c0_94], %188 {strides = array<i32>} : memref<8x2x32xf32, #tpu.memory_space<vmem>>, vector<1x2x32xf32>,
    %189 = arith.index_cast %98 : i32 to index
    %c0_95 = arith.constant 0 : index
    %c0_96 = arith.constant 0 : index
    %190 = vector.load %arg6[%189, %c0_95, %c0_96] : memref<8x2x32xf32, #tpu.memory_space<vmem>>, vector<1x2x32xf32>
    %191 = vector.shape_cast %190 : vector<1x2x32xf32> to vector<2x32xf32>
    %192 = vector.shape_cast %180 : vector<2x32xf32> to vector<1x2x32xf32>
    tpu.vector_store %arg6[%189, %c0_95, %c0_96], %192 {strides = array<i32>} : memref<8x2x32xf32, #tpu.memory_space<vmem>>, vector<1x2x32xf32>,
    %c2_i32 = arith.constant 2 : i32
    %c7_i32_97 = arith.constant 7 : i32
    %193 = arith.subi %c7_i32_97, %c2_i32 : i32
    %c0_98 = arith.constant 0 : index
    %c0_99 = arith.constant 0 : index
    %194 = vector.load %arg7[%c0_98, %c0_99] : memref<2x32xf32, #tpu.memory_space<vmem>>, vector<2x32xf32>
    %195 = arith.truncf %194 : vector<2x32xf32> to vector<2x32xbf16>
    %c0_100 = arith.constant 0 : index
    %c0_101 = arith.constant 0 : index
    %196 = vector.load %arg3[%c0_100, %c0_101] : memref<32x128xbf16, #tpu.memory_space<vmem>>, vector<32x128xbf16>
    %cst_102 = arith.constant dense<0.000000e+00> : vector<2x128xf32>
    %197 = tpu.matmul %195, %196, %cst_102 {dimension_numbers = #tpu.dot_dimension_numbers<[1], [0], [0], [1], [0, 0, 1, 1], [], []>} : vector<2x32xbf16>, vector<32x128xbf16>, vector<2x128xf32> -> vector<2x128xf32>
    %c0_103 = arith.constant 0 : index
    %c0_104 = arith.constant 0 : index
    %198 = vector.load %arg9[%c0_103, %c0_104] : memref<2x32xf32, #tpu.memory_space<vmem>>, vector<2x32xf32>
    %199 = arith.truncf %198 : vector<2x32xf32> to vector<2x32xbf16>
    %c0_105 = arith.constant 0 : index
    %c0_106 = arith.constant 0 : index
    %200 = vector.load %arg4[%c0_105, %c0_106] : memref<32x128xbf16, #tpu.memory_space<vmem>>, vector<32x128xbf16>
    %cst_107 = arith.constant dense<0.000000e+00> : vector<2x128xf32>
    %201 = tpu.matmul %199, %200, %cst_107 {dimension_numbers = #tpu.dot_dimension_numbers<[1], [0], [0], [1], [0, 0, 1, 1], [], []>} : vector<2x32xbf16>, vector<32x128xbf16>, vector<2x128xf32> -> vector<2x128xf32>
    %202 = arith.index_cast %c2_i32 : i32 to index
    %c0_108 = arith.constant 0 : index
    %c0_109 = arith.constant 0 : index
    %203 = vector.load %arg1[%202, %c0_108, %c0_109] : memref<8x2x128xbf16, #tpu.memory_space<vmem>>, vector<1x2x128xbf16>
    %204 = vector.shape_cast %203 : vector<1x2x128xbf16> to vector<2x128xbf16>
    %205 = arith.extf %204 : vector<2x128xbf16> to vector<2x128xf32>
    %206 = arith.addf %205, %197 : vector<2x128xf32>
    %207 = arith.index_cast %193 : i32 to index
    %c0_110 = arith.constant 0 : index
    %c0_111 = arith.constant 0 : index
    %208 = vector.load %arg2[%207, %c0_110, %c0_111] : memref<8x2x128xbf16, #tpu.memory_space<vmem>>, vector<1x2x128xbf16>
    %209 = vector.shape_cast %208 : vector<1x2x128xbf16> to vector<2x128xbf16>
    %210 = arith.extf %209 : vector<2x128xbf16> to vector<2x128xf32>
    %211 = arith.addf %210, %201 : vector<2x128xf32>
    %c0_112 = arith.constant 0 : index
    %c0_113 = arith.constant 0 : index
    %212 = vector.load %arg8[%c0_112, %c0_113] : memref<2x32xf32, #tpu.memory_space<vmem>>, vector<2x32xf32>
    %213 = vector.extract_strided_slice %206 {offsets = [0, 0], sizes = [2, 32], strides = [1, 1]} : vector<2x128xf32> to vector<2x32xf32>
    %cst_114 = arith.constant 5.000000e-01 : f32
    %214 = vector.broadcast %cst_114 : f32 to vector<2x32xf32>
    %215 = arith.mulf %214, %213 : vector<2x32xf32>
    %216 = math.tanh %215 : vector<2x32xf32>
    %cst_115 = arith.constant 5.000000e-01 : f32
    %217 = vector.broadcast %cst_115 : f32 to vector<2x32xf32>
    %218 = arith.mulf %217, %216 : vector<2x32xf32>
    %cst_116 = arith.constant 5.000000e-01 : f32
    %219 = vector.broadcast %cst_116 : f32 to vector<2x32xf32>
    %220 = arith.addf %218, %219 : vector<2x32xf32>
    %221 = vector.extract_strided_slice %206 {offsets = [0, 32], sizes = [2, 32], strides = [1, 1]} : vector<2x128xf32> to vector<2x32xf32>
    %cst_117 = arith.constant 5.000000e-01 : f32
    %222 = vector.broadcast %cst_117 : f32 to vector<2x32xf32>
    %223 = arith.mulf %222, %221 : vector<2x32xf32>
    %224 = math.tanh %223 : vector<2x32xf32>
    %cst_118 = arith.constant 5.000000e-01 : f32
    %225 = vector.broadcast %cst_118 : f32 to vector<2x32xf32>
    %226 = arith.mulf %225, %224 : vector<2x32xf32>
    %cst_119 = arith.constant 5.000000e-01 : f32
    %227 = vector.broadcast %cst_119 : f32 to vector<2x32xf32>
    %228 = arith.addf %226, %227 : vector<2x32xf32>
    %229 = vector.extract_strided_slice %206 {offsets = [0, 64], sizes = [2, 32], strides = [1, 1]} : vector<2x128xf32> to vector<2x32xf32>
    %230 = math.tanh %229 : vector<2x32xf32>
    %231 = vector.extract_strided_slice %206 {offsets = [0, 96], sizes = [2, 32], strides = [1, 1]} : vector<2x128xf32> to vector<2x32xf32>
    %cst_120 = arith.constant 5.000000e-01 : f32
    %232 = vector.broadcast %cst_120 : f32 to vector<2x32xf32>
    %233 = arith.mulf %232, %231 : vector<2x32xf32>
    %234 = math.tanh %233 : vector<2x32xf32>
    %cst_121 = arith.constant 5.000000e-01 : f32
    %235 = vector.broadcast %cst_121 : f32 to vector<2x32xf32>
    %236 = arith.mulf %235, %234 : vector<2x32xf32>
    %cst_122 = arith.constant 5.000000e-01 : f32
    %237 = vector.broadcast %cst_122 : f32 to vector<2x32xf32>
    %238 = arith.addf %236, %237 : vector<2x32xf32>
    %239 = arith.mulf %228, %212 : vector<2x32xf32>
    %240 = arith.mulf %220, %230 : vector<2x32xf32>
    %241 = arith.addf %239, %240 : vector<2x32xf32>
    %242 = math.tanh %241 : vector<2x32xf32>
    %243 = arith.mulf %238, %242 : vector<2x32xf32>
    %c0_123 = arith.constant 0 : index
    %c0_124 = arith.constant 0 : index
    %244 = vector.load %arg10[%c0_123, %c0_124] : memref<2x32xf32, #tpu.memory_space<vmem>>, vector<2x32xf32>
    %245 = vector.extract_strided_slice %211 {offsets = [0, 0], sizes = [2, 32], strides = [1, 1]} : vector<2x128xf32> to vector<2x32xf32>
    %cst_125 = arith.constant 5.000000e-01 : f32
    %246 = vector.broadcast %cst_125 : f32 to vector<2x32xf32>
    %247 = arith.mulf %246, %245 : vector<2x32xf32>
    %248 = math.tanh %247 : vector<2x32xf32>
    %cst_126 = arith.constant 5.000000e-01 : f32
    %249 = vector.broadcast %cst_126 : f32 to vector<2x32xf32>
    %250 = arith.mulf %249, %248 : vector<2x32xf32>
    %cst_127 = arith.constant 5.000000e-01 : f32
    %251 = vector.broadcast %cst_127 : f32 to vector<2x32xf32>
    %252 = arith.addf %250, %251 : vector<2x32xf32>
    %253 = vector.extract_strided_slice %211 {offsets = [0, 32], sizes = [2, 32], strides = [1, 1]} : vector<2x128xf32> to vector<2x32xf32>
    %cst_128 = arith.constant 5.000000e-01 : f32
    %254 = vector.broadcast %cst_128 : f32 to vector<2x32xf32>
    %255 = arith.mulf %254, %253 : vector<2x32xf32>
    %256 = math.tanh %255 : vector<2x32xf32>
    %cst_129 = arith.constant 5.000000e-01 : f32
    %257 = vector.broadcast %cst_129 : f32 to vector<2x32xf32>
    %258 = arith.mulf %257, %256 : vector<2x32xf32>
    %cst_130 = arith.constant 5.000000e-01 : f32
    %259 = vector.broadcast %cst_130 : f32 to vector<2x32xf32>
    %260 = arith.addf %258, %259 : vector<2x32xf32>
    %261 = vector.extract_strided_slice %211 {offsets = [0, 64], sizes = [2, 32], strides = [1, 1]} : vector<2x128xf32> to vector<2x32xf32>
    %262 = math.tanh %261 : vector<2x32xf32>
    %263 = vector.extract_strided_slice %211 {offsets = [0, 96], sizes = [2, 32], strides = [1, 1]} : vector<2x128xf32> to vector<2x32xf32>
    %cst_131 = arith.constant 5.000000e-01 : f32
    %264 = vector.broadcast %cst_131 : f32 to vector<2x32xf32>
    %265 = arith.mulf %264, %263 : vector<2x32xf32>
    %266 = math.tanh %265 : vector<2x32xf32>
    %cst_132 = arith.constant 5.000000e-01 : f32
    %267 = vector.broadcast %cst_132 : f32 to vector<2x32xf32>
    %268 = arith.mulf %267, %266 : vector<2x32xf32>
    %cst_133 = arith.constant 5.000000e-01 : f32
    %269 = vector.broadcast %cst_133 : f32 to vector<2x32xf32>
    %270 = arith.addf %268, %269 : vector<2x32xf32>
    %271 = arith.mulf %260, %244 : vector<2x32xf32>
    %272 = arith.mulf %252, %262 : vector<2x32xf32>
    %273 = arith.addf %271, %272 : vector<2x32xf32>
    %274 = math.tanh %273 : vector<2x32xf32>
    %275 = arith.mulf %270, %274 : vector<2x32xf32>
    %c0_134 = arith.constant 0 : index
    %c0_135 = arith.constant 0 : index
    %276 = vector.load %arg7[%c0_134, %c0_135] : memref<2x32xf32, #tpu.memory_space<vmem>>, vector<2x32xf32>
    tpu.vector_store %arg7[%c0_134, %c0_135], %243 {strides = array<i32>} : memref<2x32xf32, #tpu.memory_space<vmem>>, vector<2x32xf32>,
    %c0_136 = arith.constant 0 : index
    %c0_137 = arith.constant 0 : index
    %277 = vector.load %arg8[%c0_136, %c0_137] : memref<2x32xf32, #tpu.memory_space<vmem>>, vector<2x32xf32>
    tpu.vector_store %arg8[%c0_136, %c0_137], %241 {strides = array<i32>} : memref<2x32xf32, #tpu.memory_space<vmem>>, vector<2x32xf32>,
    %c0_138 = arith.constant 0 : index
    %c0_139 = arith.constant 0 : index
    %278 = vector.load %arg9[%c0_138, %c0_139] : memref<2x32xf32, #tpu.memory_space<vmem>>, vector<2x32xf32>
    tpu.vector_store %arg9[%c0_138, %c0_139], %275 {strides = array<i32>} : memref<2x32xf32, #tpu.memory_space<vmem>>, vector<2x32xf32>,
    %c0_140 = arith.constant 0 : index
    %c0_141 = arith.constant 0 : index
    %279 = vector.load %arg10[%c0_140, %c0_141] : memref<2x32xf32, #tpu.memory_space<vmem>>, vector<2x32xf32>
    tpu.vector_store %arg10[%c0_140, %c0_141], %273 {strides = array<i32>} : memref<2x32xf32, #tpu.memory_space<vmem>>, vector<2x32xf32>,
    %280 = arith.index_cast %c2_i32 : i32 to index
    %c0_142 = arith.constant 0 : index
    %c0_143 = arith.constant 0 : index
    %281 = vector.load %arg5[%280, %c0_142, %c0_143] : memref<8x2x32xf32, #tpu.memory_space<vmem>>, vector<1x2x32xf32>
    %282 = vector.shape_cast %281 : vector<1x2x32xf32> to vector<2x32xf32>
    %283 = vector.shape_cast %243 : vector<2x32xf32> to vector<1x2x32xf32>
    tpu.vector_store %arg5[%280, %c0_142, %c0_143], %283 {strides = array<i32>} : memref<8x2x32xf32, #tpu.memory_space<vmem>>, vector<1x2x32xf32>,
    %284 = arith.index_cast %193 : i32 to index
    %c0_144 = arith.constant 0 : index
    %c0_145 = arith.constant 0 : index
    %285 = vector.load %arg6[%284, %c0_144, %c0_145] : memref<8x2x32xf32, #tpu.memory_space<vmem>>, vector<1x2x32xf32>
    %286 = vector.shape_cast %285 : vector<1x2x32xf32> to vector<2x32xf32>
    %287 = vector.shape_cast %275 : vector<2x32xf32> to vector<1x2x32xf32>
    tpu.vector_store %arg6[%284, %c0_144, %c0_145], %287 {strides = array<i32>} : memref<8x2x32xf32, #tpu.memory_space<vmem>>, vector<1x2x32xf32>,
    %c3_i32 = arith.constant 3 : i32
    %c7_i32_146 = arith.constant 7 : i32
    %288 = arith.subi %c7_i32_146, %c3_i32 : i32
    %c0_147 = arith.constant 0 : index
    %c0_148 = arith.constant 0 : index
    %289 = vector.load %arg7[%c0_147, %c0_148] : memref<2x32xf32, #tpu.memory_space<vmem>>, vector<2x32xf32>
    %290 = arith.truncf %289 : vector<2x32xf32> to vector<2x32xbf16>
    %c0_149 = arith.constant 0 : index
    %c0_150 = arith.constant 0 : index
    %291 = vector.load %arg3[%c0_149, %c0_150] : memref<32x128xbf16, #tpu.memory_space<vmem>>, vector<32x128xbf16>
    %cst_151 = arith.constant dense<0.000000e+00> : vector<2x128xf32>
    %292 = tpu.matmul %290, %291, %cst_151 {dimension_numbers = #tpu.dot_dimension_numbers<[1], [0], [0], [1], [0, 0, 1, 1], [], []>} : vector<2x32xbf16>, vector<32x128xbf16>, vector<2x128xf32> -> vector<2x128xf32>
    %c0_152 = arith.constant 0 : index
    %c0_153 = arith.constant 0 : index
    %293 = vector.load %arg9[%c0_152, %c0_153] : memref<2x32xf32, #tpu.memory_space<vmem>>, vector<2x32xf32>
    %294 = arith.truncf %293 : vector<2x32xf32> to vector<2x32xbf16>
    %c0_154 = arith.constant 0 : index
    %c0_155 = arith.constant 0 : index
    %295 = vector.load %arg4[%c0_154, %c0_155] : memref<32x128xbf16, #tpu.memory_space<vmem>>, vector<32x128xbf16>
    %cst_156 = arith.constant dense<0.000000e+00> : vector<2x128xf32>
    %296 = tpu.matmul %294, %295, %cst_156 {dimension_numbers = #tpu.dot_dimension_numbers<[1], [0], [0], [1], [0, 0, 1, 1], [], []>} : vector<2x32xbf16>, vector<32x128xbf16>, vector<2x128xf32> -> vector<2x128xf32>
    %297 = arith.index_cast %c3_i32 : i32 to index
    %c0_157 = arith.constant 0 : index
    %c0_158 = arith.constant 0 : index
    %298 = vector.load %arg1[%297, %c0_157, %c0_158] : memref<8x2x128xbf16, #tpu.memory_space<vmem>>, vector<1x2x128xbf16>
    %299 = vector.shape_cast %298 : vector<1x2x128xbf16> to vector<2x128xbf16>
    %300 = arith.extf %299 : vector<2x128xbf16> to vector<2x128xf32>
    %301 = arith.addf %300, %292 : vector<2x128xf32>
    %302 = arith.index_cast %288 : i32 to index
    %c0_159 = arith.constant 0 : index
    %c0_160 = arith.constant 0 : index
    %303 = vector.load %arg2[%302, %c0_159, %c0_160] : memref<8x2x128xbf16, #tpu.memory_space<vmem>>, vector<1x2x128xbf16>
    %304 = vector.shape_cast %303 : vector<1x2x128xbf16> to vector<2x128xbf16>
    %305 = arith.extf %304 : vector<2x128xbf16> to vector<2x128xf32>
    %306 = arith.addf %305, %296 : vector<2x128xf32>
    %c0_161 = arith.constant 0 : index
    %c0_162 = arith.constant 0 : index
    %307 = vector.load %arg8[%c0_161, %c0_162] : memref<2x32xf32, #tpu.memory_space<vmem>>, vector<2x32xf32>
    %308 = vector.extract_strided_slice %301 {offsets = [0, 0], sizes = [2, 32], strides = [1, 1]} : vector<2x128xf32> to vector<2x32xf32>
    %cst_163 = arith.constant 5.000000e-01 : f32
    %309 = vector.broadcast %cst_163 : f32 to vector<2x32xf32>
    %310 = arith.mulf %309, %308 : vector<2x32xf32>
    %311 = math.tanh %310 : vector<2x32xf32>
    %cst_164 = arith.constant 5.000000e-01 : f32
    %312 = vector.broadcast %cst_164 : f32 to vector<2x32xf32>
    %313 = arith.mulf %312, %311 : vector<2x32xf32>
    %cst_165 = arith.constant 5.000000e-01 : f32
    %314 = vector.broadcast %cst_165 : f32 to vector<2x32xf32>
    %315 = arith.addf %313, %314 : vector<2x32xf32>
    %316 = vector.extract_strided_slice %301 {offsets = [0, 32], sizes = [2, 32], strides = [1, 1]} : vector<2x128xf32> to vector<2x32xf32>
    %cst_166 = arith.constant 5.000000e-01 : f32
    %317 = vector.broadcast %cst_166 : f32 to vector<2x32xf32>
    %318 = arith.mulf %317, %316 : vector<2x32xf32>
    %319 = math.tanh %318 : vector<2x32xf32>
    %cst_167 = arith.constant 5.000000e-01 : f32
    %320 = vector.broadcast %cst_167 : f32 to vector<2x32xf32>
    %321 = arith.mulf %320, %319 : vector<2x32xf32>
    %cst_168 = arith.constant 5.000000e-01 : f32
    %322 = vector.broadcast %cst_168 : f32 to vector<2x32xf32>
    %323 = arith.addf %321, %322 : vector<2x32xf32>
    %324 = vector.extract_strided_slice %301 {offsets = [0, 64], sizes = [2, 32], strides = [1, 1]} : vector<2x128xf32> to vector<2x32xf32>
    %325 = math.tanh %324 : vector<2x32xf32>
    %326 = vector.extract_strided_slice %301 {offsets = [0, 96], sizes = [2, 32], strides = [1, 1]} : vector<2x128xf32> to vector<2x32xf32>
    %cst_169 = arith.constant 5.000000e-01 : f32
    %327 = vector.broadcast %cst_169 : f32 to vector<2x32xf32>
    %328 = arith.mulf %327, %326 : vector<2x32xf32>
    %329 = math.tanh %328 : vector<2x32xf32>
    %cst_170 = arith.constant 5.000000e-01 : f32
    %330 = vector.broadcast %cst_170 : f32 to vector<2x32xf32>
    %331 = arith.mulf %330, %329 : vector<2x32xf32>
    %cst_171 = arith.constant 5.000000e-01 : f32
    %332 = vector.broadcast %cst_171 : f32 to vector<2x32xf32>
    %333 = arith.addf %331, %332 : vector<2x32xf32>
    %334 = arith.mulf %323, %307 : vector<2x32xf32>
    %335 = arith.mulf %315, %325 : vector<2x32xf32>
    %336 = arith.addf %334, %335 : vector<2x32xf32>
    %337 = math.tanh %336 : vector<2x32xf32>
    %338 = arith.mulf %333, %337 : vector<2x32xf32>
    %c0_172 = arith.constant 0 : index
    %c0_173 = arith.constant 0 : index
    %339 = vector.load %arg10[%c0_172, %c0_173] : memref<2x32xf32, #tpu.memory_space<vmem>>, vector<2x32xf32>
    %340 = vector.extract_strided_slice %306 {offsets = [0, 0], sizes = [2, 32], strides = [1, 1]} : vector<2x128xf32> to vector<2x32xf32>
    %cst_174 = arith.constant 5.000000e-01 : f32
    %341 = vector.broadcast %cst_174 : f32 to vector<2x32xf32>
    %342 = arith.mulf %341, %340 : vector<2x32xf32>
    %343 = math.tanh %342 : vector<2x32xf32>
    %cst_175 = arith.constant 5.000000e-01 : f32
    %344 = vector.broadcast %cst_175 : f32 to vector<2x32xf32>
    %345 = arith.mulf %344, %343 : vector<2x32xf32>
    %cst_176 = arith.constant 5.000000e-01 : f32
    %346 = vector.broadcast %cst_176 : f32 to vector<2x32xf32>
    %347 = arith.addf %345, %346 : vector<2x32xf32>
    %348 = vector.extract_strided_slice %306 {offsets = [0, 32], sizes = [2, 32], strides = [1, 1]} : vector<2x128xf32> to vector<2x32xf32>
    %cst_177 = arith.constant 5.000000e-01 : f32
    %349 = vector.broadcast %cst_177 : f32 to vector<2x32xf32>
    %350 = arith.mulf %349, %348 : vector<2x32xf32>
    %351 = math.tanh %350 : vector<2x32xf32>
    %cst_178 = arith.constant 5.000000e-01 : f32
    %352 = vector.broadcast %cst_178 : f32 to vector<2x32xf32>
    %353 = arith.mulf %352, %351 : vector<2x32xf32>
    %cst_179 = arith.constant 5.000000e-01 : f32
    %354 = vector.broadcast %cst_179 : f32 to vector<2x32xf32>
    %355 = arith.addf %353, %354 : vector<2x32xf32>
    %356 = vector.extract_strided_slice %306 {offsets = [0, 64], sizes = [2, 32], strides = [1, 1]} : vector<2x128xf32> to vector<2x32xf32>
    %357 = math.tanh %356 : vector<2x32xf32>
    %358 = vector.extract_strided_slice %306 {offsets = [0, 96], sizes = [2, 32], strides = [1, 1]} : vector<2x128xf32> to vector<2x32xf32>
    %cst_180 = arith.constant 5.000000e-01 : f32
    %359 = vector.broadcast %cst_180 : f32 to vector<2x32xf32>
    %360 = arith.mulf %359, %358 : vector<2x32xf32>
    %361 = math.tanh %360 : vector<2x32xf32>
    %cst_181 = arith.constant 5.000000e-01 : f32
    %362 = vector.broadcast %cst_181 : f32 to vector<2x32xf32>
    %363 = arith.mulf %362, %361 : vector<2x32xf32>
    %cst_182 = arith.constant 5.000000e-01 : f32
    %364 = vector.broadcast %cst_182 : f32 to vector<2x32xf32>
    %365 = arith.addf %363, %364 : vector<2x32xf32>
    %366 = arith.mulf %355, %339 : vector<2x32xf32>
    %367 = arith.mulf %347, %357 : vector<2x32xf32>
    %368 = arith.addf %366, %367 : vector<2x32xf32>
    %369 = math.tanh %368 : vector<2x32xf32>
    %370 = arith.mulf %365, %369 : vector<2x32xf32>
    %c0_183 = arith.constant 0 : index
    %c0_184 = arith.constant 0 : index
    %371 = vector.load %arg7[%c0_183, %c0_184] : memref<2x32xf32, #tpu.memory_space<vmem>>, vector<2x32xf32>
    tpu.vector_store %arg7[%c0_183, %c0_184], %338 {strides = array<i32>} : memref<2x32xf32, #tpu.memory_space<vmem>>, vector<2x32xf32>,
    %c0_185 = arith.constant 0 : index
    %c0_186 = arith.constant 0 : index
    %372 = vector.load %arg8[%c0_185, %c0_186] : memref<2x32xf32, #tpu.memory_space<vmem>>, vector<2x32xf32>
    tpu.vector_store %arg8[%c0_185, %c0_186], %336 {strides = array<i32>} : memref<2x32xf32, #tpu.memory_space<vmem>>, vector<2x32xf32>,
    %c0_187 = arith.constant 0 : index
    %c0_188 = arith.constant 0 : index
    %373 = vector.load %arg9[%c0_187, %c0_188] : memref<2x32xf32, #tpu.memory_space<vmem>>, vector<2x32xf32>
    tpu.vector_store %arg9[%c0_187, %c0_188], %370 {strides = array<i32>} : memref<2x32xf32, #tpu.memory_space<vmem>>, vector<2x32xf32>,
    %c0_189 = arith.constant 0 : index
    %c0_190 = arith.constant 0 : index
    %374 = vector.load %arg10[%c0_189, %c0_190] : memref<2x32xf32, #tpu.memory_space<vmem>>, vector<2x32xf32>
    tpu.vector_store %arg10[%c0_189, %c0_190], %368 {strides = array<i32>} : memref<2x32xf32, #tpu.memory_space<vmem>>, vector<2x32xf32>,
    %375 = arith.index_cast %c3_i32 : i32 to index
    %c0_191 = arith.constant 0 : index
    %c0_192 = arith.constant 0 : index
    %376 = vector.load %arg5[%375, %c0_191, %c0_192] : memref<8x2x32xf32, #tpu.memory_space<vmem>>, vector<1x2x32xf32>
    %377 = vector.shape_cast %376 : vector<1x2x32xf32> to vector<2x32xf32>
    %378 = vector.shape_cast %338 : vector<2x32xf32> to vector<1x2x32xf32>
    tpu.vector_store %arg5[%375, %c0_191, %c0_192], %378 {strides = array<i32>} : memref<8x2x32xf32, #tpu.memory_space<vmem>>, vector<1x2x32xf32>,
    %379 = arith.index_cast %288 : i32 to index
    %c0_193 = arith.constant 0 : index
    %c0_194 = arith.constant 0 : index
    %380 = vector.load %arg6[%379, %c0_193, %c0_194] : memref<8x2x32xf32, #tpu.memory_space<vmem>>, vector<1x2x32xf32>
    %381 = vector.shape_cast %380 : vector<1x2x32xf32> to vector<2x32xf32>
    %382 = vector.shape_cast %370 : vector<2x32xf32> to vector<1x2x32xf32>
    tpu.vector_store %arg6[%379, %c0_193, %c0_194], %382 {strides = array<i32>} : memref<8x2x32xf32, #tpu.memory_space<vmem>>, vector<1x2x32xf32>,
    %c4_i32 = arith.constant 4 : i32
    %c7_i32_195 = arith.constant 7 : i32
    %383 = arith.subi %c7_i32_195, %c4_i32 : i32
    %c0_196 = arith.constant 0 : index
    %c0_197 = arith.constant 0 : index
    %384 = vector.load %arg7[%c0_196, %c0_197] : memref<2x32xf32, #tpu.memory_space<vmem>>, vector<2x32xf32>
    %385 = arith.truncf %384 : vector<2x32xf32> to vector<2x32xbf16>
    %c0_198 = arith.constant 0 : index
    %c0_199 = arith.constant 0 : index
    %386 = vector.load %arg3[%c0_198, %c0_199] : memref<32x128xbf16, #tpu.memory_space<vmem>>, vector<32x128xbf16>
    %cst_200 = arith.constant dense<0.000000e+00> : vector<2x128xf32>
    %387 = tpu.matmul %385, %386, %cst_200 {dimension_numbers = #tpu.dot_dimension_numbers<[1], [0], [0], [1], [0, 0, 1, 1], [], []>} : vector<2x32xbf16>, vector<32x128xbf16>, vector<2x128xf32> -> vector<2x128xf32>
    %c0_201 = arith.constant 0 : index
    %c0_202 = arith.constant 0 : index
    %388 = vector.load %arg9[%c0_201, %c0_202] : memref<2x32xf32, #tpu.memory_space<vmem>>, vector<2x32xf32>
    %389 = arith.truncf %388 : vector<2x32xf32> to vector<2x32xbf16>
    %c0_203 = arith.constant 0 : index
    %c0_204 = arith.constant 0 : index
    %390 = vector.load %arg4[%c0_203, %c0_204] : memref<32x128xbf16, #tpu.memory_space<vmem>>, vector<32x128xbf16>
    %cst_205 = arith.constant dense<0.000000e+00> : vector<2x128xf32>
    %391 = tpu.matmul %389, %390, %cst_205 {dimension_numbers = #tpu.dot_dimension_numbers<[1], [0], [0], [1], [0, 0, 1, 1], [], []>} : vector<2x32xbf16>, vector<32x128xbf16>, vector<2x128xf32> -> vector<2x128xf32>
    %392 = arith.index_cast %c4_i32 : i32 to index
    %c0_206 = arith.constant 0 : index
    %c0_207 = arith.constant 0 : index
    %393 = vector.load %arg1[%392, %c0_206, %c0_207] : memref<8x2x128xbf16, #tpu.memory_space<vmem>>, vector<1x2x128xbf16>
    %394 = vector.shape_cast %393 : vector<1x2x128xbf16> to vector<2x128xbf16>
    %395 = arith.extf %394 : vector<2x128xbf16> to vector<2x128xf32>
    %396 = arith.addf %395, %387 : vector<2x128xf32>
    %397 = arith.index_cast %383 : i32 to index
    %c0_208 = arith.constant 0 : index
    %c0_209 = arith.constant 0 : index
    %398 = vector.load %arg2[%397, %c0_208, %c0_209] : memref<8x2x128xbf16, #tpu.memory_space<vmem>>, vector<1x2x128xbf16>
    %399 = vector.shape_cast %398 : vector<1x2x128xbf16> to vector<2x128xbf16>
    %400 = arith.extf %399 : vector<2x128xbf16> to vector<2x128xf32>
    %401 = arith.addf %400, %391 : vector<2x128xf32>
    %c0_210 = arith.constant 0 : index
    %c0_211 = arith.constant 0 : index
    %402 = vector.load %arg8[%c0_210, %c0_211] : memref<2x32xf32, #tpu.memory_space<vmem>>, vector<2x32xf32>
    %403 = vector.extract_strided_slice %396 {offsets = [0, 0], sizes = [2, 32], strides = [1, 1]} : vector<2x128xf32> to vector<2x32xf32>
    %cst_212 = arith.constant 5.000000e-01 : f32
    %404 = vector.broadcast %cst_212 : f32 to vector<2x32xf32>
    %405 = arith.mulf %404, %403 : vector<2x32xf32>
    %406 = math.tanh %405 : vector<2x32xf32>
    %cst_213 = arith.constant 5.000000e-01 : f32
    %407 = vector.broadcast %cst_213 : f32 to vector<2x32xf32>
    %408 = arith.mulf %407, %406 : vector<2x32xf32>
    %cst_214 = arith.constant 5.000000e-01 : f32
    %409 = vector.broadcast %cst_214 : f32 to vector<2x32xf32>
    %410 = arith.addf %408, %409 : vector<2x32xf32>
    %411 = vector.extract_strided_slice %396 {offsets = [0, 32], sizes = [2, 32], strides = [1, 1]} : vector<2x128xf32> to vector<2x32xf32>
    %cst_215 = arith.constant 5.000000e-01 : f32
    %412 = vector.broadcast %cst_215 : f32 to vector<2x32xf32>
    %413 = arith.mulf %412, %411 : vector<2x32xf32>
    %414 = math.tanh %413 : vector<2x32xf32>
    %cst_216 = arith.constant 5.000000e-01 : f32
    %415 = vector.broadcast %cst_216 : f32 to vector<2x32xf32>
    %416 = arith.mulf %415, %414 : vector<2x32xf32>
    %cst_217 = arith.constant 5.000000e-01 : f32
    %417 = vector.broadcast %cst_217 : f32 to vector<2x32xf32>
    %418 = arith.addf %416, %417 : vector<2x32xf32>
    %419 = vector.extract_strided_slice %396 {offsets = [0, 64], sizes = [2, 32], strides = [1, 1]} : vector<2x128xf32> to vector<2x32xf32>
    %420 = math.tanh %419 : vector<2x32xf32>
    %421 = vector.extract_strided_slice %396 {offsets = [0, 96], sizes = [2, 32], strides = [1, 1]} : vector<2x128xf32> to vector<2x32xf32>
    %cst_218 = arith.constant 5.000000e-01 : f32
    %422 = vector.broadcast %cst_218 : f32 to vector<2x32xf32>
    %423 = arith.mulf %422, %421 : vector<2x32xf32>
    %424 = math.tanh %423 : vector<2x32xf32>
    %cst_219 = arith.constant 5.000000e-01 : f32
    %425 = vector.broadcast %cst_219 : f32 to vector<2x32xf32>
    %426 = arith.mulf %425, %424 : vector<2x32xf32>
    %cst_220 = arith.constant 5.000000e-01 : f32
    %427 = vector.broadcast %cst_220 : f32 to vector<2x32xf32>
    %428 = arith.addf %426, %427 : vector<2x32xf32>
    %429 = arith.mulf %418, %402 : vector<2x32xf32>
    %430 = arith.mulf %410, %420 : vector<2x32xf32>
    %431 = arith.addf %429, %430 : vector<2x32xf32>
    %432 = math.tanh %431 : vector<2x32xf32>
    %433 = arith.mulf %428, %432 : vector<2x32xf32>
    %c0_221 = arith.constant 0 : index
    %c0_222 = arith.constant 0 : index
    %434 = vector.load %arg10[%c0_221, %c0_222] : memref<2x32xf32, #tpu.memory_space<vmem>>, vector<2x32xf32>
    %435 = vector.extract_strided_slice %401 {offsets = [0, 0], sizes = [2, 32], strides = [1, 1]} : vector<2x128xf32> to vector<2x32xf32>
    %cst_223 = arith.constant 5.000000e-01 : f32
    %436 = vector.broadcast %cst_223 : f32 to vector<2x32xf32>
    %437 = arith.mulf %436, %435 : vector<2x32xf32>
    %438 = math.tanh %437 : vector<2x32xf32>
    %cst_224 = arith.constant 5.000000e-01 : f32
    %439 = vector.broadcast %cst_224 : f32 to vector<2x32xf32>
    %440 = arith.mulf %439, %438 : vector<2x32xf32>
    %cst_225 = arith.constant 5.000000e-01 : f32
    %441 = vector.broadcast %cst_225 : f32 to vector<2x32xf32>
    %442 = arith.addf %440, %441 : vector<2x32xf32>
    %443 = vector.extract_strided_slice %401 {offsets = [0, 32], sizes = [2, 32], strides = [1, 1]} : vector<2x128xf32> to vector<2x32xf32>
    %cst_226 = arith.constant 5.000000e-01 : f32
    %444 = vector.broadcast %cst_226 : f32 to vector<2x32xf32>
    %445 = arith.mulf %444, %443 : vector<2x32xf32>
    %446 = math.tanh %445 : vector<2x32xf32>
    %cst_227 = arith.constant 5.000000e-01 : f32
    %447 = vector.broadcast %cst_227 : f32 to vector<2x32xf32>
    %448 = arith.mulf %447, %446 : vector<2x32xf32>
    %cst_228 = arith.constant 5.000000e-01 : f32
    %449 = vector.broadcast %cst_228 : f32 to vector<2x32xf32>
    %450 = arith.addf %448, %449 : vector<2x32xf32>
    %451 = vector.extract_strided_slice %401 {offsets = [0, 64], sizes = [2, 32], strides = [1, 1]} : vector<2x128xf32> to vector<2x32xf32>
    %452 = math.tanh %451 : vector<2x32xf32>
    %453 = vector.extract_strided_slice %401 {offsets = [0, 96], sizes = [2, 32], strides = [1, 1]} : vector<2x128xf32> to vector<2x32xf32>
    %cst_229 = arith.constant 5.000000e-01 : f32
    %454 = vector.broadcast %cst_229 : f32 to vector<2x32xf32>
    %455 = arith.mulf %454, %453 : vector<2x32xf32>
    %456 = math.tanh %455 : vector<2x32xf32>
    %cst_230 = arith.constant 5.000000e-01 : f32
    %457 = vector.broadcast %cst_230 : f32 to vector<2x32xf32>
    %458 = arith.mulf %457, %456 : vector<2x32xf32>
    %cst_231 = arith.constant 5.000000e-01 : f32
    %459 = vector.broadcast %cst_231 : f32 to vector<2x32xf32>
    %460 = arith.addf %458, %459 : vector<2x32xf32>
    %461 = arith.mulf %450, %434 : vector<2x32xf32>
    %462 = arith.mulf %442, %452 : vector<2x32xf32>
    %463 = arith.addf %461, %462 : vector<2x32xf32>
    %464 = math.tanh %463 : vector<2x32xf32>
    %465 = arith.mulf %460, %464 : vector<2x32xf32>
    %c0_232 = arith.constant 0 : index
    %c0_233 = arith.constant 0 : index
    %466 = vector.load %arg7[%c0_232, %c0_233] : memref<2x32xf32, #tpu.memory_space<vmem>>, vector<2x32xf32>
    tpu.vector_store %arg7[%c0_232, %c0_233], %433 {strides = array<i32>} : memref<2x32xf32, #tpu.memory_space<vmem>>, vector<2x32xf32>,
    %c0_234 = arith.constant 0 : index
    %c0_235 = arith.constant 0 : index
    %467 = vector.load %arg8[%c0_234, %c0_235] : memref<2x32xf32, #tpu.memory_space<vmem>>, vector<2x32xf32>
    tpu.vector_store %arg8[%c0_234, %c0_235], %431 {strides = array<i32>} : memref<2x32xf32, #tpu.memory_space<vmem>>, vector<2x32xf32>,
    %c0_236 = arith.constant 0 : index
    %c0_237 = arith.constant 0 : index
    %468 = vector.load %arg9[%c0_236, %c0_237] : memref<2x32xf32, #tpu.memory_space<vmem>>, vector<2x32xf32>
    tpu.vector_store %arg9[%c0_236, %c0_237], %465 {strides = array<i32>} : memref<2x32xf32, #tpu.memory_space<vmem>>, vector<2x32xf32>,
    %c0_238 = arith.constant 0 : index
    %c0_239 = arith.constant 0 : index
    %469 = vector.load %arg10[%c0_238, %c0_239] : memref<2x32xf32, #tpu.memory_space<vmem>>, vector<2x32xf32>
    tpu.vector_store %arg10[%c0_238, %c0_239], %463 {strides = array<i32>} : memref<2x32xf32, #tpu.memory_space<vmem>>, vector<2x32xf32>,
    %470 = arith.index_cast %c4_i32 : i32 to index
    %c0_240 = arith.constant 0 : index
    %c0_241 = arith.constant 0 : index
    %471 = vector.load %arg5[%470, %c0_240, %c0_241] : memref<8x2x32xf32, #tpu.memory_space<vmem>>, vector<1x2x32xf32>
    %472 = vector.shape_cast %471 : vector<1x2x32xf32> to vector<2x32xf32>
    %473 = vector.shape_cast %433 : vector<2x32xf32> to vector<1x2x32xf32>
    tpu.vector_store %arg5[%470, %c0_240, %c0_241], %473 {strides = array<i32>} : memref<8x2x32xf32, #tpu.memory_space<vmem>>, vector<1x2x32xf32>,
    %474 = arith.index_cast %383 : i32 to index
    %c0_242 = arith.constant 0 : index
    %c0_243 = arith.constant 0 : index
    %475 = vector.load %arg6[%474, %c0_242, %c0_243] : memref<8x2x32xf32, #tpu.memory_space<vmem>>, vector<1x2x32xf32>
    %476 = vector.shape_cast %475 : vector<1x2x32xf32> to vector<2x32xf32>
    %477 = vector.shape_cast %465 : vector<2x32xf32> to vector<1x2x32xf32>
    tpu.vector_store %arg6[%474, %c0_242, %c0_243], %477 {strides = array<i32>} : memref<8x2x32xf32, #tpu.memory_space<vmem>>, vector<1x2x32xf32>,
    %c5_i32 = arith.constant 5 : i32
    %c7_i32_244 = arith.constant 7 : i32
    %478 = arith.subi %c7_i32_244, %c5_i32 : i32
    %c0_245 = arith.constant 0 : index
    %c0_246 = arith.constant 0 : index
    %479 = vector.load %arg7[%c0_245, %c0_246] : memref<2x32xf32, #tpu.memory_space<vmem>>, vector<2x32xf32>
    %480 = arith.truncf %479 : vector<2x32xf32> to vector<2x32xbf16>
    %c0_247 = arith.constant 0 : index
    %c0_248 = arith.constant 0 : index
    %481 = vector.load %arg3[%c0_247, %c0_248] : memref<32x128xbf16, #tpu.memory_space<vmem>>, vector<32x128xbf16>
    %cst_249 = arith.constant dense<0.000000e+00> : vector<2x128xf32>
    %482 = tpu.matmul %480, %481, %cst_249 {dimension_numbers = #tpu.dot_dimension_numbers<[1], [0], [0], [1], [0, 0, 1, 1], [], []>} : vector<2x32xbf16>, vector<32x128xbf16>, vector<2x128xf32> -> vector<2x128xf32>
    %c0_250 = arith.constant 0 : index
    %c0_251 = arith.constant 0 : index
    %483 = vector.load %arg9[%c0_250, %c0_251] : memref<2x32xf32, #tpu.memory_space<vmem>>, vector<2x32xf32>
    %484 = arith.truncf %483 : vector<2x32xf32> to vector<2x32xbf16>
    %c0_252 = arith.constant 0 : index
    %c0_253 = arith.constant 0 : index
    %485 = vector.load %arg4[%c0_252, %c0_253] : memref<32x128xbf16, #tpu.memory_space<vmem>>, vector<32x128xbf16>
    %cst_254 = arith.constant dense<0.000000e+00> : vector<2x128xf32>
    %486 = tpu.matmul %484, %485, %cst_254 {dimension_numbers = #tpu.dot_dimension_numbers<[1], [0], [0], [1], [0, 0, 1, 1], [], []>} : vector<2x32xbf16>, vector<32x128xbf16>, vector<2x128xf32> -> vector<2x128xf32>
    %487 = arith.index_cast %c5_i32 : i32 to index
    %c0_255 = arith.constant 0 : index
    %c0_256 = arith.constant 0 : index
    %488 = vector.load %arg1[%487, %c0_255, %c0_256] : memref<8x2x128xbf16, #tpu.memory_space<vmem>>, vector<1x2x128xbf16>
    %489 = vector.shape_cast %488 : vector<1x2x128xbf16> to vector<2x128xbf16>
    %490 = arith.extf %489 : vector<2x128xbf16> to vector<2x128xf32>
    %491 = arith.addf %490, %482 : vector<2x128xf32>
    %492 = arith.index_cast %478 : i32 to index
    %c0_257 = arith.constant 0 : index
    %c0_258 = arith.constant 0 : index
    %493 = vector.load %arg2[%492, %c0_257, %c0_258] : memref<8x2x128xbf16, #tpu.memory_space<vmem>>, vector<1x2x128xbf16>
    %494 = vector.shape_cast %493 : vector<1x2x128xbf16> to vector<2x128xbf16>
    %495 = arith.extf %494 : vector<2x128xbf16> to vector<2x128xf32>
    %496 = arith.addf %495, %486 : vector<2x128xf32>
    %c0_259 = arith.constant 0 : index
    %c0_260 = arith.constant 0 : index
    %497 = vector.load %arg8[%c0_259, %c0_260] : memref<2x32xf32, #tpu.memory_space<vmem>>, vector<2x32xf32>
    %498 = vector.extract_strided_slice %491 {offsets = [0, 0], sizes = [2, 32], strides = [1, 1]} : vector<2x128xf32> to vector<2x32xf32>
    %cst_261 = arith.constant 5.000000e-01 : f32
    %499 = vector.broadcast %cst_261 : f32 to vector<2x32xf32>
    %500 = arith.mulf %499, %498 : vector<2x32xf32>
    %501 = math.tanh %500 : vector<2x32xf32>
    %cst_262 = arith.constant 5.000000e-01 : f32
    %502 = vector.broadcast %cst_262 : f32 to vector<2x32xf32>
    %503 = arith.mulf %502, %501 : vector<2x32xf32>
    %cst_263 = arith.constant 5.000000e-01 : f32
    %504 = vector.broadcast %cst_263 : f32 to vector<2x32xf32>
    %505 = arith.addf %503, %504 : vector<2x32xf32>
    %506 = vector.extract_strided_slice %491 {offsets = [0, 32], sizes = [2, 32], strides = [1, 1]} : vector<2x128xf32> to vector<2x32xf32>
    %cst_264 = arith.constant 5.000000e-01 : f32
    %507 = vector.broadcast %cst_264 : f32 to vector<2x32xf32>
    %508 = arith.mulf %507, %506 : vector<2x32xf32>
    %509 = math.tanh %508 : vector<2x32xf32>
    %cst_265 = arith.constant 5.000000e-01 : f32
    %510 = vector.broadcast %cst_265 : f32 to vector<2x32xf32>
    %511 = arith.mulf %510, %509 : vector<2x32xf32>
    %cst_266 = arith.constant 5.000000e-01 : f32
    %512 = vector.broadcast %cst_266 : f32 to vector<2x32xf32>
    %513 = arith.addf %511, %512 : vector<2x32xf32>
    %514 = vector.extract_strided_slice %491 {offsets = [0, 64], sizes = [2, 32], strides = [1, 1]} : vector<2x128xf32> to vector<2x32xf32>
    %515 = math.tanh %514 : vector<2x32xf32>
    %516 = vector.extract_strided_slice %491 {offsets = [0, 96], sizes = [2, 32], strides = [1, 1]} : vector<2x128xf32> to vector<2x32xf32>
    %cst_267 = arith.constant 5.000000e-01 : f32
    %517 = vector.broadcast %cst_267 : f32 to vector<2x32xf32>
    %518 = arith.mulf %517, %516 : vector<2x32xf32>
    %519 = math.tanh %518 : vector<2x32xf32>
    %cst_268 = arith.constant 5.000000e-01 : f32
    %520 = vector.broadcast %cst_268 : f32 to vector<2x32xf32>
    %521 = arith.mulf %520, %519 : vector<2x32xf32>
    %cst_269 = arith.constant 5.000000e-01 : f32
    %522 = vector.broadcast %cst_269 : f32 to vector<2x32xf32>
    %523 = arith.addf %521, %522 : vector<2x32xf32>
    %524 = arith.mulf %513, %497 : vector<2x32xf32>
    %525 = arith.mulf %505, %515 : vector<2x32xf32>
    %526 = arith.addf %524, %525 : vector<2x32xf32>
    %527 = math.tanh %526 : vector<2x32xf32>
    %528 = arith.mulf %523, %527 : vector<2x32xf32>
    %c0_270 = arith.constant 0 : index
    %c0_271 = arith.constant 0 : index
    %529 = vector.load %arg10[%c0_270, %c0_271] : memref<2x32xf32, #tpu.memory_space<vmem>>, vector<2x32xf32>
    %530 = vector.extract_strided_slice %496 {offsets = [0, 0], sizes = [2, 32], strides = [1, 1]} : vector<2x128xf32> to vector<2x32xf32>
    %cst_272 = arith.constant 5.000000e-01 : f32
    %531 = vector.broadcast %cst_272 : f32 to vector<2x32xf32>
    %532 = arith.mulf %531, %530 : vector<2x32xf32>
    %533 = math.tanh %532 : vector<2x32xf32>
    %cst_273 = arith.constant 5.000000e-01 : f32
    %534 = vector.broadcast %cst_273 : f32 to vector<2x32xf32>
    %535 = arith.mulf %534, %533 : vector<2x32xf32>
    %cst_274 = arith.constant 5.000000e-01 : f32
    %536 = vector.broadcast %cst_274 : f32 to vector<2x32xf32>
    %537 = arith.addf %535, %536 : vector<2x32xf32>
    %538 = vector.extract_strided_slice %496 {offsets = [0, 32], sizes = [2, 32], strides = [1, 1]} : vector<2x128xf32> to vector<2x32xf32>
    %cst_275 = arith.constant 5.000000e-01 : f32
    %539 = vector.broadcast %cst_275 : f32 to vector<2x32xf32>
    %540 = arith.mulf %539, %538 : vector<2x32xf32>
    %541 = math.tanh %540 : vector<2x32xf32>
    %cst_276 = arith.constant 5.000000e-01 : f32
    %542 = vector.broadcast %cst_276 : f32 to vector<2x32xf32>
    %543 = arith.mulf %542, %541 : vector<2x32xf32>
    %cst_277 = arith.constant 5.000000e-01 : f32
    %544 = vector.broadcast %cst_277 : f32 to vector<2x32xf32>
    %545 = arith.addf %543, %544 : vector<2x32xf32>
    %546 = vector.extract_strided_slice %496 {offsets = [0, 64], sizes = [2, 32], strides = [1, 1]} : vector<2x128xf32> to vector<2x32xf32>
    %547 = math.tanh %546 : vector<2x32xf32>
    %548 = vector.extract_strided_slice %496 {offsets = [0, 96], sizes = [2, 32], strides = [1, 1]} : vector<2x128xf32> to vector<2x32xf32>
    %cst_278 = arith.constant 5.000000e-01 : f32
    %549 = vector.broadcast %cst_278 : f32 to vector<2x32xf32>
    %550 = arith.mulf %549, %548 : vector<2x32xf32>
    %551 = math.tanh %550 : vector<2x32xf32>
    %cst_279 = arith.constant 5.000000e-01 : f32
    %552 = vector.broadcast %cst_279 : f32 to vector<2x32xf32>
    %553 = arith.mulf %552, %551 : vector<2x32xf32>
    %cst_280 = arith.constant 5.000000e-01 : f32
    %554 = vector.broadcast %cst_280 : f32 to vector<2x32xf32>
    %555 = arith.addf %553, %554 : vector<2x32xf32>
    %556 = arith.mulf %545, %529 : vector<2x32xf32>
    %557 = arith.mulf %537, %547 : vector<2x32xf32>
    %558 = arith.addf %556, %557 : vector<2x32xf32>
    %559 = math.tanh %558 : vector<2x32xf32>
    %560 = arith.mulf %555, %559 : vector<2x32xf32>
    %c0_281 = arith.constant 0 : index
    %c0_282 = arith.constant 0 : index
    %561 = vector.load %arg7[%c0_281, %c0_282] : memref<2x32xf32, #tpu.memory_space<vmem>>, vector<2x32xf32>
    tpu.vector_store %arg7[%c0_281, %c0_282], %528 {strides = array<i32>} : memref<2x32xf32, #tpu.memory_space<vmem>>, vector<2x32xf32>,
    %c0_283 = arith.constant 0 : index
    %c0_284 = arith.constant 0 : index
    %562 = vector.load %arg8[%c0_283, %c0_284] : memref<2x32xf32, #tpu.memory_space<vmem>>, vector<2x32xf32>
    tpu.vector_store %arg8[%c0_283, %c0_284], %526 {strides = array<i32>} : memref<2x32xf32, #tpu.memory_space<vmem>>, vector<2x32xf32>,
    %c0_285 = arith.constant 0 : index
    %c0_286 = arith.constant 0 : index
    %563 = vector.load %arg9[%c0_285, %c0_286] : memref<2x32xf32, #tpu.memory_space<vmem>>, vector<2x32xf32>
    tpu.vector_store %arg9[%c0_285, %c0_286], %560 {strides = array<i32>} : memref<2x32xf32, #tpu.memory_space<vmem>>, vector<2x32xf32>,
    %c0_287 = arith.constant 0 : index
    %c0_288 = arith.constant 0 : index
    %564 = vector.load %arg10[%c0_287, %c0_288] : memref<2x32xf32, #tpu.memory_space<vmem>>, vector<2x32xf32>
    tpu.vector_store %arg10[%c0_287, %c0_288], %558 {strides = array<i32>} : memref<2x32xf32, #tpu.memory_space<vmem>>, vector<2x32xf32>,
    %565 = arith.index_cast %c5_i32 : i32 to index
    %c0_289 = arith.constant 0 : index
    %c0_290 = arith.constant 0 : index
    %566 = vector.load %arg5[%565, %c0_289, %c0_290] : memref<8x2x32xf32, #tpu.memory_space<vmem>>, vector<1x2x32xf32>
    %567 = vector.shape_cast %566 : vector<1x2x32xf32> to vector<2x32xf32>
    %568 = vector.shape_cast %528 : vector<2x32xf32> to vector<1x2x32xf32>
    tpu.vector_store %arg5[%565, %c0_289, %c0_290], %568 {strides = array<i32>} : memref<8x2x32xf32, #tpu.memory_space<vmem>>, vector<1x2x32xf32>,
    %569 = arith.index_cast %478 : i32 to index
    %c0_291 = arith.constant 0 : index
    %c0_292 = arith.constant 0 : index
    %570 = vector.load %arg6[%569, %c0_291, %c0_292] : memref<8x2x32xf32, #tpu.memory_space<vmem>>, vector<1x2x32xf32>
    %571 = vector.shape_cast %570 : vector<1x2x32xf32> to vector<2x32xf32>
    %572 = vector.shape_cast %560 : vector<2x32xf32> to vector<1x2x32xf32>
    tpu.vector_store %arg6[%569, %c0_291, %c0_292], %572 {strides = array<i32>} : memref<8x2x32xf32, #tpu.memory_space<vmem>>, vector<1x2x32xf32>,
    %c6_i32 = arith.constant 6 : i32
    %c7_i32_293 = arith.constant 7 : i32
    %573 = arith.subi %c7_i32_293, %c6_i32 : i32
    %c0_294 = arith.constant 0 : index
    %c0_295 = arith.constant 0 : index
    %574 = vector.load %arg7[%c0_294, %c0_295] : memref<2x32xf32, #tpu.memory_space<vmem>>, vector<2x32xf32>
    %575 = arith.truncf %574 : vector<2x32xf32> to vector<2x32xbf16>
    %c0_296 = arith.constant 0 : index
    %c0_297 = arith.constant 0 : index
    %576 = vector.load %arg3[%c0_296, %c0_297] : memref<32x128xbf16, #tpu.memory_space<vmem>>, vector<32x128xbf16>
    %cst_298 = arith.constant dense<0.000000e+00> : vector<2x128xf32>
    %577 = tpu.matmul %575, %576, %cst_298 {dimension_numbers = #tpu.dot_dimension_numbers<[1], [0], [0], [1], [0, 0, 1, 1], [], []>} : vector<2x32xbf16>, vector<32x128xbf16>, vector<2x128xf32> -> vector<2x128xf32>
    %c0_299 = arith.constant 0 : index
    %c0_300 = arith.constant 0 : index
    %578 = vector.load %arg9[%c0_299, %c0_300] : memref<2x32xf32, #tpu.memory_space<vmem>>, vector<2x32xf32>
    %579 = arith.truncf %578 : vector<2x32xf32> to vector<2x32xbf16>
    %c0_301 = arith.constant 0 : index
    %c0_302 = arith.constant 0 : index
    %580 = vector.load %arg4[%c0_301, %c0_302] : memref<32x128xbf16, #tpu.memory_space<vmem>>, vector<32x128xbf16>
    %cst_303 = arith.constant dense<0.000000e+00> : vector<2x128xf32>
    %581 = tpu.matmul %579, %580, %cst_303 {dimension_numbers = #tpu.dot_dimension_numbers<[1], [0], [0], [1], [0, 0, 1, 1], [], []>} : vector<2x32xbf16>, vector<32x128xbf16>, vector<2x128xf32> -> vector<2x128xf32>
    %582 = arith.index_cast %c6_i32 : i32 to index
    %c0_304 = arith.constant 0 : index
    %c0_305 = arith.constant 0 : index
    %583 = vector.load %arg1[%582, %c0_304, %c0_305] : memref<8x2x128xbf16, #tpu.memory_space<vmem>>, vector<1x2x128xbf16>
    %584 = vector.shape_cast %583 : vector<1x2x128xbf16> to vector<2x128xbf16>
    %585 = arith.extf %584 : vector<2x128xbf16> to vector<2x128xf32>
    %586 = arith.addf %585, %577 : vector<2x128xf32>
    %587 = arith.index_cast %573 : i32 to index
    %c0_306 = arith.constant 0 : index
    %c0_307 = arith.constant 0 : index
    %588 = vector.load %arg2[%587, %c0_306, %c0_307] : memref<8x2x128xbf16, #tpu.memory_space<vmem>>, vector<1x2x128xbf16>
    %589 = vector.shape_cast %588 : vector<1x2x128xbf16> to vector<2x128xbf16>
    %590 = arith.extf %589 : vector<2x128xbf16> to vector<2x128xf32>
    %591 = arith.addf %590, %581 : vector<2x128xf32>
    %c0_308 = arith.constant 0 : index
    %c0_309 = arith.constant 0 : index
    %592 = vector.load %arg8[%c0_308, %c0_309] : memref<2x32xf32, #tpu.memory_space<vmem>>, vector<2x32xf32>
    %593 = vector.extract_strided_slice %586 {offsets = [0, 0], sizes = [2, 32], strides = [1, 1]} : vector<2x128xf32> to vector<2x32xf32>
    %cst_310 = arith.constant 5.000000e-01 : f32
    %594 = vector.broadcast %cst_310 : f32 to vector<2x32xf32>
    %595 = arith.mulf %594, %593 : vector<2x32xf32>
    %596 = math.tanh %595 : vector<2x32xf32>
    %cst_311 = arith.constant 5.000000e-01 : f32
    %597 = vector.broadcast %cst_311 : f32 to vector<2x32xf32>
    %598 = arith.mulf %597, %596 : vector<2x32xf32>
    %cst_312 = arith.constant 5.000000e-01 : f32
    %599 = vector.broadcast %cst_312 : f32 to vector<2x32xf32>
    %600 = arith.addf %598, %599 : vector<2x32xf32>
    %601 = vector.extract_strided_slice %586 {offsets = [0, 32], sizes = [2, 32], strides = [1, 1]} : vector<2x128xf32> to vector<2x32xf32>
    %cst_313 = arith.constant 5.000000e-01 : f32
    %602 = vector.broadcast %cst_313 : f32 to vector<2x32xf32>
    %603 = arith.mulf %602, %601 : vector<2x32xf32>
    %604 = math.tanh %603 : vector<2x32xf32>
    %cst_314 = arith.constant 5.000000e-01 : f32
    %605 = vector.broadcast %cst_314 : f32 to vector<2x32xf32>
    %606 = arith.mulf %605, %604 : vector<2x32xf32>
    %cst_315 = arith.constant 5.000000e-01 : f32
    %607 = vector.broadcast %cst_315 : f32 to vector<2x32xf32>
    %608 = arith.addf %606, %607 : vector<2x32xf32>
    %609 = vector.extract_strided_slice %586 {offsets = [0, 64], sizes = [2, 32], strides = [1, 1]} : vector<2x128xf32> to vector<2x32xf32>
    %610 = math.tanh %609 : vector<2x32xf32>
    %611 = vector.extract_strided_slice %586 {offsets = [0, 96], sizes = [2, 32], strides = [1, 1]} : vector<2x128xf32> to vector<2x32xf32>
    %cst_316 = arith.constant 5.000000e-01 : f32
    %612 = vector.broadcast %cst_316 : f32 to vector<2x32xf32>
    %613 = arith.mulf %612, %611 : vector<2x32xf32>
    %614 = math.tanh %613 : vector<2x32xf32>
    %cst_317 = arith.constant 5.000000e-01 : f32
    %615 = vector.broadcast %cst_317 : f32 to vector<2x32xf32>
    %616 = arith.mulf %615, %614 : vector<2x32xf32>
    %cst_318 = arith.constant 5.000000e-01 : f32
    %617 = vector.broadcast %cst_318 : f32 to vector<2x32xf32>
    %618 = arith.addf %616, %617 : vector<2x32xf32>
    %619 = arith.mulf %608, %592 : vector<2x32xf32>
    %620 = arith.mulf %600, %610 : vector<2x32xf32>
    %621 = arith.addf %619, %620 : vector<2x32xf32>
    %622 = math.tanh %621 : vector<2x32xf32>
    %623 = arith.mulf %618, %622 : vector<2x32xf32>
    %c0_319 = arith.constant 0 : index
    %c0_320 = arith.constant 0 : index
    %624 = vector.load %arg10[%c0_319, %c0_320] : memref<2x32xf32, #tpu.memory_space<vmem>>, vector<2x32xf32>
    %625 = vector.extract_strided_slice %591 {offsets = [0, 0], sizes = [2, 32], strides = [1, 1]} : vector<2x128xf32> to vector<2x32xf32>
    %cst_321 = arith.constant 5.000000e-01 : f32
    %626 = vector.broadcast %cst_321 : f32 to vector<2x32xf32>
    %627 = arith.mulf %626, %625 : vector<2x32xf32>
    %628 = math.tanh %627 : vector<2x32xf32>
    %cst_322 = arith.constant 5.000000e-01 : f32
    %629 = vector.broadcast %cst_322 : f32 to vector<2x32xf32>
    %630 = arith.mulf %629, %628 : vector<2x32xf32>
    %cst_323 = arith.constant 5.000000e-01 : f32
    %631 = vector.broadcast %cst_323 : f32 to vector<2x32xf32>
    %632 = arith.addf %630, %631 : vector<2x32xf32>
    %633 = vector.extract_strided_slice %591 {offsets = [0, 32], sizes = [2, 32], strides = [1, 1]} : vector<2x128xf32> to vector<2x32xf32>
    %cst_324 = arith.constant 5.000000e-01 : f32
    %634 = vector.broadcast %cst_324 : f32 to vector<2x32xf32>
    %635 = arith.mulf %634, %633 : vector<2x32xf32>
    %636 = math.tanh %635 : vector<2x32xf32>
    %cst_325 = arith.constant 5.000000e-01 : f32
    %637 = vector.broadcast %cst_325 : f32 to vector<2x32xf32>
    %638 = arith.mulf %637, %636 : vector<2x32xf32>
    %cst_326 = arith.constant 5.000000e-01 : f32
    %639 = vector.broadcast %cst_326 : f32 to vector<2x32xf32>
    %640 = arith.addf %638, %639 : vector<2x32xf32>
    %641 = vector.extract_strided_slice %591 {offsets = [0, 64], sizes = [2, 32], strides = [1, 1]} : vector<2x128xf32> to vector<2x32xf32>
    %642 = math.tanh %641 : vector<2x32xf32>
    %643 = vector.extract_strided_slice %591 {offsets = [0, 96], sizes = [2, 32], strides = [1, 1]} : vector<2x128xf32> to vector<2x32xf32>
    %cst_327 = arith.constant 5.000000e-01 : f32
    %644 = vector.broadcast %cst_327 : f32 to vector<2x32xf32>
    %645 = arith.mulf %644, %643 : vector<2x32xf32>
    %646 = math.tanh %645 : vector<2x32xf32>
    %cst_328 = arith.constant 5.000000e-01 : f32
    %647 = vector.broadcast %cst_328 : f32 to vector<2x32xf32>
    %648 = arith.mulf %647, %646 : vector<2x32xf32>
    %cst_329 = arith.constant 5.000000e-01 : f32
    %649 = vector.broadcast %cst_329 : f32 to vector<2x32xf32>
    %650 = arith.addf %648, %649 : vector<2x32xf32>
    %651 = arith.mulf %640, %624 : vector<2x32xf32>
    %652 = arith.mulf %632, %642 : vector<2x32xf32>
    %653 = arith.addf %651, %652 : vector<2x32xf32>
    %654 = math.tanh %653 : vector<2x32xf32>
    %655 = arith.mulf %650, %654 : vector<2x32xf32>
    %c0_330 = arith.constant 0 : index
    %c0_331 = arith.constant 0 : index
    %656 = vector.load %arg7[%c0_330, %c0_331] : memref<2x32xf32, #tpu.memory_space<vmem>>, vector<2x32xf32>
    tpu.vector_store %arg7[%c0_330, %c0_331], %623 {strides = array<i32>} : memref<2x32xf32, #tpu.memory_space<vmem>>, vector<2x32xf32>,
    %c0_332 = arith.constant 0 : index
    %c0_333 = arith.constant 0 : index
    %657 = vector.load %arg8[%c0_332, %c0_333] : memref<2x32xf32, #tpu.memory_space<vmem>>, vector<2x32xf32>
    tpu.vector_store %arg8[%c0_332, %c0_333], %621 {strides = array<i32>} : memref<2x32xf32, #tpu.memory_space<vmem>>, vector<2x32xf32>,
    %c0_334 = arith.constant 0 : index
    %c0_335 = arith.constant 0 : index
    %658 = vector.load %arg9[%c0_334, %c0_335] : memref<2x32xf32, #tpu.memory_space<vmem>>, vector<2x32xf32>
    tpu.vector_store %arg9[%c0_334, %c0_335], %655 {strides = array<i32>} : memref<2x32xf32, #tpu.memory_space<vmem>>, vector<2x32xf32>,
    %c0_336 = arith.constant 0 : index
    %c0_337 = arith.constant 0 : index
    %659 = vector.load %arg10[%c0_336, %c0_337] : memref<2x32xf32, #tpu.memory_space<vmem>>, vector<2x32xf32>
    tpu.vector_store %arg10[%c0_336, %c0_337], %653 {strides = array<i32>} : memref<2x32xf32, #tpu.memory_space<vmem>>, vector<2x32xf32>,
    %660 = arith.index_cast %c6_i32 : i32 to index
    %c0_338 = arith.constant 0 : index
    %c0_339 = arith.constant 0 : index
    %661 = vector.load %arg5[%660, %c0_338, %c0_339] : memref<8x2x32xf32, #tpu.memory_space<vmem>>, vector<1x2x32xf32>
    %662 = vector.shape_cast %661 : vector<1x2x32xf32> to vector<2x32xf32>
    %663 = vector.shape_cast %623 : vector<2x32xf32> to vector<1x2x32xf32>
    tpu.vector_store %arg5[%660, %c0_338, %c0_339], %663 {strides = array<i32>} : memref<8x2x32xf32, #tpu.memory_space<vmem>>, vector<1x2x32xf32>,
    %664 = arith.index_cast %573 : i32 to index
    %c0_340 = arith.constant 0 : index
    %c0_341 = arith.constant 0 : index
    %665 = vector.load %arg6[%664, %c0_340, %c0_341] : memref<8x2x32xf32, #tpu.memory_space<vmem>>, vector<1x2x32xf32>
    %666 = vector.shape_cast %665 : vector<1x2x32xf32> to vector<2x32xf32>
    %667 = vector.shape_cast %655 : vector<2x32xf32> to vector<1x2x32xf32>
    tpu.vector_store %arg6[%664, %c0_340, %c0_341], %667 {strides = array<i32>} : memref<8x2x32xf32, #tpu.memory_space<vmem>>, vector<1x2x32xf32>,
    %c7_i32_342 = arith.constant 7 : i32
    %c7_i32_343 = arith.constant 7 : i32
    %668 = arith.subi %c7_i32_343, %c7_i32_342 : i32
    %c0_344 = arith.constant 0 : index
    %c0_345 = arith.constant 0 : index
    %669 = vector.load %arg7[%c0_344, %c0_345] : memref<2x32xf32, #tpu.memory_space<vmem>>, vector<2x32xf32>
    %670 = arith.truncf %669 : vector<2x32xf32> to vector<2x32xbf16>
    %c0_346 = arith.constant 0 : index
    %c0_347 = arith.constant 0 : index
    %671 = vector.load %arg3[%c0_346, %c0_347] : memref<32x128xbf16, #tpu.memory_space<vmem>>, vector<32x128xbf16>
    %cst_348 = arith.constant dense<0.000000e+00> : vector<2x128xf32>
    %672 = tpu.matmul %670, %671, %cst_348 {dimension_numbers = #tpu.dot_dimension_numbers<[1], [0], [0], [1], [0, 0, 1, 1], [], []>} : vector<2x32xbf16>, vector<32x128xbf16>, vector<2x128xf32> -> vector<2x128xf32>
    %c0_349 = arith.constant 0 : index
    %c0_350 = arith.constant 0 : index
    %673 = vector.load %arg9[%c0_349, %c0_350] : memref<2x32xf32, #tpu.memory_space<vmem>>, vector<2x32xf32>
    %674 = arith.truncf %673 : vector<2x32xf32> to vector<2x32xbf16>
    %c0_351 = arith.constant 0 : index
    %c0_352 = arith.constant 0 : index
    %675 = vector.load %arg4[%c0_351, %c0_352] : memref<32x128xbf16, #tpu.memory_space<vmem>>, vector<32x128xbf16>
    %cst_353 = arith.constant dense<0.000000e+00> : vector<2x128xf32>
    %676 = tpu.matmul %674, %675, %cst_353 {dimension_numbers = #tpu.dot_dimension_numbers<[1], [0], [0], [1], [0, 0, 1, 1], [], []>} : vector<2x32xbf16>, vector<32x128xbf16>, vector<2x128xf32> -> vector<2x128xf32>
    %677 = arith.index_cast %c7_i32_342 : i32 to index
    %c0_354 = arith.constant 0 : index
    %c0_355 = arith.constant 0 : index
    %678 = vector.load %arg1[%677, %c0_354, %c0_355] : memref<8x2x128xbf16, #tpu.memory_space<vmem>>, vector<1x2x128xbf16>
    %679 = vector.shape_cast %678 : vector<1x2x128xbf16> to vector<2x128xbf16>
    %680 = arith.extf %679 : vector<2x128xbf16> to vector<2x128xf32>
    %681 = arith.addf %680, %672 : vector<2x128xf32>
    %682 = arith.index_cast %668 : i32 to index
    %c0_356 = arith.constant 0 : index
    %c0_357 = arith.constant 0 : index
    %683 = vector.load %arg2[%682, %c0_356, %c0_357] : memref<8x2x128xbf16, #tpu.memory_space<vmem>>, vector<1x2x128xbf16>
    %684 = vector.shape_cast %683 : vector<1x2x128xbf16> to vector<2x128xbf16>
    %685 = arith.extf %684 : vector<2x128xbf16> to vector<2x128xf32>
    %686 = arith.addf %685, %676 : vector<2x128xf32>
    %c0_358 = arith.constant 0 : index
    %c0_359 = arith.constant 0 : index
    %687 = vector.load %arg8[%c0_358, %c0_359] : memref<2x32xf32, #tpu.memory_space<vmem>>, vector<2x32xf32>
    %688 = vector.extract_strided_slice %681 {offsets = [0, 0], sizes = [2, 32], strides = [1, 1]} : vector<2x128xf32> to vector<2x32xf32>
    %cst_360 = arith.constant 5.000000e-01 : f32
    %689 = vector.broadcast %cst_360 : f32 to vector<2x32xf32>
    %690 = arith.mulf %689, %688 : vector<2x32xf32>
    %691 = math.tanh %690 : vector<2x32xf32>
    %cst_361 = arith.constant 5.000000e-01 : f32
    %692 = vector.broadcast %cst_361 : f32 to vector<2x32xf32>
    %693 = arith.mulf %692, %691 : vector<2x32xf32>
    %cst_362 = arith.constant 5.000000e-01 : f32
    %694 = vector.broadcast %cst_362 : f32 to vector<2x32xf32>
    %695 = arith.addf %693, %694 : vector<2x32xf32>
    %696 = vector.extract_strided_slice %681 {offsets = [0, 32], sizes = [2, 32], strides = [1, 1]} : vector<2x128xf32> to vector<2x32xf32>
    %cst_363 = arith.constant 5.000000e-01 : f32
    %697 = vector.broadcast %cst_363 : f32 to vector<2x32xf32>
    %698 = arith.mulf %697, %696 : vector<2x32xf32>
    %699 = math.tanh %698 : vector<2x32xf32>
    %cst_364 = arith.constant 5.000000e-01 : f32
    %700 = vector.broadcast %cst_364 : f32 to vector<2x32xf32>
    %701 = arith.mulf %700, %699 : vector<2x32xf32>
    %cst_365 = arith.constant 5.000000e-01 : f32
    %702 = vector.broadcast %cst_365 : f32 to vector<2x32xf32>
    %703 = arith.addf %701, %702 : vector<2x32xf32>
    %704 = vector.extract_strided_slice %681 {offsets = [0, 64], sizes = [2, 32], strides = [1, 1]} : vector<2x128xf32> to vector<2x32xf32>
    %705 = math.tanh %704 : vector<2x32xf32>
    %706 = vector.extract_strided_slice %681 {offsets = [0, 96], sizes = [2, 32], strides = [1, 1]} : vector<2x128xf32> to vector<2x32xf32>
    %cst_366 = arith.constant 5.000000e-01 : f32
    %707 = vector.broadcast %cst_366 : f32 to vector<2x32xf32>
    %708 = arith.mulf %707, %706 : vector<2x32xf32>
    %709 = math.tanh %708 : vector<2x32xf32>
    %cst_367 = arith.constant 5.000000e-01 : f32
    %710 = vector.broadcast %cst_367 : f32 to vector<2x32xf32>
    %711 = arith.mulf %710, %709 : vector<2x32xf32>
    %cst_368 = arith.constant 5.000000e-01 : f32
    %712 = vector.broadcast %cst_368 : f32 to vector<2x32xf32>
    %713 = arith.addf %711, %712 : vector<2x32xf32>
    %714 = arith.mulf %703, %687 : vector<2x32xf32>
    %715 = arith.mulf %695, %705 : vector<2x32xf32>
    %716 = arith.addf %714, %715 : vector<2x32xf32>
    %717 = math.tanh %716 : vector<2x32xf32>
    %718 = arith.mulf %713, %717 : vector<2x32xf32>
    %c0_369 = arith.constant 0 : index
    %c0_370 = arith.constant 0 : index
    %719 = vector.load %arg10[%c0_369, %c0_370] : memref<2x32xf32, #tpu.memory_space<vmem>>, vector<2x32xf32>
    %720 = vector.extract_strided_slice %686 {offsets = [0, 0], sizes = [2, 32], strides = [1, 1]} : vector<2x128xf32> to vector<2x32xf32>
    %cst_371 = arith.constant 5.000000e-01 : f32
    %721 = vector.broadcast %cst_371 : f32 to vector<2x32xf32>
    %722 = arith.mulf %721, %720 : vector<2x32xf32>
    %723 = math.tanh %722 : vector<2x32xf32>
    %cst_372 = arith.constant 5.000000e-01 : f32
    %724 = vector.broadcast %cst_372 : f32 to vector<2x32xf32>
    %725 = arith.mulf %724, %723 : vector<2x32xf32>
    %cst_373 = arith.constant 5.000000e-01 : f32
    %726 = vector.broadcast %cst_373 : f32 to vector<2x32xf32>
    %727 = arith.addf %725, %726 : vector<2x32xf32>
    %728 = vector.extract_strided_slice %686 {offsets = [0, 32], sizes = [2, 32], strides = [1, 1]} : vector<2x128xf32> to vector<2x32xf32>
    %cst_374 = arith.constant 5.000000e-01 : f32
    %729 = vector.broadcast %cst_374 : f32 to vector<2x32xf32>
    %730 = arith.mulf %729, %728 : vector<2x32xf32>
    %731 = math.tanh %730 : vector<2x32xf32>
    %cst_375 = arith.constant 5.000000e-01 : f32
    %732 = vector.broadcast %cst_375 : f32 to vector<2x32xf32>
    %733 = arith.mulf %732, %731 : vector<2x32xf32>
    %cst_376 = arith.constant 5.000000e-01 : f32
    %734 = vector.broadcast %cst_376 : f32 to vector<2x32xf32>
    %735 = arith.addf %733, %734 : vector<2x32xf32>
    %736 = vector.extract_strided_slice %686 {offsets = [0, 64], sizes = [2, 32], strides = [1, 1]} : vector<2x128xf32> to vector<2x32xf32>
    %737 = math.tanh %736 : vector<2x32xf32>
    %738 = vector.extract_strided_slice %686 {offsets = [0, 96], sizes = [2, 32], strides = [1, 1]} : vector<2x128xf32> to vector<2x32xf32>
    %cst_377 = arith.constant 5.000000e-01 : f32
    %739 = vector.broadcast %cst_377 : f32 to vector<2x32xf32>
    %740 = arith.mulf %739, %738 : vector<2x32xf32>
    %741 = math.tanh %740 : vector<2x32xf32>
    %cst_378 = arith.constant 5.000000e-01 : f32
    %742 = vector.broadcast %cst_378 : f32 to vector<2x32xf32>
    %743 = arith.mulf %742, %741 : vector<2x32xf32>
    %cst_379 = arith.constant 5.000000e-01 : f32
    %744 = vector.broadcast %cst_379 : f32 to vector<2x32xf32>
    %745 = arith.addf %743, %744 : vector<2x32xf32>
    %746 = arith.mulf %735, %719 : vector<2x32xf32>
    %747 = arith.mulf %727, %737 : vector<2x32xf32>
    %748 = arith.addf %746, %747 : vector<2x32xf32>
    %749 = math.tanh %748 : vector<2x32xf32>
    %750 = arith.mulf %745, %749 : vector<2x32xf32>
    %c0_380 = arith.constant 0 : index
    %c0_381 = arith.constant 0 : index
    %751 = vector.load %arg7[%c0_380, %c0_381] : memref<2x32xf32, #tpu.memory_space<vmem>>, vector<2x32xf32>
    tpu.vector_store %arg7[%c0_380, %c0_381], %718 {strides = array<i32>} : memref<2x32xf32, #tpu.memory_space<vmem>>, vector<2x32xf32>,
    %c0_382 = arith.constant 0 : index
    %c0_383 = arith.constant 0 : index
    %752 = vector.load %arg8[%c0_382, %c0_383] : memref<2x32xf32, #tpu.memory_space<vmem>>, vector<2x32xf32>
    tpu.vector_store %arg8[%c0_382, %c0_383], %716 {strides = array<i32>} : memref<2x32xf32, #tpu.memory_space<vmem>>, vector<2x32xf32>,
    %c0_384 = arith.constant 0 : index
    %c0_385 = arith.constant 0 : index
    %753 = vector.load %arg9[%c0_384, %c0_385] : memref<2x32xf32, #tpu.memory_space<vmem>>, vector<2x32xf32>
    tpu.vector_store %arg9[%c0_384, %c0_385], %750 {strides = array<i32>} : memref<2x32xf32, #tpu.memory_space<vmem>>, vector<2x32xf32>,
    %c0_386 = arith.constant 0 : index
    %c0_387 = arith.constant 0 : index
    %754 = vector.load %arg10[%c0_386, %c0_387] : memref<2x32xf32, #tpu.memory_space<vmem>>, vector<2x32xf32>
    tpu.vector_store %arg10[%c0_386, %c0_387], %748 {strides = array<i32>} : memref<2x32xf32, #tpu.memory_space<vmem>>, vector<2x32xf32>,
    %755 = arith.index_cast %c7_i32_342 : i32 to index
    %c0_388 = arith.constant 0 : index
    %c0_389 = arith.constant 0 : index
    %756 = vector.load %arg5[%755, %c0_388, %c0_389] : memref<8x2x32xf32, #tpu.memory_space<vmem>>, vector<1x2x32xf32>
    %757 = vector.shape_cast %756 : vector<1x2x32xf32> to vector<2x32xf32>
    %758 = vector.shape_cast %718 : vector<2x32xf32> to vector<1x2x32xf32>
    tpu.vector_store %arg5[%755, %c0_388, %c0_389], %758 {strides = array<i32>} : memref<8x2x32xf32, #tpu.memory_space<vmem>>, vector<1x2x32xf32>,
    %759 = arith.index_cast %668 : i32 to index
    %c0_390 = arith.constant 0 : index
    %c0_391 = arith.constant 0 : index
    %760 = vector.load %arg6[%759, %c0_390, %c0_391] : memref<8x2x32xf32, #tpu.memory_space<vmem>>, vector<1x2x32xf32>
    %761 = vector.shape_cast %760 : vector<1x2x32xf32> to vector<2x32xf32>
    %762 = vector.shape_cast %750 : vector<2x32xf32> to vector<1x2x32xf32>
    tpu.vector_store %arg6[%759, %c0_390, %c0_391], %762 {strides = array<i32>} : memref<8x2x32xf32, #tpu.memory_space<vmem>>, vector<1x2x32xf32>,
    %c8_i32 = arith.constant 8 : i32
    return
  }
  func.func @transform_0(%arg0: i32) -> (i32, i32, i32) {
    %c0_i32 = arith.constant 0 : i32
    %c0_i32_0 = arith.constant 0 : i32
    %c0_i32_1 = arith.constant 0 : i32
    return %arg0, %c0_i32, %c0_i32_0 : i32, i32, i32
  }
  func.func @transform_1(%arg0: i32) -> (i32, i32, i32) {
    %c0_i32 = arith.constant 0 : i32
    %0 = arith.subi %c0_i32, %arg0 : i32
    %c0_i32_0 = arith.constant 0 : i32
    %c0_i32_1 = arith.constant 0 : i32
    %c0_i32_2 = arith.constant 0 : i32
    return %0, %c0_i32_0, %c0_i32_1 : i32, i32, i32
  }
  func.func @transform_2(%arg0: i32) -> (i32, i32) {
    %c0_i32 = arith.constant 0 : i32
    %c0_i32_0 = arith.constant 0 : i32
    %c0_i32_1 = arith.constant 0 : i32
    return %c0_i32, %c0_i32_0 : i32, i32
  }
  func.func @transform_3(%arg0: i32) -> (i32, i32) {
    %c0_i32 = arith.constant 0 : i32
    %c0_i32_0 = arith.constant 0 : i32
    %c0_i32_1 = arith.constant 0 : i32
    return %c0_i32, %c0_i32_0 : i32, i32
  }
  func.func @transform_4(%arg0: i32) -> (i32, i32, i32) {
    %c0_i32 = arith.constant 0 : i32
    %c0_i32_0 = arith.constant 0 : i32
    %c0_i32_1 = arith.constant 0 : i32
    return %arg0, %c0_i32, %c0_i32_0 : i32, i32, i32
  }
  func.func @transform_5(%arg0: i32) -> (i32, i32, i32) {
    %c0_i32 = arith.constant 0 : i32
    %0 = arith.subi %c0_i32, %arg0 : i32
    %c0_i32_0 = arith.constant 0 : i32
    %c0_i32_1 = arith.constant 0 : i32
    %c0_i32_2 = arith.constant 0 : i32
    return %0, %c0_i32_0, %c0_i32_1 : i32, i32, i32
  }
}

</mosaic_0001>

<bundles_post_ra>
// kernel: _stacked_brnn_unpadded.6
= control target key start
LH: loop header
LB: loop body
LE: loop exit
PB: predicated region body
PF: predicated region fallthrough
CT: control target
= control target key end

     0   :  { %vm68_vm0 = vcmask 523264   ;;  %s308_s1 = inlined_call_operand.vmem [shape: bf16[64,128], index: 1, kind: input, shape index: {}]   ;;  %s309_s2 = inlined_call_operand.vmem [shape: bf16[64,128], index: 2, kind: input, shape index: {}]   ;;  %s310_s3 = inlined_call_operand.vmem [shape: f32[1,128], index: 3, kind: input, shape index: {}]   ;;  %s311_s0 = inlined_call_operand.vmem [shape: f32[16,64], index: 0, kind: input, shape index: {}]   ;;  %s312_s4 = inlined_call_operand.vmem [shape: f32[1,128], index: 4, kind: input, shape index: {}]   ;;  %s313_s5 = inlined_call_operand.vmem [shape: bf16[16,128], index: 5, kind: output, shape index: {0}]   ;;  %s314_s6 = inlined_call_operand.vmem [shape: bf16[16,128], index: 6, kind: output, shape index: {1}]  }
   0x1   :  { %v214_v0 = vld [vmem:[%s308_s1 + $0x18] sm:$0xff]  ;;  %v213_v2 = vld [vmem:[%s308_s1 + $0x10] sm:$0xff]  ;;  %v212_v4 = vld [vmem:[%s308_s1 + $0x8] sm:$0xff] }
   0x2   :  { %v218_v1 = vld [vmem:[%s309_s2 + $0x18] sm:$0xff]  ;;  %76 = vmatpush.bf16.msra.mxu0 %v214_v0  ;;  %v217_v3 = vld [vmem:[%s309_s2 + $0x10] sm:$0xff]  ;;  %v216_v5 = vld [vmem:[%s309_s2 + $0x8] sm:$0xff] }
   0x3   :  { %128 = vmatpush.bf16.msra.mxu1 %v218_v1  ;;  %v211_v6 = vld [vmem:[%s308_s1] sm:$0xff]  ;;  %v32_v9 = vld [vmem:[%s311_s0 + $0x8] sm:$0xff] }
   0x4   :  { %v215_v7 = vld [vmem:[%s309_s2] sm:$0xff] }
   0x5   :  { %v31_v8 = vld [vmem:[%s311_s0] sm:$0xff] }
   0x6   :  { %77 = vmatpush.bf16.msra.mxu0 %v213_v2  ;;  %v33_v10 = vpack.c.bf16 %v32_v9, %v31_v8  ;;  %v229_v13 = vld [vmem:[%s310_s3] ss:$0 sm:$0xff] }
   0x7   :  { %129 = vmatpush.bf16.msra.mxu1 %v217_v3  ;;  %v230_v14 = vld [vmem:[%s312_s4] ss:$0 sm:$0xff] }
   0xa   :  { %78 = vmatpush.bf16.msra.mxu0 %v212_v4 }
   0xb   :  { %130 = vmatpush.bf16.msra.mxu1 %v216_v5 }
   0xe   :  { %79 = vmatpush.bf16.msra.mxu0 %v211_v6 }
   0xf   :  { %131 = vmatpush.bf16.msra.mxu1 %v215_v7 }
  0x11   :  { %193 = vmatmul.msk.bf16.vlgmr.msra.gmra.mxu0 %vm68_vm0, %v33_v10 }
  0x12   :  { %210 = vmatmul.msk.bf16.vlgmr.msra.gmra.mxu1 %vm68_vm0, %v33_v10 }
  0x8e   :  { %v81_v11 = vpop.f32.mrf.mxu0 }
  0x8f   :  { %v133_v12 = vpop.f32.mrf.mxu1  ;;  %v151_v17 = vadd.f32 %v229_v13, %v81_v11 }
  0x90   :  { %v163_v18 = vadd.f32 %v230_v14, %v133_v12 }
  0x96   :  { %v83_v15 = vpop.f32.mrf.mxu0 }
  0x97   :  { %v135_v16 = vpop.f32.mrf.mxu1  ;;  %v152_v19 = vadd.f32 %v229_v13, %v83_v15 }
  0x98   :  { %v164_v20 = vadd.f32 %v230_v14, %v135_v16 }
  0x99   :  { %v222_v21 = vpack.c.bf16 %v152_v19, %v151_v17 }
  0x9a   :  { %v227_v22 = vpack.c.bf16 %v164_v20, %v163_v18 }
  0x9b   :  { %223 = vst [vmem:[%s313_s5] sm:$0xff] %v222_v21  }
  0x9c   :  { %228 = vst [vmem:[%s314_s6] sm:$0xff] %v227_v22  }

// kernel: _stacked_brnn_unpadded.4
= control target key start
LH: loop header
LB: loop body
LE: loop exit
PB: predicated region body
PF: predicated region fallthrough
CT: control target
= control target key end

     0   :  { %vm44_vm0 = vcmask 130048   ;;  %s212_s1 = inlined_call_operand.vmem [shape: bf16[16,128], index: 1, kind: input, shape index: {}]   ;;  %s213_s2 = inlined_call_operand.vmem [shape: bf16[16,128], index: 2, kind: input, shape index: {}]   ;;  %s214_s0 = inlined_call_operand.vmem [shape: f32[16,16], index: 0, kind: input, shape index: {}]   ;;  %s215_s3 = inlined_call_operand.vmem [shape: f32[1,128], index: 3, kind: input, shape index: {}]   ;;  %s216_s4 = inlined_call_operand.vmem [shape: f32[1,128], index: 4, kind: input, shape index: {}]   ;;  %s217_s5 = inlined_call_operand.vmem [shape: bf16[16,128], index: 5, kind: output, shape index: {0}]   ;;  %s218_s6 = inlined_call_operand.vmem [shape: bf16[16,128], index: 6, kind: output, shape index: {1}]  }
   0x1   :  { %v139_v0 = vld [vmem:[%s212_s1] sm:$0xff]  ;;  %v32_v3 = vld [vmem:[%s214_s0 + $0x8] sm:$0xff] }
   0x2   :  { %v140_v1 = vld [vmem:[%s213_s2] sm:$0xff]  ;;  %55 = vmatpush.bf16.msra.mxu0 %v139_v0 }
   0x3   :  { %v31_v2 = vld [vmem:[%s214_s0] sm:$0xff]  ;;  %83 = vmatpush.bf16.msra.mxu1 %v140_v1 }
   0x4   :  { %v33_v4 = vpack.c.bf16 %v32_v3, %v31_v2  ;;  %v151_v7 = vld [vmem:[%s215_s3] ss:$0 sm:$0xff] }
   0x5   :  { %v152_v8 = vld [vmem:[%s216_s4] ss:$0 sm:$0xff] }
   0x6   :  { %133 = vmatmul.msk.bf16.vlgmr.msra.gmra.mxu0 %vm44_vm0, %v33_v4  ;;  %138 = vmatmul.msk.bf16.vlgmr.msra.gmra.mxu1 %vm44_vm0, %v33_v4 }
  0x83   :  { %v57_v5 = vpop.f32.mrf.mxu0  ;;  %v85_v6 = vpop.f32.mrf.mxu1 }
  0x84   :  { %v103_v11 = vadd.f32 %v151_v7, %v57_v5  ;;  %v115_v12 = vadd.f32 %v152_v8, %v85_v6 }
  0x8b   :  { %v59_v9 = vpop.f32.mrf.mxu0  ;;  %v87_v10 = vpop.f32.mrf.mxu1 }
  0x8c   :  { %v104_v13 = vadd.f32 %v151_v7, %v59_v9  ;;  %v116_v14 = vadd.f32 %v152_v8, %v87_v10 }
  0x8e   :  { %v144_v15 = vpack.c.bf16 %v104_v13, %v103_v11  ;;  %v149_v16 = vpack.c.bf16 %v116_v14, %v115_v12 }
  0x90   :  { %145 = vst [vmem:[%s217_s5] sm:$0xff] %v144_v15  }
  0x91   :  { %150 = vst [vmem:[%s218_s6] sm:$0xff] %v149_v16  }

// kernel: _stacked_brnn_unpadded.5
= control target key start
LH: loop header
LB: loop body
LE: loop exit
PB: predicated region body
PF: predicated region fallthrough
CT: control target
= control target key end

     0   :  { %vm57_vm0 = vcmask 254976   ;;  %v1773_v1 = vmov 0.0   ;;  %vm80_vm1 = vcmask 261120   ;;  %s1774_s26 = smov 32   ;;  %s1775_s6 = smov 64   ;;  %s2218_s2 = inlined_call_operand.vmem [shape: bf16[32,128], index: 2, kind: input, shape index: {}]   ;;  %s2219_s3 = inlined_call_operand.vmem [shape: bf16[32,128], index: 3, kind: input, shape index: {}]   ;;  %s2220_s0 = inlined_call_operand.vmem [shape: bf16[8,2,128], index: 0, kind: input, shape index: {}]   ;;  %s2221_s1 = inlined_call_operand.vmem [shape: bf16[8,2,128], index: 1, kind: input, shape index: {}]   ;;  %s2222_s5 = inlined_call_operand.vmem [shape: f32[8,2,32], index: 5, kind: output, shape index: {1}]   ;;  %s2223_s4 = inlined_call_operand.vmem [shape: f32[8,2,32], index: 4, kind: output, shape index: {0}]  }
   0x1   :  { %v1642_v0 = vld [vmem:[%s2218_s2 + $0x8] sm:$0xff]  ;;  %58 = vst.msk [vmem:[#allocation2] sm:$0x3] %vm57_vm0, %v1773_v1  ;;  %v1641_v3 = vld [vmem:[%s2218_s2] sm:$0xff]  ;;  %s1776_s7 = smov 96  }
   0x2   :  { %v1644_v2 = vld [vmem:[%s2219_s3 + $0x8] sm:$0xff]  ;;  %59 = vst.msk [vmem:[#allocation3] sm:$0x3] %vm57_vm0, %v1773_v1  ;;  %90 = vmatpush.bf16.msra.mxu0 %v1642_v0  ;;  %v1643_v4 = vld [vmem:[%s2219_s3] sm:$0xff] }
   0x3   :  { %60 = vst.msk [vmem:[#allocation4] sm:$0x3] %vm57_vm0, %v1773_v1  ;;  %124 = vmatpush.bf16.msra.mxu1 %v1644_v2  ;;  %v131_v11 = vld [vmem:[%s2220_s0] sm:$0x1]  ;;  %v1487_v13 = vld [vmem:[%s2221_s1 + $0x7] sm:$0x1] }
   0x4   :  { %61 = vst.msk [vmem:[#allocation5] sm:$0x3] %vm57_vm0, %v1773_v1  ;;  %v132_v12 = vunpack.c.l.bf16 %v131_v11  ;;  %v136_v16 = vunpack.c.l.bf16 %v1487_v13  ;;  %v1646_v54 = vld [vmem:[%s2218_s2 + $0x8] sm:$0xff]  ;;  %v1645_v55 = vld [vmem:[%s2218_s2] sm:$0xff] }
   0x5   :  { %261 = vmatpush.bf16.msra.mxu2 %v1646_v54  ;;  %v1648_v59 = vld [vmem:[%s2219_s3 + $0x8] sm:$0xff]  ;;  %v1647_v60 = vld [vmem:[%s2219_s3] sm:$0xff] }
   0x6   :  { %91 = vmatpush.bf16.msra.mxu0 %v1641_v3  ;;  %295 = vmatpush.bf16.msra.mxu3 %v1648_v59  ;;  %v1507_v2 = vld [vmem:[%s2220_s0 + $0x1] sm:$0x1] }
   0x7   :  { %125 = vmatpush.bf16.msra.mxu1 %v1643_v4  ;;  %v304_v3 = vunpack.c.l.bf16 %v1507_v2 }
   0x8   :  { %v62_v5 = vld [vmem:[#allocation2] sm:$0x3] }
   0x9   :  { %v63_v6 = vpack.c.bf16 %v62_v5, %v62_v5  ;;  %v138_v7 = vld [vmem:[#allocation3] sm:$0x3]  ;;  %262 = vmatpush.bf16.msra.mxu2 %v1645_v55 }
   0xa   :  { %v97_v8 = vld [vmem:[#allocation4] sm:$0x3]  ;;  %145 = vrot.lane.b32.xlu1 %v138_v7, %s1774_s26  ;;  %296 = vmatpush.bf16.msra.mxu3 %v1647_v60 }
   0xb   :  { %1477 = vmatmul.msk.bf16.vlgmr.msra.gmra.mxu0 %vm80_vm1, %v63_v6  ;;  %v98_v9 = vpack.c.bf16 %v97_v8, %v97_v8  ;;  %v165_v10 = vld [vmem:[#allocation5] sm:$0x3] }
   0xc   :  { %172 = vrot.lane.b32.xlu2 %v165_v10, %s1774_s26 }
   0xd   :  { %1486 = vmatmul.msk.bf16.vlgmr.msra.gmra.mxu1 %vm80_vm1, %v98_v9  ;;  %v1508_v9 = vld [vmem:[%s2221_s1 + $0x6] sm:$0x1] }
   0xe   :  { %v308_v10 = vunpack.c.l.bf16 %v1508_v9 }
  0x66   :  { %v173_v35 = vpop.permute.xlu2 %172 }
  0x7c   :  { %v146_v39 = vpop.permute.xlu1 %145 }
  0x88   :  { %v93_v14 = vpop.f32.mrf.mxu0 }
  0x89   :  { %v133_v15 = vadd.f32 %v132_v12, %v93_v14 }
  0x8a   :  { %v127_v17 = vpop.f32.mrf.mxu1 }
  0x8b   :  { %1677 = vtanh.f32 %v133_v15  ;;  %v137_v18 = vadd.f32 %v136_v16, %v127_v17  ;;  %v139_v23 = vmul.f32 0.5, %v133_v15 }
  0x8d   :  { %1679 = vtanh.f32 %v137_v18  ;;  %v166_v24 = vmul.f32 0.5, %v137_v18 }
  0x8e   :  { %1681 = vtanh.f32 %v139_v23 }
  0x8f   :  { %1683 = vtanh.f32 %v166_v24 }
  0x90   :  { %v95_v19 = vpop.f32.mrf.mxu0 }
  0x91   :  { %v1678_v20 = vpop.eup %1677 }
  0x92   :  { %150 = vrot.lane.b32.xlu0 %v1678_v20, %s1775_s6  ;;  %v129_v21 = vpop.f32.mrf.mxu1 }
  0x93   :  { %v1680_v22 = vpop.eup %1679 }
  0x94   :  { %v1682_v25 = vpop.eup %1681 }
  0x95   :  { %v141_v26 = vmul.f32 0.5, %v1682_v25  ;;  %v1684_v28 = vpop.eup %1683 }
  0x96   :  { %v168_v31 = vmul.f32 0.5, %v1684_v28 }
  0x97   :  { %v142_v27 = vadd.f32 0.5, %v141_v26 }
  0x98   :  { %v169_v32 = vadd.f32 0.5, %v168_v31 }
  0x99   :  { %v148_v41 = vmul.f32 %v146_v39, %v142_v27 }
  0x9a   :  { %177 = vrot.lane.b32.xlu0 %v1680_v22, %s1775_s6  ;;  %v175_v36 = vmul.f32 %v173_v35, %v169_v32 }
 0x104   :  { %v151_v29 = vpop.permute.xlu0 %150 }
 0x105   :  { %v153_v30 = vmul.f32 %v151_v29, %v142_v27 }
 0x107   :  { %155 = vrot.lane.b32.xlu1 %v153_v30, %s1774_s26 }
 0x10c   :  { %v178_v33 = vpop.permute.xlu0 %177 }
 0x10d   :  { %v180_v34 = vmul.f32 %v178_v33, %v169_v32 }
 0x10f   :  { %182 = vrot.lane.b32.xlu2 %v180_v34, %s1774_s26 }
 0x169   :  { %v183_v37 = vpop.permute.xlu2 %182 }
 0x16a   :  { %v185_v38 = vadd.f32 %v183_v37, %v175_v36 }
 0x16c   :  { %1685 = vtanh.f32 %v185_v38 }
 0x172   :  { %v1686_v40 = vpop.eup %1685 }
 0x173   :  { %188 = vrot.lane.b32.xlu1 %v1686_v40, %s1775_s6 }
 0x179   :  { %v156_v42 = vpop.permute.xlu1 %155 }
 0x17a   :  { %v158_v43 = vadd.f32 %v156_v42, %v148_v41 }
 0x17c   :  { %1687 = vtanh.f32 %v158_v43 }
 0x182   :  { %v1688_v44 = vpop.eup %1687 }
 0x183   :  { %161 = vrot.lane.b32.xlu0 %v1688_v44, %s1775_s6 }
 0x1e5   :  { %v189_v48 = vpop.permute.xlu1 %188 }
 0x1e6   :  { %v191_v49 = vmul.f32 %v189_v48, %v169_v32  ;;  %v1650_v48 = vld [vmem:[%s2218_s2 + $0x8] sm:$0xff] }
 0x1e7   :  { %433 = vmatpush.bf16.msrb.mxu0 %v1650_v48  ;;  %v1656_v48 = vld [vmem:[%s2219_s3 + $0x8] sm:$0xff] }
 0x1e8   :  { %639 = vmatpush.bf16.msrb.mxu3 %v1656_v48 }
 0x1f5   :  { %v162_v45 = vpop.permute.xlu0 %161 }
 0x1f6   :  { %v164_v46 = vmul.f32 %v162_v45, %v142_v27 }
 0x1f8   :  { %193 = vst [vmem:[#allocation1] ss:$4 sm:$0xff] %v164_v46 }
 0x1ff   :  { %v194_v47 = vld.sshfl [vmem:[#allocation1] sm:$0xff pattern:$0x73625140] }
 0x200   :  { %201 = vst [vmem:[#allocation1] ss:$4 sm:$0xff] %v158_v43  ;;  %195 = vrot.lane.b32.xlu2 %v194_v47, %s1774_s26 }
 0x207   :  { %v202_v50 = vld.sshfl [vmem:[#allocation1] sm:$0xff pattern:$0x73625140] }
 0x208   :  { %208 = vst [vmem:[#allocation1] ss:$4 sm:$0xff] %v191_v49  ;;  %203 = vrot.lane.b32.xlu1 %v202_v50, %s1776_s7 }
 0x20f   :  { %v209_v51 = vld.sshfl [vmem:[#allocation1] sm:$0xff pattern:$0x73625140] }
 0x210   :  { %215 = vst [vmem:[#allocation1] ss:$4 sm:$0xff] %v185_v38  ;;  %210 = vrot.lane.b32.xlu0 %v209_v51, %s1774_s26  ;;  %v1652_v51 = vld [vmem:[%s2219_s3 + $0x8] sm:$0xff] }
 0x211   :  { %467 = vmatpush.bf16.msrb.mxu1 %v1652_v51 }
 0x217   :  { %v216_v52 = vld.sshfl [vmem:[#allocation1] sm:$0xff pattern:$0x73625140] }
 0x218   :  { %221 = vst [vmem:[#allocation1] ss:$4 sm:$0xff] %v164_v46  ;;  %217 = vrot.lane.b32.xlu0 %v216_v52, %s1776_s7 }
 0x21f   :  { %v1843_v53 = vld.sshfl [vmem:[#allocation1] sm:$0xff pattern:$0x73625140] }
 0x220   :  { %227 = vst [vmem:[#allocation1] ss:$4 sm:$0xff] %v191_v49  ;;  %v1649_v49 = vld [vmem:[%s2218_s2] sm:$0xff] }
 0x221   :  { %434 = vmatpush.bf16.msrb.mxu0 %v1649_v49 }
 0x227   :  { %v1877_v40 = vld.sshfl [vmem:[#allocation1] sm:$0xff pattern:$0x73625140] }
 0x25a   :  { %v196_v56 = vpop.permute.xlu2 %195 }
 0x25b   :  { %199 = vst.msk [vmem:[#allocation2] sm:$0x3] %vm57_vm0, %v196_v56  ;;  %v1651_v56 = vld [vmem:[%s2219_s3] sm:$0xff] }
 0x25c   :  { %468 = vmatpush.bf16.msrb.mxu1 %v1651_v56 }
 0x262   :  { %v234_v57 = vld [vmem:[#allocation2] sm:$0x3] }
 0x263   :  { %v235_v58 = vpack.c.bf16 %v234_v57, %v234_v57 }
 0x265   :  { %1497 = vmatmul.msk.bf16.vlgmr.msra.gmra.mxu2 %vm80_vm1, %v235_v58 }
 0x27a   :  { %v204_v61 = vpop.permute.xlu1 %203 }
 0x27b   :  { %206 = vst.msk [vmem:[#allocation3] sm:$0x3] %vm57_vm0, %v204_v61  ;;  %v1529_v61 = vld [vmem:[%s2220_s0 + $0x2] sm:$0x1] }
 0x282   :  { %v211_v62 = vpop.permute.xlu0 %210  ;;  %v310_v8 = vld [vmem:[#allocation3] sm:$0x3] }
 0x283   :  { %213 = vst.msk [vmem:[#allocation4] sm:$0x3] %vm57_vm0, %v211_v62  ;;  %v476_v62 = vunpack.c.l.bf16 %v1529_v61 }
 0x28a   :  { %v218_v63 = vpop.permute.xlu0 %217  ;;  %v268_v0 = vld [vmem:[#allocation4] sm:$0x3] }
 0x28b   :  { %220 = vst.msk [vmem:[#allocation5] sm:$0x3] %vm57_vm0, %v218_v63  ;;  %v269_v1 = vpack.c.bf16 %v268_v0, %v268_v0 }
 0x28d   :  { %1506 = vmatmul.msk.bf16.vlgmr.msra.gmra.mxu3 %vm80_vm1, %v269_v1 }
 0x292   :  { %v337_v15 = vld [vmem:[#allocation5] sm:$0x3] }
 0x2e8   :  { %v264_v4 = vpop.f32.mrf.mxu2 }
 0x2e9   :  { %v305_v5 = vadd.f32 %v304_v3, %v264_v4  ;;  %v1530_v4 = vld [vmem:[%s2221_s1 + $0x5] sm:$0x1] }
 0x2eb   :  { %1689 = vtanh.f32 %v305_v5  ;;  %v311_v16 = vmul.f32 0.5, %v305_v5  ;;  %v480_v5 = vunpack.c.l.bf16 %v1530_v4 }
 0x2f0   :  { %v266_v6 = vpop.f32.mrf.mxu2 }
 0x2f1   :  { %v1690_v7 = vpop.eup %1689 }
 0x2f2   :  { %322 = vrot.lane.b32.xlu2 %v1690_v7, %s1775_s6 }
 0x2fa   :  { %317 = vrot.lane.b32.xlu2 %v310_v8, %s1774_s26 }
 0x310   :  { %v298_v11 = vpop.f32.mrf.mxu3 }
 0x311   :  { %v309_v12 = vadd.f32 %v308_v10, %v298_v11 }
 0x313   :  { %1691 = vtanh.f32 %v309_v12  ;;  %v338_v22 = vmul.f32 0.5, %v309_v12 }
 0x314   :  { %1693 = vtanh.f32 %v311_v16 }
 0x315   :  { %1695 = vtanh.f32 %v338_v22 }
 0x318   :  { %v300_v13 = vpop.f32.mrf.mxu3 }
 0x319   :  { %v1692_v14 = vpop.eup %1691 }
 0x31a   :  { %349 = vrot.lane.b32.xlu1 %v1692_v14, %s1775_s6  ;;  %v1694_v17 = vpop.eup %1693 }
 0x31b   :  { %v313_v18 = vmul.f32 0.5, %v1694_v17  ;;  %v1696_v23 = vpop.eup %1695 }
 0x31c   :  { %v340_v24 = vmul.f32 0.5, %v1696_v23 }
 0x31d   :  { %v314_v19 = vadd.f32 0.5, %v313_v18 }
 0x31e   :  { %v341_v25 = vadd.f32 0.5, %v340_v24 }
 0x322   :  { %344 = vrot.lane.b32.xlu1 %v337_v15, %s1774_s26 }
 0x34c   :  { %v323_v20 = vpop.permute.xlu2 %322 }
 0x34d   :  { %v325_v21 = vmul.f32 %v323_v20, %v314_v19 }
 0x34f   :  { %327 = vrot.lane.b32.xlu0 %v325_v21, %s1774_s26 }
 0x354   :  { %v318_v28 = vpop.permute.xlu2 %317 }
 0x355   :  { %v320_v29 = vmul.f32 %v318_v28, %v314_v19 }
 0x38c   :  { %v350_v26 = vpop.permute.xlu1 %349 }
 0x38d   :  { %v352_v27 = vmul.f32 %v350_v26, %v341_v25 }
 0x38f   :  { %354 = vrot.lane.b32.xlu2 %v352_v27, %s1774_s26 }
 0x394   :  { %v345_v33 = vpop.permute.xlu1 %344 }
 0x395   :  { %v347_v34 = vmul.f32 %v345_v33, %v341_v25 }
 0x3c1   :  { %v328_v30 = vpop.permute.xlu0 %327 }
 0x3c2   :  { %v330_v31 = vadd.f32 %v328_v30, %v320_v29 }
 0x3c4   :  { %1697 = vtanh.f32 %v330_v31 }
 0x3ca   :  { %v1698_v32 = vpop.eup %1697 }
 0x3cb   :  { %333 = vrot.lane.b32.xlu0 %v1698_v32, %s1775_s6 }
 0x3e9   :  { %v355_v35 = vpop.permute.xlu2 %354 }
 0x3ea   :  { %v357_v36 = vadd.f32 %v355_v35, %v347_v34 }
 0x3ec   :  { %1699 = vtanh.f32 %v357_v36 }
 0x3f2   :  { %v1700_v37 = vpop.eup %1699 }
 0x3f3   :  { %360 = vrot.lane.b32.xlu1 %v1700_v37, %s1775_s6 }
 0x43d   :  { %v334_v38 = vpop.permute.xlu0 %333 }
 0x43e   :  { %v336_v39 = vmul.f32 %v334_v38, %v314_v19 }
 0x440   :  { %365 = vst [vmem:[#allocation1] ss:$4 sm:$0xff] %v336_v39 }
 0x447   :  { %v366_v41 = vld.sshfl [vmem:[#allocation1] sm:$0xff pattern:$0x73625140] }
 0x448   :  { %372 = vst [vmem:[#allocation1] ss:$4 sm:$0xff] %v330_v31  ;;  %367 = vrot.lane.b32.xlu2 %v366_v41, %s1774_s26  ;;  %v1654_v41 = vld [vmem:[%s2218_s2 + $0x8] sm:$0xff] }
 0x449   :  { %605 = vmatpush.bf16.msrb.mxu2 %v1654_v41 }
 0x44f   :  { %v373_v42 = vld.sshfl [vmem:[#allocation1] sm:$0xff pattern:$0x73625140] }
 0x450   :  { %374 = vrot.lane.b32.xlu1 %v373_v42, %s1776_s7  ;;  %v1653_v42 = vld [vmem:[%s2218_s2] sm:$0xff] }
 0x451   :  { %606 = vmatpush.bf16.msrb.mxu2 %v1653_v42 }
 0x465   :  { %v361_v43 = vpop.permute.xlu1 %360 }
 0x466   :  { %v363_v44 = vmul.f32 %v361_v43, %v341_v25 }
 0x468   :  { %379 = vst [vmem:[#allocation1] ss:$4 sm:$0xff] %v363_v44 }
 0x46f   :  { %v380_v45 = vld.sshfl [vmem:[#allocation1] sm:$0xff pattern:$0x73625140] }
 0x470   :  { %386 = vst [vmem:[#allocation1] ss:$4 sm:$0xff] %v357_v36  ;;  %381 = vrot.lane.b32.xlu0 %v380_v45, %s1774_s26 }
 0x477   :  { %v387_v46 = vld.sshfl [vmem:[#allocation1] sm:$0xff pattern:$0x73625140] }
 0x478   :  { %392 = vst [vmem:[#allocation1] ss:$4 sm:$0xff] %v336_v39  ;;  %388 = vrot.lane.b32.xlu0 %v387_v46, %s1776_s7 }
 0x47f   :  { %v1883_v47 = vld.sshfl [vmem:[#allocation1] sm:$0xff pattern:$0x73625140] }
 0x480   :  { %399 = vst [vmem:[#allocation1] ss:$4 sm:$0xff] %v363_v44 }
 0x487   :  { %v1917_v35 = vld.sshfl [vmem:[#allocation1] sm:$0xff pattern:$0x73625140] }
 0x4a2   :  { %v368_v50 = vpop.permute.xlu2 %367 }
 0x4a3   :  { %370 = vst.msk [vmem:[#allocation2] sm:$0x3] %vm57_vm0, %v368_v50 }
 0x4aa   :  { %v406_v52 = vld [vmem:[#allocation2] sm:$0x3] }
 0x4ab   :  { %v407_v54 = vpack.c.bf16 %v406_v52, %v406_v52  ;;  %v1655_v52 = vld [vmem:[%s2219_s3] sm:$0xff] }
 0x4ac   :  { %640 = vmatpush.bf16.msrb.mxu3 %v1655_v52 }
 0x4ad   :  { %1519 = vmatmul.msk.bf16.vlgmr.msrb.gmra.mxu0 %vm80_vm1, %v407_v54 }
 0x4c2   :  { %v375_v55 = vpop.permute.xlu1 %374 }
 0x4c3   :  { %377 = vst.msk [vmem:[#allocation3] sm:$0x3] %vm57_vm0, %v375_v55 }
 0x4ca   :  { %v482_v3 = vld [vmem:[#allocation3] sm:$0x3] }
 0x4e2   :  { %v382_v57 = vpop.permute.xlu0 %381 }
 0x4e3   :  { %384 = vst.msk [vmem:[#allocation4] sm:$0x3] %vm57_vm0, %v382_v57 }
 0x4ea   :  { %v389_v58 = vpop.permute.xlu0 %388  ;;  %v440_v59 = vld [vmem:[#allocation4] sm:$0x3] }
 0x4eb   :  { %391 = vst.msk [vmem:[#allocation5] sm:$0x3] %vm57_vm0, %v389_v58  ;;  %v441_v60 = vpack.c.bf16 %v440_v59, %v440_v59  ;;  %v1551_v58 = vld [vmem:[%s2220_s0 + $0x3] sm:$0x1] }
 0x4ec   :  { %v648_v59 = vunpack.c.l.bf16 %v1551_v58 }
 0x4ed   :  { %1528 = vmatmul.msk.bf16.vlgmr.msrb.gmra.mxu1 %vm80_vm1, %v441_v60 }
 0x4f2   :  { %v509_v10 = vld [vmem:[#allocation5] sm:$0x3] }
 0x52a   :  { %v436_v63 = vpop.f32.mrf.mxu0 }
 0x52b   :  { %v477_v0 = vadd.f32 %v476_v62, %v436_v63 }
 0x52d   :  { %1701 = vtanh.f32 %v477_v0  ;;  %v483_v11 = vmul.f32 0.5, %v477_v0 }
 0x532   :  { %v438_v1 = vpop.f32.mrf.mxu0 }
 0x533   :  { %v1702_v2 = vpop.eup %1701 }
 0x534   :  { %494 = vrot.lane.b32.xlu2 %v1702_v2, %s1775_s6  ;;  %v1552_v2 = vld [vmem:[%s2221_s1 + $0x4] sm:$0x1] }
 0x53c   :  { %489 = vrot.lane.b32.xlu2 %v482_v3, %s1774_s26  ;;  %v652_v3 = vunpack.c.l.bf16 %v1552_v2 }
 0x56a   :  { %v470_v6 = vpop.f32.mrf.mxu1 }
 0x56b   :  { %v481_v7 = vadd.f32 %v480_v5, %v470_v6 }
 0x56d   :  { %1703 = vtanh.f32 %v481_v7  ;;  %v510_v17 = vmul.f32 0.5, %v481_v7 }
 0x56e   :  { %1705 = vtanh.f32 %v483_v11 }
 0x56f   :  { %1707 = vtanh.f32 %v510_v17 }
 0x572   :  { %v472_v8 = vpop.f32.mrf.mxu1 }
 0x573   :  { %v1704_v9 = vpop.eup %1703 }
 0x574   :  { %521 = vrot.lane.b32.xlu1 %v1704_v9, %s1775_s6  ;;  %v1706_v12 = vpop.eup %1705 }
 0x575   :  { %v485_v13 = vmul.f32 0.5, %v1706_v12  ;;  %v1708_v18 = vpop.eup %1707 }
 0x576   :  { %v512_v19 = vmul.f32 0.5, %v1708_v18 }
 0x577   :  { %v486_v14 = vadd.f32 0.5, %v485_v13 }
 0x578   :  { %v513_v20 = vadd.f32 0.5, %v512_v19 }
 0x57c   :  { %516 = vrot.lane.b32.xlu1 %v509_v10, %s1774_s26 }
 0x58e   :  { %v495_v15 = vpop.permute.xlu2 %494 }
 0x58f   :  { %v497_v16 = vmul.f32 %v495_v15, %v486_v14 }
 0x591   :  { %499 = vrot.lane.b32.xlu0 %v497_v16, %s1774_s26 }
 0x596   :  { %v490_v23 = vpop.permute.xlu2 %489 }
 0x597   :  { %v492_v24 = vmul.f32 %v490_v23, %v486_v14 }
 0x5e6   :  { %v522_v21 = vpop.permute.xlu1 %521 }
 0x5e7   :  { %v524_v22 = vmul.f32 %v522_v21, %v513_v20 }
 0x5e9   :  { %526 = vrot.lane.b32.xlu2 %v524_v22, %s1774_s26 }
 0x5ee   :  { %v517_v28 = vpop.permute.xlu1 %516 }
 0x5ef   :  { %v519_v29 = vmul.f32 %v517_v28, %v513_v20 }
 0x603   :  { %v500_v25 = vpop.permute.xlu0 %499 }
 0x604   :  { %v502_v26 = vadd.f32 %v500_v25, %v492_v24 }
 0x606   :  { %1709 = vtanh.f32 %v502_v26 }
 0x60c   :  { %v1710_v27 = vpop.eup %1709 }
 0x60d   :  { %505 = vrot.lane.b32.xlu0 %v1710_v27, %s1775_s6 }
 0x643   :  { %v527_v30 = vpop.permute.xlu2 %526 }
 0x644   :  { %v529_v31 = vadd.f32 %v527_v30, %v519_v29 }
 0x646   :  { %1711 = vtanh.f32 %v529_v31 }
 0x64c   :  { %v1712_v32 = vpop.eup %1711 }
 0x64d   :  { %532 = vrot.lane.b32.xlu1 %v1712_v32, %s1775_s6 }
 0x67f   :  { %v506_v33 = vpop.permute.xlu0 %505 }
 0x680   :  { %v508_v34 = vmul.f32 %v506_v33, %v486_v14 }
 0x682   :  { %537 = vst [vmem:[#allocation1] ss:$4 sm:$0xff] %v508_v34 }
 0x689   :  { %v538_v36 = vld.sshfl [vmem:[#allocation1] sm:$0xff pattern:$0x73625140] }
 0x68a   :  { %544 = vst [vmem:[#allocation1] ss:$4 sm:$0xff] %v502_v26  ;;  %539 = vrot.lane.b32.xlu2 %v538_v36, %s1774_s26  ;;  %v1658_v36 = vld [vmem:[%s2218_s2 + $0x8] sm:$0xff] }
 0x68b   :  { %777 = vmatpush.bf16.msra.mxu0 %v1658_v36  ;;  %v1662_v36 = vld [vmem:[%s2218_s2 + $0x8] sm:$0xff] }
 0x68c   :  { %949 = vmatpush.bf16.msra.mxu2 %v1662_v36 }
 0x691   :  { %v545_v37 = vld.sshfl [vmem:[#allocation1] sm:$0xff pattern:$0x73625140] }
 0x692   :  { %546 = vrot.lane.b32.xlu1 %v545_v37, %s1776_s7  ;;  %v1657_v37 = vld [vmem:[%s2218_s2] sm:$0xff] }
 0x693   :  { %778 = vmatpush.bf16.msra.mxu0 %v1657_v37  ;;  %v1661_v37 = vld [vmem:[%s2218_s2] sm:$0xff] }
 0x694   :  { %950 = vmatpush.bf16.msra.mxu2 %v1661_v37 }
 0x6bf   :  { %v533_v38 = vpop.permute.xlu1 %532 }
 0x6c0   :  { %v535_v39 = vmul.f32 %v533_v38, %v513_v20 }
 0x6c2   :  { %551 = vst [vmem:[#allocation1] ss:$4 sm:$0xff] %v535_v39 }
 0x6c9   :  { %v552_v43 = vld.sshfl [vmem:[#allocation1] sm:$0xff pattern:$0x73625140] }
 0x6ca   :  { %558 = vst [vmem:[#allocation1] ss:$4 sm:$0xff] %v529_v31  ;;  %553 = vrot.lane.b32.xlu0 %v552_v43, %s1774_s26  ;;  %v1660_v43 = vld [vmem:[%s2219_s3 + $0x8] sm:$0xff] }
 0x6cb   :  { %811 = vmatpush.bf16.msra.mxu1 %v1660_v43 }
 0x6d1   :  { %v559_v44 = vld.sshfl [vmem:[#allocation1] sm:$0xff pattern:$0x73625140] }
 0x6d2   :  { %564 = vst [vmem:[#allocation1] ss:$4 sm:$0xff] %v508_v34  ;;  %560 = vrot.lane.b32.xlu0 %v559_v44, %s1776_s7 }
 0x6d9   :  { %v1929_v45 = vld.sshfl [vmem:[#allocation1] sm:$0xff pattern:$0x73625140] }
 0x6da   :  { %571 = vst [vmem:[#allocation1] ss:$4 sm:$0xff] %v535_v39 }
 0x6e1   :  { %v1957_v32 = vld.sshfl [vmem:[#allocation1] sm:$0xff pattern:$0x73625140] }
 0x6e4   :  { %v540_v46 = vpop.permute.xlu2 %539 }
 0x6e5   :  { %542 = vst.msk [vmem:[#allocation2] sm:$0x3] %vm57_vm0, %v540_v46 }
 0x6ec   :  { %v578_v49 = vld [vmem:[#allocation2] sm:$0x3] }
 0x6ed   :  { %v579_v50 = vpack.c.bf16 %v578_v49, %v578_v49 }
 0x6ef   :  { %1541 = vmatmul.msk.bf16.vlgmr.msrb.gmra.mxu2 %vm80_vm1, %v579_v50 }
 0x704   :  { %v547_v51 = vpop.permute.xlu1 %546 }
 0x705   :  { %549 = vst.msk [vmem:[#allocation3] sm:$0x3] %vm57_vm0, %v547_v51  ;;  %v1659_v51 = vld [vmem:[%s2219_s3] sm:$0xff] }
 0x706   :  { %812 = vmatpush.bf16.msra.mxu1 %v1659_v51 }
 0x70c   :  { %v654_v0 = vld [vmem:[#allocation3] sm:$0x3] }
 0x73c   :  { %v554_v54 = vpop.permute.xlu0 %553 }
 0x73d   :  { %556 = vst.msk [vmem:[#allocation4] sm:$0x3] %vm57_vm0, %v554_v54 }
 0x744   :  { %v561_v55 = vpop.permute.xlu0 %560  ;;  %v612_v56 = vld [vmem:[#allocation4] sm:$0x3] }
 0x745   :  { %563 = vst.msk [vmem:[#allocation5] sm:$0x3] %vm57_vm0, %v561_v55  ;;  %v613_v57 = vpack.c.bf16 %v612_v56, %v612_v56 }
 0x747   :  { %1550 = vmatmul.msk.bf16.vlgmr.msrb.gmra.mxu3 %vm80_vm1, %v613_v57  ;;  %v1573_v57 = vld [vmem:[%s2220_s0 + $0x4] sm:$0x1] }
 0x748   :  { %v820_v58 = vunpack.c.l.bf16 %v1573_v57 }
 0x74c   :  { %v681_v13 = vld [vmem:[#allocation5] sm:$0x3] }
 0x772   :  { %v608_v60 = vpop.f32.mrf.mxu2 }
 0x773   :  { %v649_v61 = vadd.f32 %v648_v59, %v608_v60 }
 0x775   :  { %1713 = vtanh.f32 %v649_v61  ;;  %v655_v1 = vmul.f32 0.5, %v649_v61 }
 0x777   :  { %1715 = vtanh.f32 %v655_v1 }
 0x77a   :  { %v610_v62 = vpop.f32.mrf.mxu2 }
 0x77b   :  { %v1714_v63 = vpop.eup %1713 }
 0x77c   :  { %666 = vrot.lane.b32.xlu2 %v1714_v63, %s1775_s6 }
 0x77d   :  { %v1716_v6 = vpop.eup %1715 }
 0x77e   :  { %v657_v7 = vmul.f32 0.5, %v1716_v6  ;;  %v1574_v6 = vld [vmem:[%s2221_s1 + $0x3] sm:$0x1] }
 0x780   :  { %v658_v10 = vadd.f32 0.5, %v657_v7  ;;  %v824_v7 = vunpack.c.l.bf16 %v1574_v6 }
 0x784   :  { %661 = vrot.lane.b32.xlu2 %v654_v0, %s1774_s26 }
 0x7ca   :  { %v642_v4 = vpop.f32.mrf.mxu3 }
 0x7cb   :  { %v653_v5 = vadd.f32 %v652_v3, %v642_v4 }
 0x7cd   :  { %1717 = vtanh.f32 %v653_v5  ;;  %v682_v14 = vmul.f32 0.5, %v653_v5 }
 0x7cf   :  { %1719 = vtanh.f32 %v682_v14 }
 0x7d2   :  { %v644_v8 = vpop.f32.mrf.mxu3 }
 0x7d3   :  { %v1718_v9 = vpop.eup %1717 }
 0x7d4   :  { %693 = vrot.lane.b32.xlu1 %v1718_v9, %s1775_s6 }
 0x7d5   :  { %v1720_v15 = vpop.eup %1719 }
 0x7d6   :  { %v667_v11 = vpop.permute.xlu2 %666  ;;  %v684_v16 = vmul.f32 0.5, %v1720_v15 }
 0x7d7   :  { %v669_v12 = vmul.f32 %v667_v11, %v658_v10 }
 0x7d8   :  { %v685_v17 = vadd.f32 0.5, %v684_v16 }
 0x7d9   :  { %671 = vrot.lane.b32.xlu0 %v669_v12, %s1774_s26 }
 0x7dc   :  { %688 = vrot.lane.b32.xlu1 %v681_v13, %s1774_s26 }
 0x7de   :  { %v662_v19 = vpop.permute.xlu2 %661 }
 0x7df   :  { %v664_v21 = vmul.f32 %v662_v19, %v658_v10 }
 0x846   :  { %v694_v18 = vpop.permute.xlu1 %693 }
 0x847   :  { %v696_v20 = vmul.f32 %v694_v18, %v685_v17 }
 0x849   :  { %698 = vrot.lane.b32.xlu2 %v696_v20, %s1774_s26 }
 0x84b   :  { %v672_v22 = vpop.permute.xlu0 %671 }
 0x84c   :  { %v674_v23 = vadd.f32 %v672_v22, %v664_v21 }
 0x84e   :  { %1721 = vtanh.f32 %v674_v23  ;;  %v689_v25 = vpop.permute.xlu1 %688 }
 0x84f   :  { %v691_v26 = vmul.f32 %v689_v25, %v685_v17 }
 0x854   :  { %v1722_v24 = vpop.eup %1721 }
 0x855   :  { %677 = vrot.lane.b32.xlu0 %v1722_v24, %s1775_s6 }
 0x8a3   :  { %v699_v27 = vpop.permute.xlu2 %698 }
 0x8a4   :  { %v701_v28 = vadd.f32 %v699_v27, %v691_v26 }
 0x8a6   :  { %1723 = vtanh.f32 %v701_v28 }
 0x8ac   :  { %v1724_v29 = vpop.eup %1723 }
 0x8ad   :  { %704 = vrot.lane.b32.xlu1 %v1724_v29, %s1775_s6 }
 0x8c7   :  { %v678_v30 = vpop.permute.xlu0 %677 }
 0x8c8   :  { %v680_v31 = vmul.f32 %v678_v30, %v658_v10 }
 0x8ca   :  { %709 = vst [vmem:[#allocation1] ss:$4 sm:$0xff] %v680_v31 }
 0x8d1   :  { %v710_v33 = vld.sshfl [vmem:[#allocation1] sm:$0xff pattern:$0x73625140] }
 0x8d2   :  { %711 = vrot.lane.b32.xlu2 %v710_v33, %s1774_s26  ;;  %716 = vst [vmem:[#allocation1] ss:$4 sm:$0xff] %v674_v23 }
 0x8d9   :  { %v717_v34 = vld.sshfl [vmem:[#allocation1] sm:$0xff pattern:$0x73625140] }
 0x8da   :  { %718 = vrot.lane.b32.xlu1 %v717_v34, %s1776_s7 }
 0x91f   :  { %v705_v38 = vpop.permute.xlu1 %704 }
 0x920   :  { %v707_v39 = vmul.f32 %v705_v38, %v685_v17 }
 0x922   :  { %723 = vst [vmem:[#allocation1] ss:$4 sm:$0xff] %v707_v39 }
 0x929   :  { %v724_v41 = vld.sshfl [vmem:[#allocation1] sm:$0xff pattern:$0x73625140] }
 0x92a   :  { %725 = vrot.lane.b32.xlu0 %v724_v41, %s1774_s26  ;;  %730 = vst [vmem:[#allocation1] ss:$4 sm:$0xff] %v701_v28 }
 0x92c   :  { %v712_v42 = vpop.permute.xlu2 %711 }
 0x92d   :  { %714 = vst.msk [vmem:[#allocation2] sm:$0x3] %vm57_vm0, %v712_v42 }
 0x931   :  { %v731_v44 = vld.sshfl [vmem:[#allocation1] sm:$0xff pattern:$0x73625140] }
 0x932   :  { %732 = vrot.lane.b32.xlu0 %v731_v44, %s1776_s7  ;;  %736 = vst [vmem:[#allocation1] ss:$4 sm:$0xff] %v680_v31 }
 0x934   :  { %v750_v46 = vld [vmem:[#allocation2] sm:$0x3] }
 0x935   :  { %v751_v48 = vpack.c.bf16 %v750_v46, %v750_v46 }
 0x937   :  { %1563 = vmatmul.msk.bf16.vlgmr.msra.gmra.mxu0 %vm80_vm1, %v751_v48 }
 0x939   :  { %v1974_v49 = vld.sshfl [vmem:[#allocation1] sm:$0xff pattern:$0x73625140] }
 0x93a   :  { %743 = vst [vmem:[#allocation1] ss:$4 sm:$0xff] %v707_v39  ;;  %v1664_v39 = vld [vmem:[%s2219_s3 + $0x8] sm:$0xff] }
 0x93b   :  { %983 = vmatpush.bf16.msra.mxu3 %v1664_v39  ;;  %v1665_v39 = vld [vmem:[%s2218_s2] sm:$0xff] }
 0x941   :  { %v1997_v31 = vld.sshfl [vmem:[#allocation1] sm:$0xff pattern:$0x73625140] }
 0x94c   :  { %v719_v50 = vpop.permute.xlu1 %718 }
 0x94d   :  { %721 = vst.msk [vmem:[#allocation3] sm:$0x3] %vm57_vm0, %v719_v50 }
 0x954   :  { %v826_v63 = vld [vmem:[#allocation3] sm:$0x3] }
 0x99c   :  { %v726_v52 = vpop.permute.xlu0 %725 }
 0x99d   :  { %728 = vst.msk [vmem:[#allocation4] sm:$0x3] %vm57_vm0, %v726_v52  ;;  %v1663_v52 = vld [vmem:[%s2219_s3] sm:$0xff] }
 0x99e   :  { %984 = vmatpush.bf16.msra.mxu3 %v1663_v52 }
 0x9a4   :  { %v733_v54 = vpop.permute.xlu0 %732  ;;  %v784_v55 = vld [vmem:[#allocation4] sm:$0x3] }
 0x9a5   :  { %735 = vst.msk [vmem:[#allocation5] sm:$0x3] %vm57_vm0, %v733_v54  ;;  %v785_v56 = vpack.c.bf16 %v784_v55, %v784_v55  ;;  %v1595_v55 = vld [vmem:[%s2220_s0 + $0x5] sm:$0x1] }
 0x9a7   :  { %1572 = vmatmul.msk.bf16.vlgmr.msra.gmra.mxu1 %vm80_vm1, %v785_v56  ;;  %v992_v56 = vunpack.c.l.bf16 %v1595_v55  ;;  %v1668_v55 = vld [vmem:[%s2219_s3 + $0x8] sm:$0xff] }
 0x9a8   :  { %1155 = vmatpush.bf16.msrb.mxu1 %v1668_v55 }
 0x9ac   :  { %v853_v12 = vld [vmem:[#allocation5] sm:$0x3] }
 0x9b4   :  { %v780_v59 = vpop.f32.mrf.mxu0 }
 0x9b5   :  { %v821_v60 = vadd.f32 %v820_v58, %v780_v59 }
 0x9b7   :  { %1725 = vtanh.f32 %v821_v60  ;;  %v827_v0 = vmul.f32 0.5, %v821_v60 }
 0x9b9   :  { %1727 = vtanh.f32 %v827_v0 }
 0x9bc   :  { %v782_v61 = vpop.f32.mrf.mxu0 }
 0x9bd   :  { %v1726_v62 = vpop.eup %1725 }
 0x9be   :  { %838 = vrot.lane.b32.xlu2 %v1726_v62, %s1775_s6 }
 0x9bf   :  { %v1728_v1 = vpop.eup %1727 }
 0x9c0   :  { %v829_v2 = vmul.f32 0.5, %v1728_v1 }
 0x9c2   :  { %v830_v3 = vadd.f32 0.5, %v829_v2 }
 0x9c6   :  { %833 = vrot.lane.b32.xlu2 %v826_v63, %s1774_s26 }
 0xa18   :  { %v839_v4 = vpop.permute.xlu2 %838 }
 0xa19   :  { %v841_v5 = vmul.f32 %v839_v4, %v830_v3 }
 0xa1b   :  { %843 = vrot.lane.b32.xlu0 %v841_v5, %s1774_s26 }
 0xa20   :  { %v834_v13 = vpop.permute.xlu2 %833 }
 0xa21   :  { %v836_v14 = vmul.f32 %v834_v13, %v830_v3 }
 0xa24   :  { %v814_v8 = vpop.f32.mrf.mxu1 }
 0xa25   :  { %v825_v9 = vadd.f32 %v824_v7, %v814_v8  ;;  %v1596_v7 = vld [vmem:[%s2221_s1 + $0x2] sm:$0x1] }
 0xa26   :  { %v996_v8 = vunpack.c.l.bf16 %v1596_v7 }
 0xa27   :  { %1729 = vtanh.f32 %v825_v9  ;;  %v854_v16 = vmul.f32 0.5, %v825_v9 }
 0xa2c   :  { %v816_v10 = vpop.f32.mrf.mxu1 }
 0xa2d   :  { %v1730_v11 = vpop.eup %1729 }
 0xa2e   :  { %865 = vrot.lane.b32.xlu1 %v1730_v11, %s1775_s6 }
 0xa36   :  { %860 = vrot.lane.b32.xlu1 %v853_v12, %s1774_s26 }
 0xa8d   :  { %v844_v15 = vpop.permute.xlu0 %843 }
 0xa8e   :  { %v846_v17 = vadd.f32 %v844_v15, %v836_v14 }
 0xa90   :  { %1731 = vtanh.f32 %v846_v17 }
 0xa91   :  { %1733 = vtanh.f32 %v854_v16 }
 0xa96   :  { %v1732_v18 = vpop.eup %1731 }
 0xa97   :  { %849 = vrot.lane.b32.xlu0 %v1732_v18, %s1775_s6  ;;  %v1734_v19 = vpop.eup %1733 }
 0xa98   :  { %v856_v20 = vmul.f32 0.5, %v1734_v19 }
 0xa9a   :  { %v857_v21 = vadd.f32 0.5, %v856_v20 }
 0xaa0   :  { %v866_v22 = vpop.permute.xlu1 %865 }
 0xaa1   :  { %v868_v23 = vmul.f32 %v866_v22, %v857_v21 }
 0xaa3   :  { %870 = vrot.lane.b32.xlu2 %v868_v23, %s1774_s26 }
 0xaa8   :  { %v861_v24 = vpop.permute.xlu1 %860 }
 0xaa9   :  { %v863_v25 = vmul.f32 %v861_v24, %v857_v21 }
 0xafd   :  { %v871_v26 = vpop.permute.xlu2 %870 }
 0xafe   :  { %v873_v27 = vadd.f32 %v871_v26, %v863_v25 }
 0xb00   :  { %1735 = vtanh.f32 %v873_v27 }
 0xb06   :  { %v1736_v28 = vpop.eup %1735 }
 0xb07   :  { %876 = vrot.lane.b32.xlu1 %v1736_v28, %s1775_s6 }
 0xb09   :  { %v850_v29 = vpop.permute.xlu0 %849 }
 0xb0a   :  { %v852_v30 = vmul.f32 %v850_v29, %v830_v3 }
 0xb0c   :  { %881 = vst [vmem:[#allocation1] ss:$4 sm:$0xff] %v852_v30 }
 0xb13   :  { %v882_v33 = vld.sshfl [vmem:[#allocation1] sm:$0xff pattern:$0x73625140] }
 0xb14   :  { %883 = vrot.lane.b32.xlu2 %v882_v33, %s1774_s26  ;;  %888 = vst [vmem:[#allocation1] ss:$4 sm:$0xff] %v846_v17 }
 0xb1b   :  { %v889_v34 = vld.sshfl [vmem:[#allocation1] sm:$0xff pattern:$0x73625140] }
 0xb1c   :  { %890 = vrot.lane.b32.xlu1 %v889_v34, %s1776_s7 }
 0xb6e   :  { %v884_v38 = vpop.permute.xlu2 %883 }
 0xb6f   :  { %886 = vst.msk [vmem:[#allocation2] sm:$0x3] %vm57_vm0, %v884_v38  ;;  %v1666_v38 = vld [vmem:[%s2218_s2 + $0x8] sm:$0xff] }
 0xb70   :  { %1121 = vmatpush.bf16.msrb.mxu0 %v1666_v38 }
 0xb74   :  { %1122 = vmatpush.bf16.msrb.mxu0 %v1665_v39 }
 0xb76   :  { %v922_v41 = vld [vmem:[#allocation2] sm:$0x3] }
 0xb77   :  { %v923_v42 = vpack.c.bf16 %v922_v41, %v922_v41 }
 0xb79   :  { %v877_v43 = vpop.permute.xlu1 %876  ;;  %1585 = vmatmul.msk.bf16.vlgmr.msra.gmra.mxu2 %vm80_vm1, %v923_v42 }
 0xb7a   :  { %v879_v44 = vmul.f32 %v877_v43, %v857_v21 }
 0xb7c   :  { %895 = vst [vmem:[#allocation1] ss:$4 sm:$0xff] %v879_v44 }
 0xb83   :  { %v896_v46 = vld.sshfl [vmem:[#allocation1] sm:$0xff pattern:$0x73625140] }
 0xb84   :  { %897 = vrot.lane.b32.xlu0 %v896_v46, %s1774_s26  ;;  %902 = vst [vmem:[#allocation1] ss:$4 sm:$0xff] %v873_v27 }
 0xb8b   :  { %v903_v48 = vld.sshfl [vmem:[#allocation1] sm:$0xff pattern:$0x73625140] }
 0xb8c   :  { %904 = vrot.lane.b32.xlu0 %v903_v48, %s1776_s7  ;;  %908 = vst [vmem:[#allocation1] ss:$4 sm:$0xff] %v852_v30 }
 0xb8e   :  { %v891_v50 = vpop.permute.xlu1 %890 }
 0xb8f   :  { %893 = vst.msk [vmem:[#allocation3] sm:$0x3] %vm57_vm0, %v891_v50 }
 0xb93   :  { %v2015_v51 = vld.sshfl [vmem:[#allocation1] sm:$0xff pattern:$0x73625140] }
 0xb94   :  { %915 = vst [vmem:[#allocation1] ss:$4 sm:$0xff] %v879_v44 }
 0xb96   :  { %v998_v0 = vld [vmem:[#allocation3] sm:$0x3] }
 0xb9b   :  { %v2036_v27 = vld.sshfl [vmem:[#allocation1] sm:$0xff pattern:$0x73625140] }
 0xbf6   :  { %v898_v54 = vpop.permute.xlu0 %897 }
 0xbf7   :  { %900 = vst.msk [vmem:[#allocation4] sm:$0x3] %vm57_vm0, %v898_v54 }
 0xbfc   :  { %v952_v57 = vpop.f32.mrf.mxu2 }
 0xbfd   :  { %v993_v58 = vadd.f32 %v992_v56, %v952_v57  ;;  %v1667_v56 = vld [vmem:[%s2219_s3] sm:$0xff] }
 0xbfe   :  { %v905_v59 = vpop.permute.xlu0 %904  ;;  %v956_v60 = vld [vmem:[#allocation4] sm:$0x3]  ;;  %v1617_v57 = vld [vmem:[%s2220_s0 + $0x6] sm:$0x1]  ;;  %1156 = vmatpush.bf16.msrb.mxu1 %v1667_v56 }
 0xbff   :  { %1737 = vtanh.f32 %v993_v58  ;;  %907 = vst.msk [vmem:[#allocation5] sm:$0x3] %vm57_vm0, %v905_v59  ;;  %v957_v61 = vpack.c.bf16 %v956_v60, %v956_v60  ;;  %v999_v1 = vmul.f32 0.5, %v993_v58  ;;  %v1164_v58 = vunpack.c.l.bf16 %v1617_v57 }
 0xc01   :  { %1594 = vmatmul.msk.bf16.vlgmr.msra.gmra.mxu3 %vm80_vm1, %v957_v61  ;;  %1739 = vtanh.f32 %v999_v1 }
 0xc04   :  { %v954_v62 = vpop.f32.mrf.mxu2 }
 0xc05   :  { %v1738_v63 = vpop.eup %1737 }
 0xc06   :  { %1010 = vrot.lane.b32.xlu2 %v1738_v63, %s1775_s6  ;;  %v1025_v13 = vld [vmem:[#allocation5] sm:$0x3] }
 0xc07   :  { %v1740_v2 = vpop.eup %1739 }
 0xc08   :  { %v1001_v3 = vmul.f32 0.5, %v1740_v2 }
 0xc0a   :  { %v1002_v4 = vadd.f32 0.5, %v1001_v3 }
 0xc0e   :  { %1005 = vrot.lane.b32.xlu2 %v998_v0, %s1774_s26 }
 0xc60   :  { %v1011_v5 = vpop.permute.xlu2 %1010 }
 0xc61   :  { %v1013_v6 = vmul.f32 %v1011_v5, %v1002_v4 }
 0xc63   :  { %1015 = vrot.lane.b32.xlu0 %v1013_v6, %s1774_s26 }
 0xc68   :  { %v1006_v14 = vpop.permute.xlu2 %1005 }
 0xc69   :  { %v1008_v15 = vmul.f32 %v1006_v14, %v1002_v4 }
 0xc84   :  { %v986_v9 = vpop.f32.mrf.mxu3 }
 0xc85   :  { %v997_v10 = vadd.f32 %v996_v8, %v986_v9 }
 0xc87   :  { %1741 = vtanh.f32 %v997_v10  ;;  %v1026_v19 = vmul.f32 0.5, %v997_v10  ;;  %v1618_v10 = vld [vmem:[%s2221_s1 + $0x1] sm:$0x1] }
 0xc8c   :  { %v988_v11 = vpop.f32.mrf.mxu3 }
 0xc8d   :  { %v1742_v12 = vpop.eup %1741  ;;  %v1168_v11 = vunpack.c.l.bf16 %v1618_v10 }
 0xc8e   :  { %1037 = vrot.lane.b32.xlu1 %v1742_v12, %s1775_s6 }
 0xc96   :  { %1032 = vrot.lane.b32.xlu1 %v1025_v13, %s1774_s26 }
 0xcd5   :  { %v1016_v16 = vpop.permute.xlu0 %1015 }
 0xcd6   :  { %v1018_v17 = vadd.f32 %v1016_v16, %v1008_v15 }
 0xcd8   :  { %1743 = vtanh.f32 %v1018_v17 }
 0xcd9   :  { %1745 = vtanh.f32 %v1026_v19 }
 0xcde   :  { %v1744_v18 = vpop.eup %1743 }
 0xcdf   :  { %1021 = vrot.lane.b32.xlu0 %v1744_v18, %s1775_s6  ;;  %v1746_v20 = vpop.eup %1745 }
 0xce0   :  { %v1028_v21 = vmul.f32 0.5, %v1746_v20 }
 0xce2   :  { %v1029_v22 = vadd.f32 0.5, %v1028_v21 }
 0xd00   :  { %v1038_v23 = vpop.permute.xlu1 %1037 }
 0xd01   :  { %v1040_v24 = vmul.f32 %v1038_v23, %v1029_v22 }
 0xd03   :  { %1042 = vrot.lane.b32.xlu2 %v1040_v24, %s1774_s26 }
 0xd08   :  { %v1033_v28 = vpop.permute.xlu1 %1032 }
 0xd09   :  { %v1035_v30 = vmul.f32 %v1033_v28, %v1029_v22 }
 0xd51   :  { %v1022_v25 = vpop.permute.xlu0 %1021 }
 0xd52   :  { %v1024_v26 = vmul.f32 %v1022_v25, %v1002_v4 }
 0xd54   :  { %1053 = vst [vmem:[#allocation1] ss:$4 sm:$0xff] %v1024_v26 }
 0xd5b   :  { %v1054_v29 = vld.sshfl [vmem:[#allocation1] sm:$0xff pattern:$0x73625140] }
 0xd5c   :  { %1055 = vrot.lane.b32.xlu2 %v1054_v29, %s1774_s26  ;;  %1060 = vst [vmem:[#allocation1] ss:$4 sm:$0xff] %v1018_v17 }
 0xd5d   :  { %v1043_v33 = vpop.permute.xlu2 %1042 }
 0xd5e   :  { %v1045_v34 = vadd.f32 %v1043_v33, %v1035_v30 }
 0xd60   :  { %1747 = vtanh.f32 %v1045_v34 }
 0xd63   :  { %v1061_v37 = vld.sshfl [vmem:[#allocation1] sm:$0xff pattern:$0x73625140] }
 0xd66   :  { %v1748_v36 = vpop.eup %1747 }
 0xd67   :  { %1048 = vrot.lane.b32.xlu1 %v1748_v36, %s1775_s6 }
 0xd6f   :  { %1062 = vrot.lane.b32.xlu1 %v1061_v37, %s1776_s7 }
 0xdb6   :  { %v1056_v41 = vpop.permute.xlu2 %1055 }
 0xdb7   :  { %1058 = vst.msk [vmem:[#allocation2] sm:$0x3] %vm57_vm0, %v1056_v41 }
 0xdbe   :  { %v1094_v42 = vld [vmem:[#allocation2] sm:$0x3] }
 0xdbf   :  { %v1095_v43 = vpack.c.bf16 %v1094_v42, %v1094_v42 }
 0xdc1   :  { %1607 = vmatmul.msk.bf16.vlgmr.msrb.gmra.mxu0 %vm80_vm1, %v1095_v43  ;;  %v1670_v43 = vld [vmem:[%s2218_s2 + $0x8] sm:$0xff] }
 0xdc2   :  { %1293 = vmatpush.bf16.msrb.mxu2 %v1670_v43 }
 0xdd9   :  { %v1049_v44 = vpop.permute.xlu1 %1048 }
 0xdda   :  { %v1051_v46 = vmul.f32 %v1049_v44, %v1029_v22  ;;  %v1669_v44 = vld [vmem:[%s2218_s2] sm:$0xff] }
 0xddb   :  { %1294 = vmatpush.bf16.msrb.mxu2 %v1669_v44 }
 0xddc   :  { %1067 = vst [vmem:[#allocation1] ss:$4 sm:$0xff] %v1051_v46 }
 0xde1   :  { %v1063_v48 = vpop.permute.xlu1 %1062 }
 0xde2   :  { %1065 = vst.msk [vmem:[#allocation3] sm:$0x3] %vm57_vm0, %v1063_v48 }
 0xde3   :  { %v1068_v50 = vld.sshfl [vmem:[#allocation1] sm:$0xff pattern:$0x73625140] }
 0xde4   :  { %1069 = vrot.lane.b32.xlu0 %v1068_v50, %s1774_s26  ;;  %1074 = vst [vmem:[#allocation1] ss:$4 sm:$0xff] %v1045_v34 }
 0xde9   :  { %v1170_v63 = vld [vmem:[#allocation3] sm:$0x3] }
 0xdeb   :  { %v1075_v52 = vld.sshfl [vmem:[#allocation1] sm:$0xff pattern:$0x73625140] }
 0xdec   :  { %1076 = vrot.lane.b32.xlu0 %v1075_v52, %s1776_s7  ;;  %1080 = vst [vmem:[#allocation1] ss:$4 sm:$0xff] %v1024_v26 }
 0xdf3   :  { %v2052_v54 = vld.sshfl [vmem:[#allocation1] sm:$0xff pattern:$0x73625140] }
 0xdf4   :  { %1087 = vst [vmem:[#allocation1] ss:$4 sm:$0xff] %v1051_v46 }
 0xdfb   :  { %v2076_v33 = vld.sshfl [vmem:[#allocation1] sm:$0xff pattern:$0x73625140] }
 0xe3e   :  { %v1124_v59 = vpop.f32.mrf.mxu0 }
 0xe3f   :  { %v1165_v60 = vadd.f32 %v1164_v58, %v1124_v59 }
 0xe41   :  { %1749 = vtanh.f32 %v1165_v60  ;;  %v1171_v4 = vmul.f32 0.5, %v1165_v60  ;;  %v1672_v60 = vld [vmem:[%s2219_s3 + $0x8] sm:$0xff] }
 0xe42   :  { %1327 = vmatpush.bf16.msrb.mxu3 %v1672_v60 }
 0xe43   :  { %1751 = vtanh.f32 %v1171_v4 }
 0xe46   :  { %v1126_v61 = vpop.f32.mrf.mxu0 }
 0xe47   :  { %v1750_v62 = vpop.eup %1749  ;;  %v1639_v61 = vld [vmem:[%s2220_s0 + $0x7] sm:$0x1] }
 0xe48   :  { %1182 = vrot.lane.b32.xlu2 %v1750_v62, %s1775_s6  ;;  %v1336_v62 = vunpack.c.l.bf16 %v1639_v61 }
 0xe49   :  { %v1752_v5 = vpop.eup %1751 }
 0xe4a   :  { %v1173_v6 = vmul.f32 0.5, %v1752_v5 }
 0xe4c   :  { %v1174_v7 = vadd.f32 0.5, %v1173_v6 }
 0xe50   :  { %1177 = vrot.lane.b32.xlu2 %v1170_v63, %s1774_s26 }
 0xe56   :  { %v1070_v0 = vpop.permute.xlu0 %1069 }
 0xe57   :  { %1072 = vst.msk [vmem:[#allocation4] sm:$0x3] %vm57_vm0, %v1070_v0 }
 0xe5e   :  { %v1077_v1 = vpop.permute.xlu0 %1076  ;;  %v1128_v2 = vld [vmem:[#allocation4] sm:$0x3] }
 0xe5f   :  { %1079 = vst.msk [vmem:[#allocation5] sm:$0x3] %vm57_vm0, %v1077_v1  ;;  %v1129_v3 = vpack.c.bf16 %v1128_v2, %v1128_v2 }
 0xe61   :  { %1616 = vmatmul.msk.bf16.vlgmr.msrb.gmra.mxu1 %vm80_vm1, %v1129_v3  ;;  %v1671_v3 = vld [vmem:[%s2219_s3] sm:$0xff] }
 0xe62   :  { %1328 = vmatpush.bf16.msrb.mxu3 %v1671_v3 }
 0xe66   :  { %v1197_v16 = vld [vmem:[#allocation5] sm:$0x3] }
 0xea2   :  { %v1183_v8 = vpop.permute.xlu2 %1182 }
 0xea3   :  { %v1185_v9 = vmul.f32 %v1183_v8, %v1174_v7 }
 0xea5   :  { %1187 = vrot.lane.b32.xlu0 %v1185_v9, %s1774_s26 }
 0xeaa   :  { %v1178_v17 = vpop.permute.xlu2 %1177 }
 0xeab   :  { %v1180_v18 = vmul.f32 %v1178_v17, %v1174_v7 }
 0xede   :  { %v1158_v12 = vpop.f32.mrf.mxu1 }
 0xedf   :  { %v1169_v13 = vadd.f32 %v1168_v11, %v1158_v12 }
 0xee1   :  { %1753 = vtanh.f32 %v1169_v13  ;;  %v1198_v22 = vmul.f32 0.5, %v1169_v13 }
 0xee6   :  { %v1160_v14 = vpop.f32.mrf.mxu1 }
 0xee7   :  { %v1754_v15 = vpop.eup %1753 }
 0xee8   :  { %1209 = vrot.lane.b32.xlu1 %v1754_v15, %s1775_s6  ;;  %v1338_v15 = vld [vmem:[%s2221_s1] sm:$0x1] }
 0xef0   :  { %1204 = vrot.lane.b32.xlu1 %v1197_v16, %s1774_s26  ;;  %v1339_v16 = vunpack.c.l.bf16 %v1338_v15 }
 0xf17   :  { %v1188_v19 = vpop.permute.xlu0 %1187 }
 0xf18   :  { %v1190_v20 = vadd.f32 %v1188_v19, %v1180_v18 }
 0xf1a   :  { %1755 = vtanh.f32 %v1190_v20 }
 0xf1b   :  { %1757 = vtanh.f32 %v1198_v22 }
 0xf20   :  { %v1756_v21 = vpop.eup %1755 }
 0xf21   :  { %1193 = vrot.lane.b32.xlu0 %v1756_v21, %s1775_s6  ;;  %v1758_v23 = vpop.eup %1757 }
 0xf22   :  { %v1200_v24 = vmul.f32 0.5, %v1758_v23 }
 0xf24   :  { %v1201_v25 = vadd.f32 0.5, %v1200_v24 }
 0xf5a   :  { %v1210_v26 = vpop.permute.xlu1 %1209 }
 0xf5b   :  { %v1212_v28 = vmul.f32 %v1210_v26, %v1201_v25 }
 0xf5d   :  { %1214 = vrot.lane.b32.xlu2 %v1212_v28, %s1774_s26 }
 0xf62   :  { %v1205_v36 = vpop.permute.xlu1 %1204 }
 0xf63   :  { %v1207_v37 = vmul.f32 %v1205_v36, %v1201_v25 }
 0xf93   :  { %v1194_v29 = vpop.permute.xlu0 %1193 }
 0xf94   :  { %v1196_v30 = vmul.f32 %v1194_v29, %v1174_v7 }
 0xf96   :  { %1225 = vst [vmem:[#allocation1] ss:$4 sm:$0xff] %v1196_v30 }
 0xf9d   :  { %v1226_v34 = vld.sshfl [vmem:[#allocation1] sm:$0xff pattern:$0x73625140] }
 0xf9e   :  { %1227 = vrot.lane.b32.xlu2 %v1226_v34, %s1774_s26  ;;  %1232 = vst [vmem:[#allocation1] ss:$4 sm:$0xff] %v1190_v20 }
 0xfa5   :  { %v1233_v42 = vld.sshfl [vmem:[#allocation1] sm:$0xff pattern:$0x73625140] }
 0xfb7   :  { %v1215_v38 = vpop.permute.xlu2 %1214 }
 0xfb8   :  { %v1217_v39 = vadd.f32 %v1215_v38, %v1207_v37 }
 0xfba   :  { %1759 = vtanh.f32 %v1217_v39 }
 0xfc0   :  { %v1760_v41 = vpop.eup %1759 }
 0xfc1   :  { %1220 = vrot.lane.b32.xlu1 %v1760_v41, %s1775_s6 }
 0xfc9   :  { %1234 = vrot.lane.b32.xlu1 %v1233_v42, %s1776_s7 }
 0xff8   :  { %v1228_v46 = vpop.permute.xlu2 %1227 }
 0xff9   :  { %1230 = vst.msk [vmem:[#allocation2] sm:$0x3] %vm57_vm0, %v1228_v46 }
0x1000   :  { %v1266_v48 = vld [vmem:[#allocation2] sm:$0x3] }
0x1001   :  { %v1267_v50 = vpack.c.bf16 %v1266_v48, %v1266_v48 }
0x1003   :  { %1629 = vmatmul.msk.bf16.vlgmr.msrb.gmra.mxu2 %vm80_vm1, %v1267_v50 }
0x1033   :  { %v1221_v52 = vpop.permute.xlu1 %1220 }
0x1034   :  { %v1223_v55 = vmul.f32 %v1221_v52, %v1201_v25 }
0x1036   :  { %1239 = vst [vmem:[#allocation1] ss:$4 sm:$0xff] %v1223_v55 }
0x103b   :  { %v1235_v56 = vpop.permute.xlu1 %1234 }
0x103c   :  { %1237 = vst.msk [vmem:[#allocation3] sm:$0x3] %vm57_vm0, %v1235_v56 }
0x103d   :  { %v1240_v57 = vld.sshfl [vmem:[#allocation1] sm:$0xff pattern:$0x73625140] }
0x103e   :  { %1241 = vrot.lane.b32.xlu0 %v1240_v57, %s1774_s26  ;;  %1246 = vst [vmem:[#allocation1] ss:$4 sm:$0xff] %v1217_v39 }
0x1043   :  { %v1341_v4 = vld [vmem:[#allocation3] sm:$0x3] }
0x1045   :  { %v1247_v58 = vld.sshfl [vmem:[#allocation1] sm:$0xff pattern:$0x73625140] }
0x1046   :  { %1248 = vrot.lane.b32.xlu0 %v1247_v58, %s1776_s7  ;;  %1252 = vst [vmem:[#allocation1] ss:$4 sm:$0xff] %v1196_v30 }
0x104d   :  { %v2092_v59 = vld.sshfl [vmem:[#allocation1] sm:$0xff pattern:$0x73625140] }
0x104e   :  { %1259 = vst [vmem:[#allocation1] ss:$4 sm:$0xff] %v1223_v55 }
0x1055   :  { %v1260_v28 = vld.sshfl [vmem:[#allocation1] sm:$0xff pattern:$0x73625140] }
0x1086   :  { %v1296_v63 = vpop.f32.mrf.mxu2 }
0x1087   :  { %v1337_v0 = vadd.f32 %v1336_v62, %v1296_v63 }
0x1089   :  { %1761 = vtanh.f32 %v1337_v0  ;;  %v1342_v9 = vmul.f32 0.5, %v1337_v0 }
0x108b   :  { %1763 = vtanh.f32 %v1342_v9 }
0x108e   :  { %v1298_v1 = vpop.f32.mrf.mxu2 }
0x108f   :  { %v1762_v2 = vpop.eup %1761 }
0x1090   :  { %1353 = vrot.lane.b32.xlu2 %v1762_v2, %s1775_s6 }
0x1091   :  { %v1764_v10 = vpop.eup %1763 }
0x1092   :  { %v1344_v11 = vmul.f32 0.5, %v1764_v10 }
0x1094   :  { %v1345_v12 = vadd.f32 0.5, %v1344_v11 }
0x1098   :  { %1348 = vrot.lane.b32.xlu2 %v1341_v4, %s1774_s26 }
0x10b0   :  { %v1242_v5 = vpop.permute.xlu0 %1241 }
0x10b1   :  { %1244 = vst.msk [vmem:[#allocation4] sm:$0x3] %vm57_vm0, %v1242_v5 }
0x10b8   :  { %v1249_v6 = vpop.permute.xlu0 %1248  ;;  %v1300_v7 = vld [vmem:[#allocation4] sm:$0x3] }
0x10b9   :  { %1251 = vst.msk [vmem:[#allocation5] sm:$0x3] %vm57_vm0, %v1249_v6  ;;  %v1301_v8 = vpack.c.bf16 %v1300_v7, %v1300_v7 }
0x10bb   :  { %1638 = vmatmul.msk.bf16.vlgmr.msrb.gmra.mxu3 %vm80_vm1, %v1301_v8 }
0x10c0   :  { %v1368_v21 = vld [vmem:[#allocation5] sm:$0x3] }
0x10ea   :  { %v1354_v13 = vpop.permute.xlu2 %1353 }
0x10eb   :  { %v1356_v14 = vmul.f32 %v1354_v13, %v1345_v12 }
0x10ed   :  { %1358 = vrot.lane.b32.xlu0 %v1356_v14, %s1774_s26 }
0x10f2   :  { %v1349_v22 = vpop.permute.xlu2 %1348 }
0x10f3   :  { %v1351_v23 = vmul.f32 %v1349_v22, %v1345_v12 }
0x113e   :  { %v1330_v17 = vpop.f32.mrf.mxu3 }
0x113f   :  { %v1340_v18 = vadd.f32 %v1339_v16, %v1330_v17 }
0x1141   :  { %1765 = vtanh.f32 %v1340_v18  ;;  %v1369_v29 = vmul.f32 0.5, %v1340_v18 }
0x1146   :  { %v1332_v19 = vpop.f32.mrf.mxu3 }
0x1147   :  { %v1766_v20 = vpop.eup %1765 }
0x1148   :  { %1380 = vrot.lane.b32.xlu1 %v1766_v20, %s1775_s6 }
0x1150   :  { %1375 = vrot.lane.b32.xlu1 %v1368_v21, %s1774_s26 }
0x115f   :  { %v1359_v24 = vpop.permute.xlu0 %1358 }
0x1160   :  { %v1361_v25 = vadd.f32 %v1359_v24, %v1351_v23 }
0x1162   :  { %1767 = vtanh.f32 %v1361_v25 }
0x1163   :  { %1769 = vtanh.f32 %v1369_v29 }
0x1168   :  { %v1768_v26 = vpop.eup %1767 }
0x1169   :  { %1364 = vrot.lane.b32.xlu0 %v1768_v26, %s1775_s6  ;;  %v1770_v30 = vpop.eup %1769 }
0x116a   :  { %v1371_v34 = vmul.f32 0.5, %v1770_v30 }
0x116c   :  { %v1372_v36 = vadd.f32 0.5, %v1371_v34 }
0x1171   :  { %229 = vrot.lane.b32.xlu0 %v1877_v40, %s1774_s26 }
0x1179   :  { %566 = vrot.lane.b32.xlu0 %v1929_v45, %s1774_s26 }
0x1181   :  { %745 = vrot.lane.b32.xlu0 %v1997_v31, %s1774_s26 }
0x1189   :  { %1082 = vrot.lane.b32.xlu0 %v2052_v54, %s1774_s26 }
0x1191   :  { %1261 = vrot.lane.b32.xlu0 %v1260_v28, %s1774_s26 }
0x11ba   :  { %v1381_v37 = vpop.permute.xlu1 %1380 }
0x11bb   :  { %v1383_v38 = vmul.f32 %v1381_v37, %v1372_v36 }
0x11bd   :  { %1385 = vrot.lane.b32.xlu2 %v1383_v38, %s1774_s26 }
0x11c2   :  { %v1376_v41 = vpop.permute.xlu1 %1375 }
0x11c3   :  { %v1378_v42 = vmul.f32 %v1376_v41, %v1372_v36 }
0x11c5   :  { %223 = vrot.lane.b32.xlu2 %v1843_v53, %s1774_s26 }
0x11cd   :  { %401 = vrot.lane.b32.xlu2 %v1917_v35, %s1774_s26 }
0x11d5   :  { %738 = vrot.lane.b32.xlu2 %v1974_v49, %s1774_s26 }
0x11db   :  { %v1365_v40 = vpop.permute.xlu0 %1364 }
0x11dc   :  { %v1367_v45 = vmul.f32 %v1365_v40, %v1345_v12 }
0x11dd   :  { %917 = vrot.lane.b32.xlu2 %v2036_v27, %s1774_s26 }
0x11de   :  { %1396 = vst [vmem:[#allocation1] ss:$4 sm:$0xff] %v1367_v45 }
0x11e3   :  { %v230_v31 = vpop.permute.xlu0 %229 }
0x11e4   :  { %1488 = vst.msk [vmem:[%s2222_s5 + $0xe] sm:$0x3] %vm57_vm0, %v230_v31 }
0x11e5   :  { %1254 = vrot.lane.b32.xlu2 %v2092_v59, %s1774_s26  ;;  %v1397_v53 = vld.sshfl [vmem:[#allocation1] sm:$0xff pattern:$0x73625140] }
0x11e6   :  { %1403 = vst [vmem:[#allocation1] ss:$4 sm:$0xff] %v1361_v25 }
0x11eb   :  { %v567_v35 = vpop.permute.xlu0 %566 }
0x11ec   :  { %1531 = vst.msk [vmem:[%s2223_s4 + $0x4] sm:$0x3] %vm57_vm0, %v567_v35 }
0x11ed   :  { %v1404_v49 = vld.sshfl [vmem:[#allocation1] sm:$0xff pattern:$0x73625140] }
0x11ee   :  { %1405 = vrot.lane.b32.xlu2 %v1404_v49, %s1776_s7 }
0x11f3   :  { %v746_v27 = vpop.permute.xlu0 %745 }
0x11f4   :  { %1554 = vst.msk [vmem:[%s2222_s5 + $0x8] sm:$0x3] %vm57_vm0, %v746_v27 }
0x11fb   :  { %v1083_v54 = vpop.permute.xlu0 %1082 }
0x11fc   :  { %1597 = vst.msk [vmem:[%s2223_s4 + $0xa] sm:$0x3] %vm57_vm0, %v1083_v54 }
0x1203   :  { %v1262_v39 = vpop.permute.xlu0 %1261 }
0x1204   :  { %1620 = vst.msk [vmem:[%s2222_s5 + $0x2] sm:$0x3] %vm57_vm0, %v1262_v39 }
0x1217   :  { %v1386_v43 = vpop.permute.xlu2 %1385 }
0x1218   :  { %v1388_v44 = vadd.f32 %v1386_v43, %v1378_v42 }
0x121a   :  { %1771 = vtanh.f32 %v1388_v44 }
0x121f   :  { %v224_v46 = vpop.permute.xlu2 %223 }
0x1220   :  { %v1772_v48 = vpop.eup %1771  ;;  %226 = vst.msk [vmem:[%s2223_s4] sm:$0x3] %vm57_vm0, %v224_v46 }
0x1221   :  { %1391 = vrot.lane.b32.xlu1 %v1772_v48, %s1775_s6 }
0x1227   :  { %v402_v50 = vpop.permute.xlu2 %401 }
0x1228   :  { %1510 = vst.msk [vmem:[%s2222_s5 + $0xc] sm:$0x3] %vm57_vm0, %v402_v50 }
0x1229   :  { %394 = vrot.lane.b32.xlu1 %v1883_v47, %s1774_s26 }
0x122f   :  { %v739_v52 = vpop.permute.xlu2 %738 }
0x1230   :  { %1553 = vst.msk [vmem:[%s2223_s4 + $0x6] sm:$0x3] %vm57_vm0, %v739_v52 }
0x1231   :  { %573 = vrot.lane.b32.xlu1 %v1957_v32, %s1774_s26 }
0x1237   :  { %v918_v55 = vpop.permute.xlu2 %917 }
0x1238   :  { %1576 = vst.msk [vmem:[%s2222_s5 + $0x6] sm:$0x3] %vm57_vm0, %v918_v55 }
0x1239   :  { %910 = vrot.lane.b32.xlu1 %v2015_v51, %s1774_s26 }
0x123f   :  { %v1255_v56 = vpop.permute.xlu2 %1254 }
0x1240   :  { %1619 = vst.msk [vmem:[%s2223_s4 + $0xc] sm:$0x3] %vm57_vm0, %v1255_v56 }
0x1241   :  { %1089 = vrot.lane.b32.xlu1 %v2076_v33, %s1774_s26 }
0x1248   :  { %v1406_v47 = vpop.permute.xlu2 %1405 }
0x1249   :  { %1408 = vst.msk [vmem:[#allocation3] sm:$0x3] %vm57_vm0, %v1406_v47  ;;  %1398 = vrot.lane.b32.xlu1 %v1397_v53, %s1774_s26 }
0x1293   :  { %v1392_v32 = vpop.permute.xlu1 %1391 }
0x1294   :  { %v1394_v57 = vmul.f32 %v1392_v32, %v1372_v36 }
0x1296   :  { %1410 = vst [vmem:[#allocation1] ss:$4 sm:$0xff] %v1394_v57 }
0x129b   :  { %v395_v58 = vpop.permute.xlu1 %394 }
0x129c   :  { %1509 = vst.msk [vmem:[%s2223_s4 + $0x2] sm:$0x3] %vm57_vm0, %v395_v58 }
0x129d   :  { %v1411_v51 = vld.sshfl [vmem:[#allocation1] sm:$0xff pattern:$0x73625140] }
0x129e   :  { %1412 = vrot.lane.b32.xlu0 %v1411_v51, %s1774_s26  ;;  %1417 = vst [vmem:[#allocation1] ss:$4 sm:$0xff] %v1388_v44 }
0x12a3   :  { %v574_v59 = vpop.permute.xlu1 %573 }
0x12a4   :  { %1532 = vst.msk [vmem:[%s2222_s5 + $0xa] sm:$0x3] %vm57_vm0, %v574_v59 }
0x12a5   :  { %v1418_v33 = vld.sshfl [vmem:[#allocation1] sm:$0xff pattern:$0x73625140] }
0x12a6   :  { %1419 = vrot.lane.b32.xlu1 %v1418_v33, %s1776_s7  ;;  %1423 = vst [vmem:[#allocation1] ss:$4 sm:$0xff] %v1367_v45 }
0x12ab   :  { %v911_v60 = vpop.permute.xlu1 %910 }
0x12ac   :  { %1575 = vst.msk [vmem:[%s2223_s4 + $0x8] sm:$0x3] %vm57_vm0, %v911_v60 }
0x12ad   :  { %v1424_v61 = vld.sshfl [vmem:[#allocation1] sm:$0xff pattern:$0x73625140] }
0x12ae   :  { %1425 = vrot.lane.b32.xlu2 %v1424_v61, %s1774_s26  ;;  %1430 = vst [vmem:[#allocation1] ss:$4 sm:$0xff] %v1394_v57 }
0x12b3   :  { %v1090_v62 = vpop.permute.xlu1 %1089 }
0x12b4   :  { %1598 = vst.msk [vmem:[%s2222_s5 + $0x4] sm:$0x3] %vm57_vm0, %v1090_v62 }
0x12b5   :  { %v1431_v63 = vld.sshfl [vmem:[#allocation1] sm:$0xff pattern:$0x73625140] }
0x12b6   :  { %1432 = vrot.lane.b32.xlu0 %v1431_v63, %s1774_s26 }
0x12bb   :  { %v1399_v0 = vpop.permute.xlu1 %1398 }
0x12bc   :  { %1401 = vst.msk [vmem:[#allocation2] sm:$0x3] %vm57_vm0, %v1399_v0 }
0x1308   :  { %v1426_v1 = vpop.permute.xlu2 %1425 }
0x1309   :  { %1640 = vst.msk [vmem:[%s2223_s4 + $0xe] sm:$0x3] %vm57_vm0, %v1426_v1 }
0x1310   :  { %v1413_v2 = vpop.permute.xlu0 %1412 }
0x1311   :  { %1415 = vst.msk [vmem:[#allocation4] sm:$0x3] %vm57_vm0, %v1413_v2 }
0x1318   :  { %v1420_v3 = vpop.permute.xlu1 %1419 }
0x1319   :  { %1422 = vst.msk [vmem:[#allocation5] sm:$0x3] %vm57_vm0, %v1420_v3 }
0x1328   :  { %v1433_v4 = vpop.permute.xlu0 %1432 }
0x1329   :  { %1435 = vst.msk [vmem:[%s2222_s5] sm:$0x3] %vm57_vm0, %v1433_v4 }

</bundles_post_ra>
